<compile_context>
chip_gen: v6e
topology: v6e:2x2x1
jax: 0.10.0
libtpu: 0.0.40
codegen_flags: <defaults>
</compile_context>

<pallas_src>
import functools

import numpy as np
import jax
import jax.numpy as jnp
from jax import lax
from jax.experimental import pallas as pl
from jax.experimental.pallas import tpu as pltpu


def _round_up(x, m):
    return ((x + m - 1) // m) * m


def _fusion_head_kernel(ho, hp,
                        scalars_ref,
                        obj_boxes_t_ref, part_boxes_ref,
                        obj_feats_ref, part_feats_ref,
                        w_obj_top_ref, w_obj_rel_ref, b_obj_ref,
                        w_part_top_ref, w_part_rel_ref, b_part_ref,
                        obj_out_ref, part_out_ref,
                        attn_part_sc, part_wise_acc, rel_obj_acc):
    # Grid: (image b [parallel], object-column block k [arbitrary]).
    # ho / hp: number of "real" head columns per detector (n_cls + 4*n_cls);
    # column `ho` (resp. `hp`) of the *_top weight slab is the attention
    # projection, remaining columns are zero padding.
    k = pl.program_id(1)
    n_k = pl.num_programs(1)

    thresh = scalars_ref[0]      # fusion threshold (SMEM scalar)
    b_attn = scalars_ref[1]      # attention-layer bias (SMEM scalar)

    obt = obj_boxes_t_ref[0]     # (4, T)   rows: x1, y1, x2, y2 (this block)
    pb = part_boxes_ref[0]       # (N2, 4)  f32
    of = obj_feats_ref[0]        # (T, F1)  bf16
    pf = part_feats_ref[0]       # (N2, F2) bf16

    # ---- once per image (k == 0): part-side top matmul + accumulator init ----
    @pl.when(k == 0)
    def _():
        top_part = jnp.dot(pf, w_part_top_ref[...],
                           preferred_element_type=jnp.float32)        # (N2, C_PART)
        part_out_ref[0] = top_part        # resident across k (same block index)
        attn_part_sc[...] = top_part[:, hp:hp + 1]
        part_wise_acc[...] = jnp.zeros_like(part_wise_acc)
        rel_obj_acc[...] = jnp.zeros_like(rel_obj_acc)

    # ---- overlap mask for this block of object columns (f32 VPU math) --------
    ox1 = obt[0:1, :]; oy1 = obt[1:2, :]; ox2 = obt[2:3, :]; oy2 = obt[3:4, :]  # (1, T)
    px1 = pb[:, 0:1]; py1 = pb[:, 1:2]; px2 = pb[:, 2:3]; py2 = pb[:, 3:4]      # (N2, 1)

    part_areas = (py2 - py1) * (px2 - px1)                                      # (N2, 1)
    ow = jnp.maximum(jnp.minimum(ox2, px2) - jnp.maximum(ox1, px1), 0.0)        # (N2, T)
    oh = jnp.maximum(jnp.minimum(oy2, py2) - jnp.maximum(oy1, py1), 0.0)
    overlap_areas = ow * oh                                                     # (N2, T)
    # overlap / area >= thresh  <=>  overlap >= thresh * area  for area > 0;
    # degenerate (zero-area) parts never match (torch: 0/0 -> nan -> no match).
    mask = jnp.logical_and(overlap_areas >= thresh * part_areas,
                           part_areas > 0.0)                                    # (N2, T)

    # ---- attention scores for this block (bf16 operands, f32 accumulation) ---
    top_obj = jnp.dot(of, w_obj_top_ref[...],
                      preferred_element_type=jnp.float32)                       # (T, C_OBJ)
    attn_obj = top_obj[:, ho:ho + 1]                                            # (T, 1)
    attn = attn_part_sc[...] + jnp.transpose(attn_obj) + b_attn                 # (N2, T)
    scores = jnp.where(mask, attn, 0.0)                                         # (N2, T) f32
    scores_bf = scores.astype(jnp.bfloat16)

    # ---- part side: accumulate, finalized on the last block -------------------
    part_wise_acc[...] += jnp.sum(scores, axis=1, keepdims=True)                # (N2, 1)
    rel_obj_acc[...] += jnp.dot(scores_bf, of,
                                preferred_element_type=jnp.float32)             # (N2, F1)

    # ---- obj side: complete for this column block ------------------------------
    # Column sums produced directly in (T, 1) orientation by a tiny f32
    # ones-column dot_general (avoids a (1, T)->(T, 1) relayout); normalizers
    # stay f32-exact for score parity with the torch model.
    obj_wise = lax.dot_general(
        scores, jnp.ones((scores.shape[0], 1), jnp.float32),
        dimension_numbers=(((0,), (0,)), ((), ())),
        preferred_element_type=jnp.float32)                                     # (T, 1)
    inv_o = pl.reciprocal(jnp.where(obj_wise > 0, obj_wise, 1.0), approx=False)
    # Transpose-free aggregation: contract dim 0 of both operands on the MXU;
    # the normalizer is applied AFTER the matmul (no scaled (N2, T) temporary).
    rel_part = lax.dot_general(scores_bf, pf,
                               dimension_numbers=(((0,), (0,)), ((), ())),
                               preferred_element_type=jnp.float32) * inv_o      # (T, F2)

    obj_out_ref[0] = (top_obj
                      + jnp.dot(rel_part.astype(jnp.bfloat16), w_obj_rel_ref[...],
                                preferred_element_type=jnp.float32)
                      + b_obj_ref[...])

    # ---- finalize part side on the last object-column block -------------------
    @pl.when(k == n_k - 1)
    def _():
        pw = part_wise_acc[...]
        inv_p = pl.reciprocal(jnp.where(pw > 0, pw, 1.0), approx=False)
        rel_obj = (rel_obj_acc[...] * inv_p).astype(jnp.bfloat16)               # (N2, F1)
        part_out_ref[0] = (part_out_ref[0]
                           + jnp.dot(rel_obj, w_part_rel_ref[...],
                                     preferred_element_type=jnp.float32)
                           + b_part_ref[...])


def joint_fusion_predict(obj_boxes, part_boxes, obj_feats, part_feats, params,
                         fusion_thresh=0.9, n1_block=None):
    """Fused obj/part features + FastRCNNPredictor heads via one Pallas kernel.

    obj_boxes:  (B, N1, 4) f32    part_boxes: (B, N2, 4) f32
    obj_feats:  (B, N1, F1) f32   part_feats: (B, N2, F2) f32
    Returns (obj_class_logits, obj_box_regression, part_class_logits,
             part_box_regression) with images concatenated along axis 0,
    matching the torch List->cat convention.
    """
    f32 = jnp.float32
    bf16 = jnp.bfloat16
    B, N1, _ = obj_boxes.shape
    _, N2, _ = part_boxes.shape
    F1 = obj_feats.shape[-1]
    F2 = part_feats.shape[-1]
    n_obj = params["w_cls_obj"].shape[1]
    n_part = params["w_cls_part"].shape[1]
    ho = 5 * n_obj                      # cls (n) + boxreg (4n) columns
    hp = 5 * n_part
    c_obj = _round_up(ho + 1, 128)      # +1 column for the attention projection
    c_part = _round_up(hp + 1, 128)

    # ---- N1 (object proposal) blocking ------------------------------------
    if n1_block is None:
        n1_block = 512
    if N1 <= n1_block:
        n1_block = N1                       # single full-dim block (always legal)
    else:
        n1_block = _round_up(n1_block, 128)  # keep the (8,128) block rule
    n1_pad = _round_up(N1, n1_block)
    kb = n1_pad // n1_block

    # ---- Host-side weight packing (precomputed once in serving) ------------
    def pack(cols, c, dtype):
        x = jnp.concatenate([v.astype(f32) for v in cols], axis=1)
        return jnp.pad(x, ((0, 0), (0, c - x.shape[1]))).astype(dtype)

    w_obj_top = pack([params["w_cls_obj"][:F1], params["w_box_obj"][:F1],
                      params["w_attn_obj"]], c_obj, bf16)                  # (F1, c_obj)
    w_obj_rel = pack([params["w_cls_obj"][F1:], params["w_box_obj"][F1:]],
                     c_obj, bf16)                                          # (F2, c_obj)
    b_obj = pack([params["b_cls_obj"], params["b_box_obj"]], c_obj, f32)   # (1, c_obj)
    w_part_top = pack([params["w_cls_part"][:F2], params["w_box_part"][:F2],
                       params["w_attn_part"]], c_part, bf16)               # (F2, c_part)
    w_part_rel = pack([params["w_cls_part"][F2:], params["w_box_part"][F2:]],
                      c_part, bf16)                                        # (F1, c_part)
    b_part = pack([params["b_cls_part"], params["b_box_part"]], c_part, f32)

    scalars = jnp.concatenate(
        [jnp.array([fusion_thresh], dtype=f32),
         jnp.reshape(params["b_attn"], (1,)).astype(f32)])                 # (2,) SMEM

    # ROI features ride in bf16 (halves feature DMA; bf16 MXU operands).
    obj_feats_in = obj_feats.astype(bf16)
    part_feats_in = part_feats.astype(bf16)
    obj_boxes_in = obj_boxes.astype(f32)
    if n1_pad != N1:
        # Padded object columns get zero-area boxes -> never related -> scores 0,
        # so they do not perturb the part-side normalizers; their output rows are
        # sliced away below.
        obj_boxes_in = jnp.pad(obj_boxes_in, ((0, 0), (0, n1_pad - N1), (0, 0)))
        obj_feats_in = jnp.pad(obj_feats_in, ((0, 0), (0, n1_pad - N1), (0, 0)))
    obj_boxes_t = jnp.transpose(obj_boxes_in, (0, 2, 1))                   # (B, 4, n1_pad)

    const = lambda b, k: (0, 0)

    in_specs = [
        pl.BlockSpec(memory_space=pltpu.MemorySpace.SMEM),                 # scalars
        pl.BlockSpec((1, 4, n1_block), lambda b, k: (b, 0, k)),
        pl.BlockSpec((1, N2, 4), lambda b, k: (b, 0, 0)),
        pl.BlockSpec((1, n1_block, F1), lambda b, k: (b, k, 0)),
        pl.BlockSpec((1, N2, F2), lambda b, k: (b, 0, 0)),
        pl.BlockSpec((F1, c_obj), const),
        pl.BlockSpec((F2, c_obj), const),
        pl.BlockSpec((1, c_obj), const),
        pl.BlockSpec((F2, c_part), const),
        pl.BlockSpec((F1, c_part), const),
        pl.BlockSpec((1, c_part), const),
    ]
    out_specs = (
        pl.BlockSpec((1, n1_block, c_obj), lambda b, k: (b, k, 0)),
        pl.BlockSpec((1, N2, c_part), lambda b, k: (b, 0, 0)),   # resident over k
    )
    out_shape = (
        jax.ShapeDtypeStruct((B, n1_pad, c_obj), f32),
        jax.ShapeDtypeStruct((B, N2, c_part), f32),
    )
    scratch_shapes = [
        pltpu.VMEM((N2, 1), f32),      # attn_part_sc
        pltpu.VMEM((N2, 1), f32),      # part_wise_acc
        pltpu.VMEM((N2, F1), f32),     # rel_obj_acc
    ]

    kernel = functools.partial(_fusion_head_kernel, ho, hp)
    obj_out, part_out = pl.pallas_call(
        kernel,
        out_shape=out_shape,
        grid_spec=pltpu.PrefetchScalarGridSpec(
            num_scalar_prefetch=0,
            grid=(B, kb),
            in_specs=in_specs,
            out_specs=out_specs,
            scratch_shapes=scratch_shapes),
        compiler_params=pltpu.CompilerParams(
            dimension_semantics=("parallel", "arbitrary"),
            # Blocked working set at production sizes (N~1024, F~1024,
            # n1_block=512, bf16 features/weights/scores): ~30 MiB including
            # double-buffered feature tiles and the f32 rel_obj accumulator.
            # 40 MiB leaves headroom and fits v7x's 64 MiB physical VMEM; on
            # v5e/v6e (128 MiB) a larger n1_block may be used instead.
            vmem_limit_bytes=40 * 1024 * 1024),
    )(scalars, obj_boxes_t, part_boxes.astype(f32), obj_feats_in, part_feats_in,
      w_obj_top, w_obj_rel, b_obj, w_part_top, w_part_rel, b_part)

    # Wrapper-side slicing of the lane-dense slabs (free layout plumbing).
    # NOTE: column ho/hp of each slab carries attention-projection scratch, not
    # zeros; downstream code must never treat the padding columns as zero.
    obj_out = obj_out[:, :N1, :].reshape(B * N1, c_obj)
    part_out = part_out.reshape(B * N2, c_part)
    return (obj_out[:, :n_obj],
            obj_out[:, n_obj:ho],
            part_out[:, :n_part],
            part_out[:, n_part:hp])


def _reference(obj_boxes, part_boxes, obj_feats, part_feats, params, fusion_thresh):
    """Pure-JAX mirror of the PyTorch get_related_box_features / fusion / heads."""
    hpcs = jax.lax.Precision.HIGHEST
    B = obj_boxes.shape[0]
    fused_obj_list, fused_part_list = [], []
    for i in range(B):
        ob, pb = obj_boxes[i], part_boxes[i]
        of, pf = obj_feats[i], part_feats[i]
        part_areas = (pb[:, 3] - pb[:, 1]) * (pb[:, 2] - pb[:, 0])
        tl = jnp.maximum(ob[None, :, :2], pb[:, None, :2])
        br = jnp.minimum(ob[None, :, 2:], pb[:, None, 2:])
        sides = jnp.maximum(br - tl, 0.0)
        overlap = sides[..., 0] * sides[..., 1]
        frac = overlap / part_areas[:, None]
        mask = frac >= fusion_thresh
        attn = (jnp.dot(pf, params["w_attn_part"], precision=hpcs)
                + jnp.dot(of, params["w_attn_obj"], precision=hpcs).T
                + params["b_attn"][0, 0])
        scores = jnp.where(mask, attn, 0.0)
        rs = scores.sum(axis=1, keepdims=True)
        rs = jnp.where(rs > 0, rs, 1.0)
        related_obj = jnp.dot(scores, of, precision=hpcs) / rs
        cs = scores.T.sum(axis=1, keepdims=True)
        cs = jnp.where(cs > 0, cs, 1.0)
        related_part = jnp.dot(scores.T, pf, precision=hpcs) / cs
        fused_obj_list.append(jnp.concatenate([of, related_part], axis=1))
        fused_part_list.append(jnp.concatenate([pf, related_obj], axis=1))
    fo = jnp.concatenate(fused_obj_list, axis=0)
    fp = jnp.concatenate(fused_part_list, axis=0)
    return (jnp.dot(fo, params["w_cls_obj"], precision=hpcs) + params["b_cls_obj"],
            jnp.dot(fo, params["w_box_obj"], precision=hpcs) + params["b_box_obj"],
            jnp.dot(fp, params["w_cls_part"], precision=hpcs) + params["b_cls_part"],
            jnp.dot(fp, params["w_box_part"], precision=hpcs) + params["b_box_part"])


if __name__ == "__main__":
    # Small synthetic shapes consistent with the forward pass:
    #   batch = 2 images, 200 object proposals (padded to 256 and split into
    #   two 128-wide column blocks to exercise the blocked-accumulation path),
    #   96 part proposals, per-detector ROI feature width 128 -> fused 256,
    #   4 object classes, 8 part classes.
    B, N1, N2 = 2, 200, 96
    F1, F2 = 128, 128
    FT = F1 + F2
    n_obj_classes, n_part_classes = 4, 8
    fusion_thresh = 0.9

    key = jax.random.PRNGKey(0)
    ks = jax.random.split(key, 10)

    def make_boxes(k, n):
        k1, k2 = jax.random.split(k)
        xy1 = jax.random.uniform(k1, (B, n, 2), minval=0.0, maxval=60.0)
        wh = jax.random.uniform(k2, (B, n, 2), minval=10.0, maxval=60.0)
        return jnp.concatenate([xy1, xy1 + wh], axis=-1).astype(jnp.float32)

    obj_boxes = make_boxes(ks[0], N1)
    part_boxes = make_boxes(ks[1], N2)
    # Force the first 48 part boxes per image to lie strictly inside the first
    # 48 object boxes so the fusion mask actually fires.
    nf = 48
    owh = obj_boxes[:, :nf, 2:] - obj_boxes[:, :nf, :2]
    inner = jnp.concatenate([obj_boxes[:, :nf, :2] + 0.1 * owh,
                             obj_boxes[:, :nf, :2] + 0.6 * owh], axis=-1)
    part_boxes = part_boxes.at[:, :nf, :].set(inner)

    obj_feats = jax.random.normal(ks[2], (B, N1, F1), dtype=jnp.float32)
    part_feats = jax.random.normal(ks[3], (B, N2, F2), dtype=jnp.float32)

    # Deterministic parameter init (attention layer + both FastRCNNPredictor
    # heads).  The attention bias is set positive so the signed-sum score
    # normalizers are well conditioned: the torch formulation divides by the
    # raw sum of attention scores, which is ill-conditioned near zero in ANY
    # precision and would make an element-wise comparison meaningless there.
    w_attn = 0.03 * jax.random.normal(ks[4], (FT, 1), dtype=jnp.float32)
    params = {
        "w_attn_obj": w_attn[:F1],
        "w_attn_part": w_attn[F1:],
        "b_attn": jnp.full((1, 1), 3.0, dtype=jnp.float32),
        "w_cls_obj": 0.05 * jax.random.normal(ks[5], (FT, n_obj_classes), dtype=jnp.float32),
        "b_cls_obj": jnp.zeros((1, n_obj_classes), dtype=jnp.float32),
        "w_box_obj": 0.05 * jax.random.normal(ks[6], (FT, 4 * n_obj_classes), dtype=jnp.float32),
        "b_box_obj": jnp.zeros((1, 4 * n_obj_classes), dtype=jnp.float32),
        "w_cls_part": 0.05 * jax.random.normal(ks[7], (FT, n_part_classes), dtype=jnp.float32),
        "b_cls_part": jnp.zeros((1, n_part_classes), dtype=jnp.float32),
        "w_box_part": 0.05 * jax.random.normal(ks[8], (FT, 4 * n_part_classes), dtype=jnp.float32),
        "b_box_part": jnp.zeros((1, 4 * n_part_classes), dtype=jnp.float32),
    }

    outs = joint_fusion_predict(obj_boxes, part_boxes, obj_feats, part_feats,
                                params, fusion_thresh=fusion_thresh,
                                n1_block=128)   # 200 -> pad 256 -> 2 column blocks
    outs = jax.block_until_ready(outs)

    refs = _reference(obj_boxes, part_boxes, obj_feats, part_feats, params,
                      fusion_thresh)
    # bf16 MXU operands with f32 accumulation + exact normalizer reciprocals:
    # ~0.5% relative error end-to-end on well-conditioned inputs.
    for got, want in zip(outs, refs):
        np.testing.assert_allclose(np.asarray(got), np.asarray(want),
                                   rtol=2e-2, atol=1.5e-2)

    print("KERNEL_OK")
</pallas_src>

<mosaic_0001>
module attributes {stable_mosaic.version = 11 : i64} {
  func.func @_fusion_head_kernel(%arg0: i32, %arg1: i32, %arg2: memref<2xf32, #tpu.memory_space<smem>>, %arg3: memref<1x4x128xf32, #tpu.memory_space<vmem>>, %arg4: memref<1x96x4xf32, #tpu.memory_space<vmem>>, %arg5: memref<1x128x128xbf16, #tpu.memory_space<vmem>>, %arg6: memref<1x96x128xbf16, #tpu.memory_space<vmem>>, %arg7: memref<128x128xbf16, #tpu.memory_space<vmem>>, %arg8: memref<128x128xbf16, #tpu.memory_space<vmem>>, %arg9: memref<1x128xf32, #tpu.memory_space<vmem>>, %arg10: memref<128x128xbf16, #tpu.memory_space<vmem>>, %arg11: memref<128x128xbf16, #tpu.memory_space<vmem>>, %arg12: memref<1x128xf32, #tpu.memory_space<vmem>>, %arg13: memref<1x128x128xf32, #tpu.memory_space<vmem>>, %arg14: memref<1x96x128xf32, #tpu.memory_space<vmem>>, %arg15: memref<96x1xf32, #tpu.memory_space<vmem>>, %arg16: memref<96x1xf32, #tpu.memory_space<vmem>>, %arg17: memref<96x128xf32, #tpu.memory_space<vmem>>) attributes {dimension_semantics = [#tpu.dimension_semantics<parallel>, #tpu.dimension_semantics<arbitrary>], iteration_bounds = array<i64: 2, 2>, scalar_prefetch = 0 : i64, scratch_operands = 3 : i64, tpu.core_type = #tpu.core_type<tc>, window_params = [{transform_indices = @transform_0, window_bounds = array<i64: 2>}, {transform_indices = @transform_1, window_bounds = array<i64: 1, 4, 128>}, {transform_indices = @transform_2, window_bounds = array<i64: 1, 96, 4>}, {transform_indices = @transform_3, window_bounds = array<i64: 1, 128, 128>}, {transform_indices = @transform_4, window_bounds = array<i64: 1, 96, 128>}, {pipeline_mode = #tpu.pipeline_mode<synchronous>, transform_indices = @transform_5, window_bounds = array<i64: 128, 128>}, {pipeline_mode = #tpu.pipeline_mode<synchronous>, transform_indices = @transform_6, window_bounds = array<i64: 128, 128>}, {pipeline_mode = #tpu.pipeline_mode<synchronous>, transform_indices = @transform_7, window_bounds = array<i64: 1, 128>}, {pipeline_mode = #tpu.pipeline_mode<synchronous>, transform_indices = @transform_8, window_bounds = array<i64: 128, 128>}, {pipeline_mode = #tpu.pipeline_mode<synchronous>, transform_indices = @transform_9, window_bounds = array<i64: 128, 128>}, {pipeline_mode = #tpu.pipeline_mode<synchronous>, transform_indices = @transform_10, window_bounds = array<i64: 1, 128>}, {transform_indices = @transform_11, window_bounds = array<i64: 1, 128, 128>}, {transform_indices = @transform_12, window_bounds = array<i64: 1, 96, 128>}]} {
    %c0 = arith.constant 0 : index
    %0 = memref.load %arg2[%c0] : memref<2xf32, #tpu.memory_space<smem>>
    %c1 = arith.constant 1 : index
    %1 = memref.load %arg2[%c1] : memref<2xf32, #tpu.memory_space<smem>>
    %c0_0 = arith.constant 0 : index
    %c0_1 = arith.constant 0 : index
    %c0_2 = arith.constant 0 : index
    %2 = vector.load %arg3[%c0_0, %c0_1, %c0_2] : memref<1x4x128xf32, #tpu.memory_space<vmem>>, vector<1x4x128xf32>
    %3 = vector.shape_cast %2 : vector<1x4x128xf32> to vector<4x128xf32>
    %c0_3 = arith.constant 0 : index
    %c0_4 = arith.constant 0 : index
    %c0_5 = arith.constant 0 : index
    %4 = vector.load %arg4[%c0_3, %c0_4, %c0_5] : memref<1x96x4xf32, #tpu.memory_space<vmem>>, vector<1x96x4xf32>
    %5 = vector.shape_cast %4 : vector<1x96x4xf32> to vector<96x4xf32>
    %c0_6 = arith.constant 0 : index
    %c0_7 = arith.constant 0 : index
    %c0_8 = arith.constant 0 : index
    %6 = vector.load %arg5[%c0_6, %c0_7, %c0_8] : memref<1x128x128xbf16, #tpu.memory_space<vmem>>, vector<1x128x128xbf16>
    %7 = vector.shape_cast %6 : vector<1x128x128xbf16> to vector<128x128xbf16>
    %c0_9 = arith.constant 0 : index
    %c0_10 = arith.constant 0 : index
    %c0_11 = arith.constant 0 : index
    %8 = vector.load %arg6[%c0_9, %c0_10, %c0_11] : memref<1x96x128xbf16, #tpu.memory_space<vmem>>, vector<1x96x128xbf16>
    %9 = vector.shape_cast %8 : vector<1x96x128xbf16> to vector<96x128xbf16>
    %c0_i32 = arith.constant 0 : i32
    %10 = arith.cmpi eq, %arg1, %c0_i32 : i32
    %11 = arith.extui %10 : i1 to i32
    %c0_i32_12 = arith.constant 0 : i32
    %12 = arith.cmpi ne, %11, %c0_i32_12 : i32
    scf.if %12 {
      %c0_45 = arith.constant 0 : index
      %c0_46 = arith.constant 0 : index
      %96 = vector.load %arg10[%c0_45, %c0_46] : memref<128x128xbf16, #tpu.memory_space<vmem>>, vector<128x128xbf16>
      %cst_47 = arith.constant dense<0.000000e+00> : vector<96x128xf32>
      %97 = tpu.matmul %9, %96, %cst_47 {dimension_numbers = #tpu.dot_dimension_numbers<[1], [0], [0], [1], [0, 0, 1, 1], [], []>} : vector<96x128xbf16>, vector<128x128xbf16>, vector<96x128xf32> -> vector<96x128xf32>
      %c0_48 = arith.constant 0 : index
      %c0_49 = arith.constant 0 : index
      %c0_50 = arith.constant 0 : index
      %98 = vector.load %arg14[%c0_48, %c0_49, %c0_50] : memref<1x96x128xf32, #tpu.memory_space<vmem>>, vector<1x96x128xf32>
      %99 = vector.shape_cast %98 : vector<1x96x128xf32> to vector<96x128xf32>
      %100 = vector.shape_cast %97 : vector<96x128xf32> to vector<1x96x128xf32>
      tpu.vector_store %arg14[%c0_48, %c0_49, %c0_50], %100 {strides = array<i32>} : memref<1x96x128xf32, #tpu.memory_space<vmem>>, vector<1x96x128xf32>,
      %101 = vector.extract_strided_slice %97 {offsets = [0, 40], sizes = [96, 1], strides = [1, 1]} : vector<96x128xf32> to vector<96x1xf32>
      %c0_51 = arith.constant 0 : index
      %c0_52 = arith.constant 0 : index
      %102 = vector.load %arg15[%c0_51, %c0_52] : memref<96x1xf32, #tpu.memory_space<vmem>>, vector<96x1xf32>
      tpu.vector_store %arg15[%c0_51, %c0_52], %101 {strides = array<i32>} : memref<96x1xf32, #tpu.memory_space<vmem>>, vector<96x1xf32>,
      %cst_53 = arith.constant 0.000000e+00 : f32
      %103 = vector.broadcast %cst_53 : f32 to vector<96x1xf32>
      %c0_54 = arith.constant 0 : index
      %c0_55 = arith.constant 0 : index
      %104 = vector.load %arg16[%c0_54, %c0_55] : memref<96x1xf32, #tpu.memory_space<vmem>>, vector<96x1xf32>
      tpu.vector_store %arg16[%c0_54, %c0_55], %103 {strides = array<i32>} : memref<96x1xf32, #tpu.memory_space<vmem>>, vector<96x1xf32>,
      %cst_56 = arith.constant 0.000000e+00 : f32
      %105 = vector.broadcast %cst_56 : f32 to vector<96x128xf32>
      %c0_57 = arith.constant 0 : index
      %c0_58 = arith.constant 0 : index
      %106 = vector.load %arg17[%c0_57, %c0_58] : memref<96x128xf32, #tpu.memory_space<vmem>>, vector<96x128xf32>
      tpu.vector_store %arg17[%c0_57, %c0_58], %105 {strides = array<i32>} : memref<96x128xf32, #tpu.memory_space<vmem>>, vector<96x128xf32>,
    } else {
    }
    %13 = vector.extract_strided_slice %3 {offsets = [0, 0], sizes = [1, 128], strides = [1, 1]} : vector<4x128xf32> to vector<1x128xf32>
    %14 = vector.extract_strided_slice %3 {offsets = [1, 0], sizes = [1, 128], strides = [1, 1]} : vector<4x128xf32> to vector<1x128xf32>
    %15 = vector.extract_strided_slice %3 {offsets = [2, 0], sizes = [1, 128], strides = [1, 1]} : vector<4x128xf32> to vector<1x128xf32>
    %16 = vector.extract_strided_slice %3 {offsets = [3, 0], sizes = [1, 128], strides = [1, 1]} : vector<4x128xf32> to vector<1x128xf32>
    %17 = vector.extract_strided_slice %5 {offsets = [0, 0], sizes = [96, 1], strides = [1, 1]} : vector<96x4xf32> to vector<96x1xf32>
    %18 = vector.extract_strided_slice %5 {offsets = [0, 1], sizes = [96, 1], strides = [1, 1]} : vector<96x4xf32> to vector<96x1xf32>
    %19 = vector.extract_strided_slice %5 {offsets = [0, 2], sizes = [96, 1], strides = [1, 1]} : vector<96x4xf32> to vector<96x1xf32>
    %20 = vector.extract_strided_slice %5 {offsets = [0, 3], sizes = [96, 1], strides = [1, 1]} : vector<96x4xf32> to vector<96x1xf32>
    %21 = arith.subf %20, %18 : vector<96x1xf32>
    %22 = arith.subf %19, %17 : vector<96x1xf32>
    %23 = arith.mulf %21, %22 : vector<96x1xf32>
    %24 = vector.broadcast %15 : vector<1x128xf32> to vector<96x128xf32>
    %25 = vector.broadcast %19 : vector<96x1xf32> to vector<96x128xf32>
    %26 = arith.minimumf %24, %25 : vector<96x128xf32>
    %27 = vector.broadcast %13 : vector<1x128xf32> to vector<96x128xf32>
    %28 = vector.broadcast %17 : vector<96x1xf32> to vector<96x128xf32>
    %29 = arith.maximumf %27, %28 : vector<96x128xf32>
    %30 = arith.subf %26, %29 : vector<96x128xf32>
    %cst = arith.constant 0.000000e+00 : f32
    %31 = vector.broadcast %cst : f32 to vector<96x128xf32>
    %32 = arith.maximumf %30, %31 : vector<96x128xf32>
    %33 = vector.broadcast %16 : vector<1x128xf32> to vector<96x128xf32>
    %34 = vector.broadcast %20 : vector<96x1xf32> to vector<96x128xf32>
    %35 = arith.minimumf %33, %34 : vector<96x128xf32>
    %36 = vector.broadcast %14 : vector<1x128xf32> to vector<96x128xf32>
    %37 = vector.broadcast %18 : vector<96x1xf32> to vector<96x128xf32>
    %38 = arith.maximumf %36, %37 : vector<96x128xf32>
    %39 = arith.subf %35, %38 : vector<96x128xf32>
    %cst_13 = arith.constant 0.000000e+00 : f32
    %40 = vector.broadcast %cst_13 : f32 to vector<96x128xf32>
    %41 = arith.maximumf %39, %40 : vector<96x128xf32>
    %42 = arith.mulf %32, %41 : vector<96x128xf32>
    %43 = vector.broadcast %0 : f32 to vector<96x1xf32>
    %44 = arith.mulf %43, %23 : vector<96x1xf32>
    %45 = vector.broadcast %44 : vector<96x1xf32> to vector<96x128xf32>
    %46 = arith.cmpf oge, %42, %45 : vector<96x128xf32>
    %cst_14 = arith.constant 0.000000e+00 : f32
    %47 = vector.broadcast %cst_14 : f32 to vector<96x1xf32>
    %48 = arith.cmpf ogt, %23, %47 : vector<96x1xf32>
    %49 = vector.broadcast %48 : vector<96x1xi1> to vector<96x128xi1>
    %50 = arith.andi %46, %49 : vector<96x128xi1>
    %c0_15 = arith.constant 0 : index
    %c0_16 = arith.constant 0 : index
    %51 = vector.load %arg7[%c0_15, %c0_16] : memref<128x128xbf16, #tpu.memory_space<vmem>>, vector<128x128xbf16>
    %cst_17 = arith.constant dense<0.000000e+00> : vector<128x128xf32>
    %52 = tpu.matmul %7, %51, %cst_17 {dimension_numbers = #tpu.dot_dimension_numbers<[1], [0], [0], [1], [0, 0, 1, 1], [], []>} : vector<128x128xbf16>, vector<128x128xbf16>, vector<128x128xf32> -> vector<128x128xf32>
    %53 = vector.extract_strided_slice %52 {offsets = [0, 20], sizes = [128, 1], strides = [1, 1]} : vector<128x128xf32> to vector<128x1xf32>
    %c0_18 = arith.constant 0 : index
    %c0_19 = arith.constant 0 : index
    %54 = vector.load %arg15[%c0_18, %c0_19] : memref<96x1xf32, #tpu.memory_space<vmem>>, vector<96x1xf32>
    %55 = tpu.transpose %53, [1, 0] : vector<128x1xf32> -> vector<1x128xf32>
    %56 = vector.broadcast %54 : vector<96x1xf32> to vector<96x128xf32>
    %57 = vector.broadcast %55 : vector<1x128xf32> to vector<96x128xf32>
    %58 = arith.addf %56, %57 : vector<96x128xf32>
    %59 = vector.broadcast %1 : f32 to vector<96x128xf32>
    %60 = arith.addf %58, %59 : vector<96x128xf32>
    %cst_20 = arith.constant 0.000000e+00 : f32
    %61 = vector.broadcast %cst_20 : f32 to vector<96x128xf32>
    %62 = arith.select %50, %60, %61 : vector<96x128xi1>, vector<96x128xf32>
    %63 = arith.truncf %62 : vector<96x128xf32> to vector<96x128xbf16>
    %c0_21 = arith.constant 0 : index
    %c0_22 = arith.constant 0 : index
    %64 = vector.load %arg16[%c0_21, %c0_22] : memref<96x1xf32, #tpu.memory_space<vmem>>, vector<96x1xf32>
    %cst_23 = arith.constant dense<0.000000e+00> : vector<96xf32>
    %65 = vector.multi_reduction <add>, %62, %cst_23 [1] : vector<96x128xf32> to vector<96xf32>
    %66 = vector.shape_cast %65 : vector<96xf32> to vector<96x1xf32>
    %67 = arith.addf %64, %66 : vector<96x1xf32>
    %c0_24 = arith.constant 0 : index
    %c0_25 = arith.constant 0 : index
    %68 = vector.load %arg16[%c0_24, %c0_25] : memref<96x1xf32, #tpu.memory_space<vmem>>, vector<96x1xf32>
    tpu.vector_store %arg16[%c0_24, %c0_25], %67 {strides = array<i32>} : memref<96x1xf32, #tpu.memory_space<vmem>>, vector<96x1xf32>,
    %c0_26 = arith.constant 0 : index
    %c0_27 = arith.constant 0 : index
    %69 = vector.load %arg17[%c0_26, %c0_27] : memref<96x128xf32, #tpu.memory_space<vmem>>, vector<96x128xf32>
    %cst_28 = arith.constant dense<0.000000e+00> : vector<96x128xf32>
    %70 = tpu.matmul %63, %7, %cst_28 {dimension_numbers = #tpu.dot_dimension_numbers<[1], [0], [0], [1], [0, 0, 1, 1], [], []>} : vector<96x128xbf16>, vector<128x128xbf16>, vector<96x128xf32> -> vector<96x128xf32>
    %71 = arith.addf %69, %70 : vector<96x128xf32>
    %c0_29 = arith.constant 0 : index
    %c0_30 = arith.constant 0 : index
    %72 = vector.load %arg17[%c0_29, %c0_30] : memref<96x128xf32, #tpu.memory_space<vmem>>, vector<96x128xf32>
    tpu.vector_store %arg17[%c0_29, %c0_30], %71 {strides = array<i32>} : memref<96x128xf32, #tpu.memory_space<vmem>>, vector<96x128xf32>,
    %cst_31 = arith.constant 1.000000e+00 : f32
    %73 = vector.broadcast %cst_31 : f32 to vector<96x1xf32>
    %cst_32 = arith.constant dense<0.000000e+00> : vector<128x1xf32>
    %74 = tpu.matmul %62, %73, %cst_32 {dimension_numbers = #tpu.dot_dimension_numbers<[0], [0], [1], [1], [0, 1, 1, 1], [], []>} : vector<96x128xf32>, vector<96x1xf32>, vector<128x1xf32> -> vector<128x1xf32>
    %cst_33 = arith.constant 0.000000e+00 : f32
    %75 = vector.broadcast %cst_33 : f32 to vector<128x1xf32>
    %76 = arith.cmpf ogt, %74, %75 : vector<128x1xf32>
    %cst_34 = arith.constant 1.000000e+00 : f32
    %77 = vector.broadcast %cst_34 : f32 to vector<128x1xf32>
    %78 = arith.select %76, %74, %77 : vector<128x1xi1>, vector<128x1xf32>
    %79 = tpu.reciprocal %78 : vector<128x1xf32> -> vector<128x1xf32>
    %cst_35 = arith.constant dense<0.000000e+00> : vector<128x128xf32>
    %80 = tpu.matmul %63, %9, %cst_35 {dimension_numbers = #tpu.dot_dimension_numbers<[0], [0], [1], [1], [0, 1, 1, 1], [], []>} : vector<96x128xbf16>, vector<96x128xbf16>, vector<128x128xf32> -> vector<128x128xf32>
    %81 = vector.broadcast %79 : vector<128x1xf32> to vector<128x128xf32>
    %82 = arith.mulf %80, %81 : vector<128x128xf32>
    %83 = arith.truncf %82 : vector<128x128xf32> to vector<128x128xbf16>
    %c0_36 = arith.constant 0 : index
    %c0_37 = arith.constant 0 : index
    %84 = vector.load %arg8[%c0_36, %c0_37] : memref<128x128xbf16, #tpu.memory_space<vmem>>, vector<128x128xbf16>
    %cst_38 = arith.constant dense<0.000000e+00> : vector<128x128xf32>
    %85 = tpu.matmul %83, %84, %cst_38 {dimension_numbers = #tpu.dot_dimension_numbers<[1], [0], [0], [1], [0, 0, 1, 1], [], []>} : vector<128x128xbf16>, vector<128x128xbf16>, vector<128x128xf32> -> vector<128x128xf32>
    %86 = arith.addf %52, %85 : vector<128x128xf32>
    %c0_39 = arith.constant 0 : index
    %c0_40 = arith.constant 0 : index
    %87 = vector.load %arg9[%c0_39, %c0_40] : memref<1x128xf32, #tpu.memory_space<vmem>>, vector<1x128xf32>
    %88 = vector.broadcast %87 : vector<1x128xf32> to vector<128x128xf32>
    %89 = arith.addf %86, %88 : vector<128x128xf32>
    %c0_41 = arith.constant 0 : index
    %c0_42 = arith.constant 0 : index
    %c0_43 = arith.constant 0 : index
    %90 = vector.load %arg13[%c0_41, %c0_42, %c0_43] : memref<1x128x128xf32, #tpu.memory_space<vmem>>, vector<1x128x128xf32>
    %91 = vector.shape_cast %90 : vector<1x128x128xf32> to vector<128x128xf32>
    %92 = vector.shape_cast %89 : vector<128x128xf32> to vector<1x128x128xf32>
    tpu.vector_store %arg13[%c0_41, %c0_42, %c0_43], %92 {strides = array<i32>} : memref<1x128x128xf32, #tpu.memory_space<vmem>>, vector<1x128x128xf32>,
    %c1_i32 = arith.constant 1 : i32
    %93 = arith.cmpi eq, %arg1, %c1_i32 : i32
    %94 = arith.extui %93 : i1 to i32
    %c0_i32_44 = arith.constant 0 : i32
    %95 = arith.cmpi ne, %94, %c0_i32_44 : i32
    scf.if %95 {
      %c0_45 = arith.constant 0 : index
      %c0_46 = arith.constant 0 : index
      %96 = vector.load %arg16[%c0_45, %c0_46] : memref<96x1xf32, #tpu.memory_space<vmem>>, vector<96x1xf32>
      %cst_47 = arith.constant 0.000000e+00 : f32
      %97 = vector.broadcast %cst_47 : f32 to vector<96x1xf32>
      %98 = arith.cmpf ogt, %96, %97 : vector<96x1xf32>
      %cst_48 = arith.constant 1.000000e+00 : f32
      %99 = vector.broadcast %cst_48 : f32 to vector<96x1xf32>
      %100 = arith.select %98, %96, %99 : vector<96x1xi1>, vector<96x1xf32>
      %101 = tpu.reciprocal %100 : vector<96x1xf32> -> vector<96x1xf32>
      %c0_49 = arith.constant 0 : index
      %c0_50 = arith.constant 0 : index
      %102 = vector.load %arg17[%c0_49, %c0_50] : memref<96x128xf32, #tpu.memory_space<vmem>>, vector<96x128xf32>
      %103 = vector.broadcast %101 : vector<96x1xf32> to vector<96x128xf32>
      %104 = arith.mulf %102, %103 : vector<96x128xf32>
      %105 = arith.truncf %104 : vector<96x128xf32> to vector<96x128xbf16>
      %c0_51 = arith.constant 0 : index
      %c0_52 = arith.constant 0 : index
      %c0_53 = arith.constant 0 : index
      %106 = vector.load %arg14[%c0_51, %c0_52, %c0_53] : memref<1x96x128xf32, #tpu.memory_space<vmem>>, vector<1x96x128xf32>
      %107 = vector.shape_cast %106 : vector<1x96x128xf32> to vector<96x128xf32>
      %c0_54 = arith.constant 0 : index
      %c0_55 = arith.constant 0 : index
      %108 = vector.load %arg11[%c0_54, %c0_55] : memref<128x128xbf16, #tpu.memory_space<vmem>>, vector<128x128xbf16>
      %cst_56 = arith.constant dense<0.000000e+00> : vector<96x128xf32>
      %109 = tpu.matmul %105, %108, %cst_56 {dimension_numbers = #tpu.dot_dimension_numbers<[1], [0], [0], [1], [0, 0, 1, 1], [], []>} : vector<96x128xbf16>, vector<128x128xbf16>, vector<96x128xf32> -> vector<96x128xf32>
      %110 = arith.addf %107, %109 : vector<96x128xf32>
      %c0_57 = arith.constant 0 : index
      %c0_58 = arith.constant 0 : index
      %111 = vector.load %arg12[%c0_57, %c0_58] : memref<1x128xf32, #tpu.memory_space<vmem>>, vector<1x128xf32>
      %112 = vector.broadcast %111 : vector<1x128xf32> to vector<96x128xf32>
      %113 = arith.addf %110, %112 : vector<96x128xf32>
      %c0_59 = arith.constant 0 : index
      %c0_60 = arith.constant 0 : index
      %c0_61 = arith.constant 0 : index
      %114 = vector.load %arg14[%c0_59, %c0_60, %c0_61] : memref<1x96x128xf32, #tpu.memory_space<vmem>>, vector<1x96x128xf32>
      %115 = vector.shape_cast %114 : vector<1x96x128xf32> to vector<96x128xf32>
      %116 = vector.shape_cast %113 : vector<96x128xf32> to vector<1x96x128xf32>
      tpu.vector_store %arg14[%c0_59, %c0_60, %c0_61], %116 {strides = array<i32>} : memref<1x96x128xf32, #tpu.memory_space<vmem>>, vector<1x96x128xf32>,
    } else {
    }
    return
  }
  func.func @transform_0(%arg0: i32, %arg1: i32) -> i32 {
    %c0_i32 = arith.constant 0 : i32
    %c0_i32_0 = arith.constant 0 : i32
    return %c0_i32 : i32
  }
  func.func @transform_1(%arg0: i32, %arg1: i32) -> (i32, i32, i32) {
    %c0_i32 = arith.constant 0 : i32
    %c0_i32_0 = arith.constant 0 : i32
    return %arg0, %c0_i32, %arg1 : i32, i32, i32
  }
  func.func @transform_2(%arg0: i32, %arg1: i32) -> (i32, i32, i32) {
    %c0_i32 = arith.constant 0 : i32
    %c0_i32_0 = arith.constant 0 : i32
    %c0_i32_1 = arith.constant 0 : i32
    return %arg0, %c0_i32, %c0_i32_0 : i32, i32, i32
  }
  func.func @transform_3(%arg0: i32, %arg1: i32) -> (i32, i32, i32) {
    %c0_i32 = arith.constant 0 : i32
    %c0_i32_0 = arith.constant 0 : i32
    return %arg0, %arg1, %c0_i32 : i32, i32, i32
  }
  func.func @transform_4(%arg0: i32, %arg1: i32) -> (i32, i32, i32) {
    %c0_i32 = arith.constant 0 : i32
    %c0_i32_0 = arith.constant 0 : i32
    %c0_i32_1 = arith.constant 0 : i32
    return %arg0, %c0_i32, %c0_i32_0 : i32, i32, i32
  }
  func.func @transform_5(%arg0: i32, %arg1: i32) -> (i32, i32) {
    %c0_i32 = arith.constant 0 : i32
    %c0_i32_0 = arith.constant 0 : i32
    %c0_i32_1 = arith.constant 0 : i32
    return %c0_i32, %c0_i32_0 : i32, i32
  }
  func.func @transform_6(%arg0: i32, %arg1: i32) -> (i32, i32) {
    %c0_i32 = arith.constant 0 : i32
    %c0_i32_0 = arith.constant 0 : i32
    %c0_i32_1 = arith.constant 0 : i32
    return %c0_i32, %c0_i32_0 : i32, i32
  }
  func.func @transform_7(%arg0: i32, %arg1: i32) -> (i32, i32) {
    %c0_i32 = arith.constant 0 : i32
    %c0_i32_0 = arith.constant 0 : i32
    %c0_i32_1 = arith.constant 0 : i32
    return %c0_i32, %c0_i32_0 : i32, i32
  }
  func.func @transform_8(%arg0: i32, %arg1: i32) -> (i32, i32) {
    %c0_i32 = arith.constant 0 : i32
    %c0_i32_0 = arith.constant 0 : i32
    %c0_i32_1 = arith.constant 0 : i32
    return %c0_i32, %c0_i32_0 : i32, i32
  }
  func.func @transform_9(%arg0: i32, %arg1: i32) -> (i32, i32) {
    %c0_i32 = arith.constant 0 : i32
    %c0_i32_0 = arith.constant 0 : i32
    %c0_i32_1 = arith.constant 0 : i32
    return %c0_i32, %c0_i32_0 : i32, i32
  }
  func.func @transform_10(%arg0: i32, %arg1: i32) -> (i32, i32) {
    %c0_i32 = arith.constant 0 : i32
    %c0_i32_0 = arith.constant 0 : i32
    %c0_i32_1 = arith.constant 0 : i32
    return %c0_i32, %c0_i32_0 : i32, i32
  }
  func.func @transform_11(%arg0: i32, %arg1: i32) -> (i32, i32, i32) {
    %c0_i32 = arith.constant 0 : i32
    %c0_i32_0 = arith.constant 0 : i32
    return %arg0, %arg1, %c0_i32 : i32, i32, i32
  }
  func.func @transform_12(%arg0: i32, %arg1: i32) -> (i32, i32, i32) {
    %c0_i32 = arith.constant 0 : i32
    %c0_i32_0 = arith.constant 0 : i32
    %c0_i32_1 = arith.constant 0 : i32
    return %arg0, %c0_i32, %c0_i32_0 : i32, i32, i32
  }
}

</mosaic_0001>

<bundles_post_ra>
// kernel: tpu_custom_call.1
= control target key start
LH: loop header
LB: loop body
LE: loop exit
PB: predicated region body
PF: predicated region fallthrough
CT: control target
= control target key end

     0   :  { %s6127_s0 = inlined_call_operand.vmem [shape: f32[2], index: 0, kind: input, shape index: {}]   ;;  %s6128_s1 = inlined_call_operand.vmem [shape: f32[2,4,256], index: 1, kind: input, shape index: {}]   ;;  %s6129_s2 = inlined_call_operand.vmem [shape: f32[2,96,4], index: 2, kind: input, shape index: {}]   ;;  %s6130_s3 = inlined_call_operand.hbm [shape: bf16[2,256,128], index: 3, kind: input, shape index: {}]   ;;  %s6131_s4 = inlined_call_operand.vmem [shape: bf16[2,96,128], index: 4, kind: input, shape index: {}]   ;;  %s6132_s5 = inlined_call_operand.vmem [shape: bf16[128,128], index: 5, kind: input, shape index: {}]   ;;  %s6133_s6 = inlined_call_operand.hbm [shape: bf16[128,128], index: 6, kind: input, shape index: {}]   ;;  %s6134_s7 = inlined_call_operand.vmem [shape: f32[1,128], index: 7, kind: input, shape index: {}]   ;;  %s6135_s8 = inlined_call_operand.hbm [shape: bf16[128,128], index: 8, kind: input, shape index: {}]   ;;  %s6136_s9 = inlined_call_operand.hbm [shape: bf16[128,128], index: 9, kind: input, shape index: {}]   ;;  %s6137_s10 = inlined_call_operand.vmem [shape: f32[1,128], index: 10, kind: input, shape index: {}]   ;;  %s6138_s11 = inlined_call_operand.hbm [shape: f32[2,256,128], index: 11, kind: output, shape index: {0}]   ;;  %s6139_s12 = inlined_call_operand.hbm [shape: f32[2,96,128], index: 12, kind: output, shape index: {1}]  }
   0x1   :  { %6199 = sst [smem:[#allocation75_spill]] %s6127_s0 }
   0x2   :  { %6200 = sst [smem:[#allocation76_spill]] %s6128_s1 }
   0x3   :  { %6201 = sst [smem:[#allocation77_spill]] %s6129_s2 }
   0x4   :  { %6202 = sst [smem:[#allocation78_spill]] %s6131_s4 }
   0x5   :  { %6203 = sst [smem:[#allocation79_spill]] %s6132_s5 }
   0x6   :  { %6204 = sst [smem:[#allocation80_spill]] %s6133_s6 }
   0x7   :  { %6205 = sst [smem:[#allocation81_spill]] %s6134_s7 }
   0x8   :  { %6206 = sst [smem:[#allocation82_spill]] %s6135_s8 }
   0x9   :  { %6207 = sst [smem:[#allocation83_spill]] %s6136_s9 }
   0xa   :  { %6208 = sst [smem:[#allocation84_spill]] %s6137_s10 }
   0xb   :  { %6209 = sst [smem:[#allocation85_spill]] %s6138_s11 }
   0xc   :  { %6210 = sst [smem:[#allocation86_spill]] %s6139_s12 }
   0xd   :  { %18 = vsyncpa [#allocation8], 0 }
   0xe   :  { %19 = vsyncpa [#allocation6], 0 }
   0xf   :  { %21 = vsyncpa [#allocation6 + $0x1], 0 }
  0x10   :  { %22 = vsyncpa [#allocation11], 0 }
  0x11   :  { %23 = vsyncpa [#allocation14], 0 }
  0x12   :  { %24 = vsyncpa [#allocation7], 0 }
  0x13   :  { %26 = vsyncpa [#allocation7 + $0x1], 0 }
  0x14   :  { %27 = vsyncpa [#allocation17], 0 }
  0x15   :  { %29 = vsyncpa [#allocation17 + $0x1], 0  ;;  %s4664_s21 = smov 0   ;;  %s4666_s22 = smov 0  }
  0x16   :  { %s4668_s23 = smov 0   ;;  %s4670_s24 = smov 0  }
  0x17   :  { %s4672_s25 = smov 0   ;;  %s4674_s26 = smov 0  }
  0x18   :  { %s4676_s27 = smov 0   ;;  %s4678_s28 = smov 0  }
  0x19   :  { %s4680_s29 = smov 0   ;;  %s4682_s30 = smov 0  }
  0x1a   :  { %s4684_s13 = smov 0  }
  0x1b LB: > { %6211 = sst [smem:[#allocation24_spill]] %s4535_s21  ;;  %s3476_s14 = sadd.s32 4294967295, %s4575_s13   ;;  %s4575_s13 = sphi %s4684_s13, %s35_s13   ;;  %s4571_s30 = sphi %s4682_s30, %s6392_s30   ;;  %s4567_s29 = sphi %s4680_s29, %s6391_s29   ;;  %s4563_s28 = sphi %s4678_s28, %s6390_s28   ;;  %s4559_s27 = sphi %s4676_s27, %s6389_s27   ;;  %s4555_s26 = sphi %s4674_s26, %s6388_s26   ;;  %s4551_s25 = sphi %s4672_s25, %s6387_s25   ;;  %s4547_s24 = sphi %s4670_s24, %s6386_s24   ;;  %s4543_s23 = sphi %s4668_s23, %s6385_s23   ;;  %s4539_s22 = sphi %s4666_s22, %s6384_s22   ;;  %s4535_s21 = sphi %s4664_s21, %s6383_s21  }
  0x1c   : > { %6212 = sst [smem:[#allocation25_spill]] %s4539_s22  ;;  %s3477_s15 = sadd.s32 4294967294, %s4575_s13  }
  0x1d   : > { %6213 = sst [smem:[#allocation26_spill]] %s4547_s24  ;;  %p144_p0 = scmp.ne.s32.totalorder %s4551_s25, %s4547_s24 }
  0x1e   : > { %6214 = sst [smem:[#allocation27_spill]] %s4559_s27  ;;  %p4723_p1 = scmp.eq.s32.totalorder %s3476_s14, 0 }
  0x1f   : > { %6215 = sst [smem:[#allocation28_spill]] %s4563_s28  ;;  %p4727_p2 = scmp.eq.s32.totalorder %s3476_s14, 3 }
  0x20   : > { %p328_p3 = scmp.eq.s32.totalorder %s3477_s15, 3  ;;  %p4733_p4 = por %p4723_p1, %p144_p0 }
  0x21   : > { %p347_p5 = scmp.ne.s32.totalorder %s4543_s23, %s4539_s22  ;;  %p353_p7 = scmp.ne.s32.totalorder %s4539_s22, %s4535_s21 }
  0x22   : > { %s6218_s18 = scalar_select %p4733_p4, 1, 0 }
  0x23   : > { %p4739_p6 = por %p328_p3, %p144_p0  ;;  %p4747_p8 = por %p347_p5, %p4727_p2 }
  0x24   : > { %p3478_p9 = scmp.ge.s32.totalorder %s4575_s13, 1  ;;  %p4752_p10 = por %p353_p7, %p328_p3 }
  0x25   : > { %s6219_s19 = scalar_select %p4739_p6, 1, 0 }
  0x26   : > { %s6221_s20 = scalar_select %p4747_p8, 1, 0 }
  0x27   : > { %6220 = sst [smem:[#allocation29_spill]] %s6219_s19  ;;  %p361_p11 = scmp.lt.s32.totalorder %s4575_s13, 5 }
  0x28   : > { %6222 = sst [smem:[#allocation30_spill]] %s6221_s20  ;;  %s4577_s24 = smov [#allocation10]  }
  0x29   : > { %s6223_s14 = scalar_select %p4752_p10, 1, 0 }
  0x2a   : > { %p4757_p12 = pnand %p3478_p9, %p361_p11  ;;  %s387_s12 = sshll.u32 %s4577_s24, 4  ;;  %s388_s12 = int_to_ptr.vmem [resolvable:$true] %s387_s12 }
  0x2b   : > { %6224 = sst [smem:[#allocation31_spill]] %s6223_s14  ;;  %s4303_s11 = scalar_lea.vmem %s388_s12, 1024 }
  0x2c   : > { %p4019_p13 = pneg %p4757_p12  ;;  %s6227_s0 = sld [smem:[#allocation75_spill]] }
  0x2d   : > { %p4304_p5 = scmp.ne.s32.totalorder %s388_s12, %s4303_s11  ;;  %p4311_p11 = scmp.lt.s32.totalorder %s388_s12, %s388_s12 }
  0x2e   : > { %p4765_p0 = pnand %p4019_p13, %p4723_p1  ;;  %p4312_p10 = scmp.lt.s32.totalorder %s4303_s11, %s4303_s11 }
  0x30   : > { %p4294_p3 = pneg %p4765_p0  ;;  %p4313_p13 = por %p4312_p10, %p4311_p11 }
  0x32   : > { %s374_s14 = sshll.u32 %s6227_s0, 4  ;;  %p4306_p7 = pnand %p4304_p5, %p4294_p3  ;;  %s375_s14 = int_to_ptr.vmem [resolvable:$true] %s374_s14 }
  0x34   : > { %p4307_p9 = pneg %p4306_p7 }
  0x36   : > { %p4314_p6 = pnand %p4313_p13, %p4307_p9 }
  0x38   : > { %4317 = shalt.err (!%p4314_p6)
}
  0x39   : > { %s6148_s24 = smov 64   ;;  %s6152_s19 = smov 4  }
  0x3a   : > { %s6228_s6 = sld [smem:[#allocation80_spill]]  ;;  %s4318_s10 = scalar_lea.vmem %s375_s14, 16 }
  0x3b   : > { %p4319_p5 = scmp.ne.s32.totalorder %s375_s14, %s4318_s10  ;;  %p4326_p6 = scmp.lt.s32.totalorder %s375_s14, %s375_s14 }
  0x3c   : > { %p4327_p9 = scmp.lt.s32.totalorder %s4318_s10, %s4318_s10 }
  0x3d   : > { %p4321_p10 = pnand %p4319_p5, %p4294_p3 }
  0x3e   : > { %p4328_p11 = por %p4327_p9, %p4326_p6 }
  0x3f   : > { %p4322_p7 = pneg %p4321_p10 }
  0x40   : > { %4025 = dma.hbm_to_vmem [thread:$0]  (!%p4765_p0), %s6228_s6, 1024, %s388_s12, [#allocation11], %s6148_s24, %s6148_s24, %s6152_s19  }
  0x41   : > { %p4329_p13 = pnand %p4328_p11, %p4322_p7 }
  0x43   : > { %4332 = shalt.err (!%p4329_p13)
}
  0x44   : > { %s4580_s11 = smov [#allocation5]   ;;  %s4581_s7 = smov [#allocation12]  }
  0x45   : > { %4022 = dma.vmem_to_smem (!%p4765_p0), %s375_s14, 16, %s4580_s11, [#allocation8]  }
  0x46   : > { %s403_s0 = sshll.u32 %s4581_s7, 4  ;;  %s4582_s12 = smov [#allocation13]   ;;  %s404_s0 = int_to_ptr.vmem [resolvable:$true] %s403_s0 }
  0x47   : > { %s416_s20 = sshll.u32 %s4582_s12, 4  ;;  %s4344_s24 = scalar_lea.vmem %s404_s0, 1024  ;;  %s417_s20 = int_to_ptr.vmem [resolvable:$true] %s416_s20 }
  0x48   : > { %p4345_p8 = scmp.ne.s32.totalorder %s404_s0, %s4344_s24  ;;  %p4352_p6 = scmp.lt.s32.totalorder %s404_s0, %s404_s0 }
  0x49   : > { %p4353_p7 = scmp.lt.s32.totalorder %s4344_s24, %s4344_s24 }
  0x4a   : > { %p4347_p5 = pnand %p4345_p8, %p4294_p3 }
  0x4b   : > { %p4354_p9 = por %p4353_p7, %p4352_p6 }
  0x4c   : > { %p4348_p10 = pneg %p4347_p5 }
  0x4e   : > { %p4355_p11 = pnand %p4354_p9, %p4348_p10 }
  0x50   : > { %4358 = shalt.err (!%p4355_p11)
}
  0x51   : > { %s6229_s10 = smov 64   ;;  %s6230_s8 = sld [smem:[#allocation82_spill]] }
  0x52   : > { %s4370_s11 = scalar_lea.vmem %s417_s20, 1024  ;;  %p4378_p4 = scmp.lt.s32.totalorder %s417_s20, %s417_s20 }
  0x53   : > { %p4371_p13 = scmp.ne.s32.totalorder %s417_s20, %s4370_s11  ;;  %p4379_p6 = scmp.lt.s32.totalorder %s4370_s11, %s4370_s11 }
  0x55   : > { %p4373_p8 = pnand %p4371_p13, %p4294_p3  ;;  %p4380_p10 = por %p4379_p6, %p4378_p4 }
  0x57   : > { %4028 = dma.hbm_to_vmem [thread:$0]  (!%p4765_p0), %s6230_s8, 1024, %s404_s0, [#allocation11], %s6229_s10, %s6229_s10, %s6152_s19  }
  0x58   : > { %p4374_p5 = pneg %p4373_p8 }
  0x5a   : > { %p4381_p7 = pnand %p4380_p10, %p4374_p5 }
  0x5c   : > { %4384 = shalt.err (!%p4381_p7)
}
  0x5d   : > { %s6231_s9 = sld [smem:[#allocation83_spill]]  ;;  %s44_s21 = sadd.s32 1, %s4567_s29 }
  0x5e   : > { %s47_s0 = sadd.s32 1, %s4571_s30  ;;  %p45_p4 = scmp.ge.s32.totalorder %s44_s21, 2 }
  0x5f   : > { %s131_s7 = sadd.s32 1, %s4555_s26  ;;  %p138_p3 = scmp.ne.s32.totalorder %s4555_s26, %s4551_s25 }
  0x60   : > { %p139_p9 = scmp.eq.s32.totalorder %s4575_s13, 0  ;;  %s6394_s21 = smov (%p45_p4, %s44_s21), 0 }
  0x61   : > { %6232 = sst [smem:[#allocation32_spill]] %s6394_s21  ;;  %s6396_s0 = smov (!%p45_p4, %s47_s0), %s4571_s30 }
  0x62   : > { %s127_s14 = ssub.s32 %s4567_s29, %s6394_s21  ;;  %p4823_p11 = por %p139_p9, %p138_p3 }
  0x63   : > { %4031 = dma.hbm_to_vmem [thread:$0]  (!%p4765_p0), %s6231_s9, 1024, %s417_s20, [#allocation14], %s6229_s10, %s6229_s10, %s6152_s19  }
  0x64   : > { %p49_p0 = scmp.ge.s32.totalorder %s6396_s0, 2  ;;  %p4829_p13 = por %p4727_p2, %p138_p3 }
  0x65   : > { %s337_s24 = sadd.s32 1, %s4543_s23  ;;  %p4047_p8 = scmp.lt.s32.totalorder %s4575_s13, 4 }
  0x66   : > { %s6234_s20 = scalar_select %p4829_p13, 1, 0 }
  0x67   : > { %s6398_s0 = smov (%p49_p0, %s6396_s0), 0  ;;  %s452_s12 = sand.u32 1, %s4555_s26  }
  0x68   : > { %6235 = sst [smem:[#allocation33_spill]] %s6234_s20  ;;  %s3485_s19 = sshll.u32 %s4567_s29, 4 }
  0x69   : > { %s126_s6 = ssub.s32 %s4571_s30, %s6398_s0  ;;  %s3484_s9 = sshll.u32 %s452_s12, 6 }
  0x6a   : > { %s128_s8 = sor.u32 %s127_s14, %s126_s6  ;;  %p335_p5 = scmp.eq.s32.totalorder %s126_s6, 0 }
  0x6b   : > { %p129_p6 = scmp.eq.s32.totalorder %s128_s8, 0  ;;  %s3486_s5 = sshll.u32 %s4571_s30, 5 }
  0x6c   : > { %s4842_s21 = scalar_select %p335_p5, %s4543_s23, %s337_s24  }
  0x6d   : > { %s4845_s17 = scalar_select %p129_p6, %s4555_s26, %s131_s7  }
  0x6e   : > { %s462_s20 = sadd.s32 %s3486_s5, %s3485_s19  ;;  %s456_s4 = scalar_lea.vmem [#allocation9], %s3484_s9 }
  0x6f   : > { %s465_s1 = sshll.u32 %s456_s4, 4  ;;  %s3487_s2 = sshll.u32 %s462_s20, 6  ;;  %s466_s1 = int_to_ptr.vmem [resolvable:$true] %s465_s1 }
  0x70   : > { %s464_s22 = scalar_lea.hbm %s6130_s3, %s3487_s2  ;;  %p4855_p2 = pnand %p4047_p8, %p4823_p11 }
  0x71   : > { %s453_s8 = scalar_lea.sflag [#allocation6], %s452_s12  ;;  %s4398_s7 = scalar_lea.vmem %s466_s1, 1024 }
  0x72   : > { %p4387_p10 = pneg %p4855_p2  ;;  %p4399_p7 = scmp.ne.s32.totalorder %s466_s1, %s4398_s7 }
  0x73   : > { %s4583_s4 = smov [#allocation9]  }
  0x74   : > { %p4401_p4 = pnand %p4399_p7, %p4387_p10  ;;  %s4403_s5 = sshll.u32 %s4583_s4, 4  ;;  %s4404_s5 = int_to_ptr.vmem [resolvable:$false] %s4403_s5 }
  0x75   : > { %s4405_s9 = scalar_lea.vmem %s4404_s5, 2048  ;;  %p4406_p9 = scmp.lt.s32.totalorder %s466_s1, %s4404_s5 }
  0x76   : > { %p4402_p3 = pneg %p4401_p4  ;;  %p4407_p0 = scmp.lt.s32.totalorder %s4405_s9, %s4398_s7 }
  0x78   : > { %p4408_p5 = por %p4407_p0, %p4406_p9 }
  0x7a   : > { %p4409_p6 = pnand %p4408_p5, %p4402_p3 }
  0x7c   : > { %4412 = shalt.err (!%p4409_p6)
}
  0x7d   : > { %s6237_s2 = smov 4   ;;  %485 = sbr.rel (%p4757_p12) target bundleno = 2220 (0x8ac), region = 64 }
  0x7e   : > { %4035 = dma.hbm_to_vmem [thread:$0]  (!%p4855_p2), %s464_s22, 1024, %s466_s1, %s453_s8, %s6229_s10, %s6229_s10, %s6237_s2  }
  0x82   : > { %4510 = dma.done.wait (%p4723_p1), [#allocation8], 16  }
  0x83   : > { %4512 = vsyncadd (%p4723_p1), [#allocation8], 4294967280  ;;  %s4873_s27 = sand.u32 1, %s4551_s25   ;;  %p6238_p11 = scmp.ne.s32.totalorder %s6218_s18, 0 }
  0x84   : > { %s3490_s28 = sshll.u32 %s4873_s27, 6  ;;  %s492_s19 = scalar_lea.sflag [#allocation6], %s4873_s27 }
  0x85   : > { %s4877_s14 = scalar_lea.vmem [#allocation9], %s3490_s28 }
  0x86   : > { %4514 = dma.done.wait (%p6238_p11), %s492_s19, 1024  }
  0x87   : > { %4516 = vsyncadd (%p6238_p11), %s492_s19, 4294966272 }
  0x88   : > { %4518 = dma.done.wait (%p4723_p1), [#allocation11], 2048  }
  0x89   : > { %4520 = vsyncadd (%p4723_p1), [#allocation11], 4294965248 }
  0x8a   : > { %4522 = dma.done.wait (%p4723_p1), [#allocation14], 1024  }
  0x8b   : > { %4524 = vsyncadd (%p4723_p1), [#allocation14], 4294966272 }
  0x8c   : > { %512 = sfence }
  0x8d   : > { %s6239_s1 = sld [smem:[#allocation25_spill]]  ;;  %v4894_v0 = vld [vmem:[%s4877_s14] sm:$0xf]  ;;  %v4897_v1 = vld [vmem:[%s4877_s14 + $0x4] sm:$0xf] }
  0x8e   : > { %s6240_s22 = sld [smem:[#allocation28_spill]]  ;;  %v4904_v2 = vld [vmem:[%s4877_s14 + $0x8] sm:$0xf]  ;;  %v4907_v3 = vld [vmem:[%s4877_s14 + $0xc] sm:$0xf] }
  0x8f   : > { %s6241_s18 = sld [smem:[#allocation27_spill]]  ;;  %v4912_v4 = vld [vmem:[%s4877_s14 + $0x10] sm:$0xf]  ;;  %v4915_v5 = vld [vmem:[%s4877_s14 + $0x14] sm:$0xf] }
  0x90   : > { %s4917_s11 = sld [smem:[#allocation5]]  ;;  %v4920_v6 = vld [vmem:[%s4877_s14 + $0x18] sm:$0xf]  ;;  %v4924_v7 = vld [vmem:[%s4877_s14 + $0x1c] sm:$0xf] }
  0x91   : > { %v4927_v8 = vld [vmem:[%s4877_s14 + $0x20] sm:$0xf]  ;;  %v4931_v9 = vld [vmem:[%s4877_s14 + $0x24] sm:$0xf]  ;;  %v4934_v10 = vld [vmem:[%s4877_s14 + $0x28] sm:$0xf] }
  0x92   : > { %v4937_v11 = vld [vmem:[%s4877_s14 + $0x2c] sm:$0xf]  ;;  %v4940_v12 = vld [vmem:[%s4877_s14 + $0x30] sm:$0xf]  ;;  %v4943_v13 = vld [vmem:[%s4877_s14 + $0x34] sm:$0xf] }
  0x93   : > { %s6162_s16 = sand.u32 1, %s6239_s1   ;;  %v4946_v14 = vld [vmem:[%s4877_s14 + $0x38] sm:$0xf]  ;;  %s6242_s9 = sld [smem:[#allocation77_spill]]  ;;  %v4952_v15 = vld [vmem:[%s4877_s14 + $0x3c] sm:$0xf] }
  0x94   : > { %s4901_s10 = smul.u32 96, %s6162_s16  ;;  %p572_p1 = scmp.lt.s32.totalorder %s6240_s22, 1 }
  0x95   : > { %p574_p12 = scmp.lt.s32.totalorder %s6241_s18, 1  ;;  %s6243_s1 = sld [smem:[#allocation76_spill]] }
  0x96   : > { %s6400_s22 = smov (!%p572_p1, %s6240_s22), 1  ;;  %s4966_s15 = sld [smem:[#allocation5 + $0x1]] }
  0x97   : > { %s575_s20 = scalar_select %p574_p12, %s6241_s18, 1 }
  0x98   : > { %s3495_s24 = sshll.u32 %s6400_s22, 1  ;;  %s3994_s12 = smul.u32 96, %s6400_s22 }
  0x99   : > { %s577_s6 = sadd.s32 %s3495_s24, %s575_s20  ;;  %s3995_s8 = smul.u32 48, %s6400_s22 }
  0x9a   : > { %s3496_s7 = sshll.u32 %s577_s6, 2  ;;  %s584_s2 = scalar_lea.vmem %s6242_s9, %s3994_s12 }
  0x9b   : > { %s579_s16 = scalar_lea.vmem %s6243_s1, %s3496_s7  ;;  %v4957_v16 = vld [vmem:[%s584_s2] sm:$0xff]  ;;  %v4959_v17 = vld [vmem:[%s584_s2 + $0x8] sm:$0xff]  ;;  %v4961_v18 = vld [vmem:[%s584_s2 + $0x10] sm:$0xff]  ;;  %s6244_s24 = sld [smem:[#allocation78_spill]] }
  0x9c   : > { %v4968_v19 = vld [vmem:[%s579_s16] sm:$0xf]  ;;  %v4970_v20 = vld [vmem:[%s584_s2 + $0x18] sm:$0xff]  ;;  %v4974_v22 = vld [vmem:[%s584_s2 + $0x28] sm:$0xff]  ;;  %s6257_s14 = sshll.u32 %s4873_s27, 7  ;;  %s5017_s12 = scalar_lea.vmem [#allocation16], %s4901_s10 }
  0x9d   : > { %v4972_v21 = vld [vmem:[%s584_s2 + $0x20] sm:$0xff]  ;;  %v4976_v23 = vld [vmem:[%s584_s2 + $0x30] sm:$0xff]  ;;  %v4978_v24 = vld [vmem:[%s584_s2 + $0x38] sm:$0xff]  ;;  %s5014_s16 = scalar_lea.vmem [#allocation15], %s6257_s14  ;;  %p3500_p8 = scmp.ne.s32.totalorder %s6241_s18, 0 }
  0x9e   : > { %v4980_v25 = vld [vmem:[%s584_s2 + $0x40] sm:$0xff]  ;;  %v4982_v26 = vld [vmem:[%s584_s2 + $0x48] sm:$0xff]  ;;  %v4984_v27 = vld [vmem:[%s584_s2 + $0x50] sm:$0xff]  ;;  %s4585_s18 = smov (!%p3500_p8), 88  }
  0x9f   : > { %v4986_v28 = vld [vmem:[%s584_s2 + $0x58] sm:$0xff] }
  0xa1   : > { %s590_s6 = scalar_lea.vmem %s6244_s24, %s3995_s8 }
  0xa2   : > { %v4988_v29 = vld [vmem:[%s590_s6] sm:$0xf]  ;;  %v4990_v30 = vld [vmem:[%s590_s6 + $0x4] sm:$0xf]  ;;  %v4992_v31 = vld [vmem:[%s590_s6 + $0x8] sm:$0xf] }
  0xa3   : > { %6245 = vst [vmem:[#allocation34_spill] sm:$0xff] %v4988_v29  ;;  %6246 = vst [vmem:[#allocation35_spill] sm:$0xff] %v4990_v30  ;;  %v4994_v32 = vld [vmem:[%s590_s6 + $0xc] sm:$0xf]  ;;  %v4996_v33 = vld [vmem:[%s590_s6 + $0x10] sm:$0xf] }
  0xa4   : > { %6247 = vst [vmem:[#allocation36_spill] sm:$0xff] %v4992_v31  ;;  %6248 = vst [vmem:[#allocation37_spill] sm:$0xff] %v4994_v32  ;;  %v4998_v34 = vld [vmem:[%s590_s6 + $0x14] sm:$0xf]  ;;  %v5000_v35 = vld [vmem:[%s590_s6 + $0x18] sm:$0xf] }
  0xa5   : > { %6249 = vst [vmem:[#allocation38_spill] sm:$0xff] %v4996_v33  ;;  %6250 = vst [vmem:[#allocation39_spill] sm:$0xff] %v4998_v34  ;;  %v5002_v36 = vld [vmem:[%s590_s6 + $0x1c] sm:$0xf]  ;;  %v5004_v37 = vld [vmem:[%s590_s6 + $0x20] sm:$0xf] }
  0xa6   : > { %6251 = vst [vmem:[#allocation40_spill] sm:$0xff] %v5000_v35  ;;  %6252 = vst [vmem:[#allocation41_spill] sm:$0xff] %v5002_v36  ;;  %v5006_v38 = vld [vmem:[%s590_s6 + $0x24] sm:$0xf]  ;;  %v5008_v39 = vld [vmem:[%s590_s6 + $0x28] sm:$0xf] }
  0xa7   : > { %6253 = vst [vmem:[#allocation42_spill] sm:$0xff] %v5004_v37  ;;  %6254 = vst [vmem:[#allocation43_spill] sm:$0xff] %v5006_v38  ;;  %v5010_v40 = vld [vmem:[%s590_s6 + $0x2c] sm:$0xf]  ;;  %639 = sbr.rel (%p3500_p8) target bundleno = 534 (0x216), region = 88 }
  0xa8   : > { %6255 = vst [vmem:[#allocation44_spill] sm:$0xff] %v5008_v39  ;;  %6256 = vst [vmem:[#allocation45_spill] sm:$0xff] %v5010_v40 }
  0xac   : > { %v4161_v41 = vld [vmem:[#allocation12 + $0x38] sm:$0xff]   ;;  %v4162_v42 = vld [vmem:[#allocation12 + $0x30] sm:$0xff]   ;;  %v3501_v43 = vcombine.low %v4988_v29, %v4990_v30  ;;  %v3503_v44 = vcombine.low %v4996_v33, %v4998_v34  ;;  %v4163_v45 = vld [vmem:[#allocation12 + $0x28] sm:$0xff]   ;;  %v3502_v51 = vcombine.low %v4992_v31, %v4994_v32  ;;  %v3504_v52 = vcombine.low %v5000_v35, %v5002_v36 }
  0xad   : > { %3721 = vmatprep.subr.bf16.mxu0 %v4161_v41  ;;  %3945 = vmatprep.subr.bf16.mxu1 %v4161_v41  ;;  %v4164_v46 = vld [vmem:[#allocation12 + $0x20] sm:$0xff]   ;;  %v4165_v47 = vld [vmem:[#allocation12 + $0x18] sm:$0xff]   ;;  %v4166_v48 = vld [vmem:[#allocation12 + $0x10] sm:$0xff]   ;;  %v3505_v53 = vcombine.low %v5004_v37, %v5006_v38  ;;  %v3506_v54 = vcombine.low %v5008_v39, %v5010_v40  ;;  %vm881_vm0 = vcmask 7168   ;;  %v4584_v55 = vmov 0.0  }
  0xae   : > { %3722 = vmatpush3.bf16.msra.mxu0 %v4161_v41  ;;  %3953 = vmatpush3.bf16.msra.mxu1 %v4161_v41  ;;  %v4167_v49 = vld [vmem:[#allocation12 + $0x8] sm:$0xff]   ;;  %v4168_v50 = vld [vmem:[#allocation12] sm:$0xff]   ;;  %894 = vst.msk [vmem:[#allocation3] sm:$0xff] %vm881_vm0, %v4584_v55  ;;  %895 = vst.msk [vmem:[#allocation3 + $0x8] sm:$0xff] %vm881_vm0, %v4584_v55 }
  0xaf   : > { %3723 = vmatprep.subr.bf16.mxu0 %v4162_v42  ;;  %3946 = vmatprep.subr.bf16.mxu1 %v4162_v42  ;;  %896 = vst.msk [vmem:[#allocation3 + $0x10] sm:$0xff] %vm881_vm0, %v4584_v55  ;;  %897 = vst.msk [vmem:[#allocation3 + $0x18] sm:$0xff] %vm881_vm0, %v4584_v55 }
  0xb0   : > { %3737 = vmatprep.mubr.bf16.mxu0 %v3501_v43  ;;  %3741 = vmatprep.mubr.bf16.mxu1 %v3503_v44  ;;  %898 = vst.msk [vmem:[#allocation3 + $0x20] sm:$0xff] %vm881_vm0, %v4584_v55  ;;  %899 = vst.msk [vmem:[#allocation3 + $0x28] sm:$0xff] %vm881_vm0, %v4584_v55 }
  0xb1   : > { %900 = vst.msk [vmem:[#allocation3 + $0x30] sm:$0xff] %vm881_vm0, %v4584_v55  ;;  %901 = vst.msk [vmem:[#allocation3 + $0x38] sm:$0xff] %vm881_vm0, %v4584_v55 }
  0xb2   : > { %3724 = vmatpush3.bf16.msra.mxu0 %v4162_v42  ;;  %3954 = vmatpush3.bf16.msra.mxu1 %v4162_v42  ;;  %902 = vst.msk [vmem:[#allocation3 + $0x40] sm:$0xff] %vm881_vm0, %v4584_v55  ;;  %903 = vst.msk [vmem:[#allocation3 + $0x48] sm:$0xff] %vm881_vm0, %v4584_v55 }
  0xb3   : > { %3725 = vmatprep.subr.bf16.mxu0 %v4163_v45  ;;  %3947 = vmatprep.subr.bf16.mxu1 %v4163_v45  ;;  %904 = vst.msk [vmem:[#allocation3 + $0x50] sm:$0xff] %vm881_vm0, %v4584_v55  ;;  %905 = vst.msk [vmem:[#allocation3 + $0x58] sm:$0xff] %vm881_vm0, %v4584_v55 }
  0xb4   : > { %906 = vst [vmem:[#allocation4 + $0x30] sm:$0xff] %v4584_v55  ;;  %907 = vst [vmem:[#allocation4] sm:$0xff] %v4584_v55 }
  0xb5   : > { %908 = vst [vmem:[#allocation4 + $0x58] sm:$0xff] %v4584_v55  ;;  %909 = vst [vmem:[#allocation4 + $0x18] sm:$0xff] %v4584_v55 }
  0xb6   : > { %3726 = vmatpush3.bf16.msra.mxu0 %v4163_v45  ;;  %3955 = vmatpush3.bf16.msra.mxu1 %v4163_v45  ;;  %910 = vst [vmem:[#allocation4 + $0x50] sm:$0xff] %v4584_v55  ;;  %911 = vst [vmem:[#allocation4 + $0x20] sm:$0xff] %v4584_v55 }
  0xb7   : > { %3727 = vmatprep.subr.bf16.mxu0 %v4164_v46  ;;  %3948 = vmatprep.subr.bf16.mxu1 %v4164_v46  ;;  %912 = vst [vmem:[#allocation4 + $0x8] sm:$0xff] %v4584_v55  ;;  %913 = vst [vmem:[#allocation4 + $0x38] sm:$0xff] %v4584_v55 }
  0xb8   : > { %914 = vst [vmem:[#allocation4 + $0x28] sm:$0xff] %v4584_v55  ;;  %915 = vst [vmem:[#allocation4 + $0x48] sm:$0xff] %v4584_v55 }
  0xb9   : > { %916 = vst [vmem:[#allocation4 + $0x10] sm:$0xff] %v4584_v55  ;;  %917 = vst [vmem:[#allocation4 + $0x40] sm:$0xff] %v4584_v55 }
  0xba   : > { %3728 = vmatpush3.bf16.msra.mxu0 %v4164_v46  ;;  %3956 = vmatpush3.bf16.msra.mxu1 %v4164_v46 }
  0xbb   : > { %3729 = vmatprep.subr.bf16.mxu0 %v4165_v47  ;;  %3949 = vmatprep.subr.bf16.mxu1 %v4165_v47 }
  0xbe   : > { %3730 = vmatpush3.bf16.msra.mxu0 %v4165_v47  ;;  %3957 = vmatpush3.bf16.msra.mxu1 %v4165_v47 }
  0xbf   : > { %3731 = vmatprep.subr.bf16.mxu0 %v4166_v48  ;;  %3950 = vmatprep.subr.bf16.mxu1 %v4166_v48 }
  0xc2   : > { %3732 = vmatpush3.bf16.msra.mxu0 %v4166_v48  ;;  %3958 = vmatpush3.bf16.msra.mxu1 %v4166_v48 }
  0xc3   : > { %3733 = vmatprep.subr.bf16.mxu0 %v4167_v49  ;;  %3951 = vmatprep.subr.bf16.mxu1 %v4167_v49 }
  0xc6   : > { %3734 = vmatpush3.bf16.msra.mxu0 %v4167_v49  ;;  %3959 = vmatpush3.bf16.msra.mxu1 %v4167_v49 }
  0xc7   : > { %3735 = vmatprep.subr.bf16.mxu0 %v4168_v50  ;;  %3952 = vmatprep.subr.bf16.mxu1 %v4168_v50 }
  0xca   : > { %3736 = vmatpush3.bf16.msra.mxu0 %v4168_v50  ;;  %3960 = vmatpush3.bf16.msra.mxu1 %v4168_v50 }
  0xcd   : > { %3738 = vmatmul.mubr.bf16.vlgmr.msra.gmra.mxu0 %v3502_v51  ;;  %3742 = vmatmul.mubr.bf16.vlgmr.msra.gmra.mxu1 %v3504_v52 }
  0xce   : > { %3745 = vmatprep.mubr.bf16.mxu1 %v3505_v53 }
  0xd5   : > { %3746 = vmatmul.mubr.bf16.gmra.mxu1 %v3506_v54 }
 0x18d   : > { %v3739_v56 = vpop.f32.mrf.mxu0  ;;  %v3743_v57 = vpop.f32.mrf.mxu1 }
 0x18e   : > { %823 = vst [vmem:[%s5017_s12 + $0x10] sm:$0xff] %v3739_v56  ;;  %827 = vst [vmem:[%s5017_s12 + $0x30] sm:$0xff] %v3743_v57  ;;  %857 = vrot.lane.b32.xlu0 %v3743_v57, %s4585_s18  ;;  %849 = vrot.lane.b32.xlu1 %v3739_v56, %s4585_s18 }
 0x18f   : > { %v774_v58 = vpop.f32.mrf.mxu0  ;;  %v790_v59 = vpop.f32.mrf.mxu1 }
 0x190   : > { %821 = vst [vmem:[%s5017_s12] sm:$0xff] %v774_v58  ;;  %825 = vst [vmem:[%s5017_s12 + $0x20] sm:$0xff] %v790_v59 }
 0x191   : > { %v3740_v60 = vpop.f32.mrf.mxu0  ;;  %v3744_v61 = vpop.f32.mrf.mxu1 }
 0x192   : > { %824 = vst [vmem:[%s5017_s12 + $0x18] sm:$0xff] %v3740_v60  ;;  %828 = vst [vmem:[%s5017_s12 + $0x38] sm:$0xff] %v3744_v61  ;;  %845 = vrot.lane.b32.xlu0 %v774_v58, %s4585_s18  ;;  %851 = vrot.lane.b32.xlu1 %v3740_v60, %s4585_s18 }
 0x193   : > { %v777_v62 = vpop.f32.mrf.mxu0  ;;  %v793_v63 = vpop.f32.mrf.mxu1 }
 0x194   : > { %822 = vst [vmem:[%s5017_s12 + $0x8] sm:$0xff] %v777_v62  ;;  %826 = vst [vmem:[%s5017_s12 + $0x28] sm:$0xff] %v793_v63 }
 0x195   : > { %v3747_v41 = vpop.f32.mrf.mxu1 }
 0x196   : > { %831 = vst [vmem:[%s5017_s12 + $0x50] sm:$0xff] %v3747_v41  ;;  %853 = vrot.lane.b32.xlu0 %v790_v59, %s4585_s18  ;;  %859 = vrot.lane.b32.xlu1 %v3744_v61, %s4585_s18 }
 0x197   : > { %v806_v42 = vpop.f32.mrf.mxu1 }
 0x198   : > { %829 = vst [vmem:[%s5017_s12 + $0x40] sm:$0xff] %v806_v42 }
 0x199   : > { %v3748_v43 = vpop.f32.mrf.mxu1 }
 0x19a   : > { %832 = vst [vmem:[%s5017_s12 + $0x58] sm:$0xff] %v3748_v43  ;;  %855 = vrot.lane.b32.xlu1 %v793_v63, %s4585_s18  ;;  %847 = vrot.lane.b32.xlu0 %v777_v62, %s4585_s18 }
 0x19b   : > { %v809_v44 = vpop.f32.mrf.mxu1 }
 0x19c   : > { %830 = vst [vmem:[%s5017_s12 + $0x48] sm:$0xff] %v809_v44 }
 0x19e   : > { %863 = vrot.lane.b32.xlu1 %v809_v44, %s4585_s18  ;;  %861 = vrot.lane.b32.xlu0 %v806_v42, %s4585_s18 }
 0x1a2   : > { %867 = vrot.lane.b32.xlu1 %v3748_v43, %s4585_s18  ;;  %865 = vrot.lane.b32.xlu0 %v3747_v41, %s4585_s18 }
 0x200   : > { %v858_v45 = vpop.permute.xlu0 %857  ;;  %v850_v46 = vpop.permute.xlu1 %849 }
 0x201   : > { %888 = vst.msk [vmem:[#allocation2 + $0x30] sm:$0xff] %vm881_vm0, %v858_v45  ;;  %884 = vst.msk [vmem:[#allocation2 + $0x10] sm:$0xff] %vm881_vm0, %v850_v46 }
 0x204   : > { %v846_v47 = vpop.permute.xlu0 %845  ;;  %v852_v48 = vpop.permute.xlu1 %851 }
 0x205   : > { %882 = vst.msk [vmem:[#allocation2] sm:$0xff] %vm881_vm0, %v846_v47  ;;  %885 = vst.msk [vmem:[#allocation2 + $0x18] sm:$0xff] %vm881_vm0, %v852_v48 }
 0x208   : > { %v854_v49 = vpop.permute.xlu0 %853  ;;  %v860_v50 = vpop.permute.xlu1 %859 }
 0x209   : > { %886 = vst.msk [vmem:[#allocation2 + $0x20] sm:$0xff] %vm881_vm0, %v854_v49  ;;  %889 = vst.msk [vmem:[#allocation2 + $0x38] sm:$0xff] %vm881_vm0, %v860_v50 }
 0x20c   : > { %v856_v51 = vpop.permute.xlu1 %855  ;;  %v848_v52 = vpop.permute.xlu0 %847 }
 0x20d   : > { %887 = vst.msk [vmem:[#allocation2 + $0x28] sm:$0xff] %vm881_vm0, %v856_v51  ;;  %883 = vst.msk [vmem:[#allocation2 + $0x8] sm:$0xff] %vm881_vm0, %v848_v52 }
 0x210   : > { %v864_v53 = vpop.permute.xlu1 %863  ;;  %v862_v54 = vpop.permute.xlu0 %861 }
 0x211   : > { %891 = vst.msk [vmem:[#allocation2 + $0x48] sm:$0xff] %vm881_vm0, %v864_v53  ;;  %890 = vst.msk [vmem:[#allocation2 + $0x40] sm:$0xff] %vm881_vm0, %v862_v54 }
 0x214   : > { %v868_v55 = vpop.permute.xlu1 %867  ;;  %v866_v56 = vpop.permute.xlu0 %865 }
 0x215   : > { %893 = vst.msk [vmem:[#allocation2 + $0x58] sm:$0xff] %vm881_vm0, %v868_v55  ;;  %892 = vst.msk [vmem:[#allocation2 + $0x50] sm:$0xff] %vm881_vm0, %v866_v56 }
 0x216 PF: > { %s6258_s7 = sld [smem:[#allocation79_spill]]  ;;  %v5085_v58 = vcombine.low %v4894_v0, %v4897_v1  ;;  %s4586_s4 = smov 2   ;;  %v6165_v60 = vmov 0   ;;  %v5101_v1 = vcombine.low %v4946_v14, %v4952_v15  ;;  %v4588_v61 = vmov 2   ;;  %v1735_v45 = vld [vmem:[#allocation2 + $0x18] sm:$0xff] }
 0x217   : > { %934 = vrot.lane.b32.xlu1 %v4961_v18, %s4586_s4  ;;  %930 = vrot.lane.b32.xlu0 %v4957_v16, %s4586_s4  ;;  %v5110_v62 = vcombine.low %v4940_v12, %v4943_v13  ;;  %v3520_v13 = vcombine.low %v4934_v10, %v4937_v11  ;;  %v3519_v15 = vcombine.low %v4927_v8, %v4931_v9  ;;  %s4592_s5 = smov 108   ;;  %v5385_v37 = vstv %s4917_s11  ;;  %s6346_s9 = sld [smem:[#allocation81_spill]] }
 0x218   : > { %4170 = vset.pattern.permute.xlu1 %v6165_v60  ;;  %3765 = vmatprep.mubr.bf16.mxu0 %v5085_v58  ;;  %v3518_v11 = vcombine.low %v4920_v6, %v4924_v7  ;;  %v3517_v9 = vcombine.low %v4912_v4, %v4915_v5  ;;  %v3516_v7 = vcombine.low %v4904_v2, %v4907_v3  ;;  %v6163_v4 = vmov 3   ;;  %v1732_v3 = vld [vmem:[#allocation2] sm:$0xff]  ;;  %v1733_v5 = vld [vmem:[#allocation2 + $0x8] sm:$0xff]  ;;  %s6363_s2 = sld [smem:[#allocation27_spill]] }
 0x219   : > { %4169 = vset.pattern.permute.xlu0 %v4588_v61  ;;  %3781 = vmatprep.subr.bf16.mxu1 %v5101_v1  ;;  %v4590_v2 = vmov 1  }
 0x21a   : > { %3782 = vmatpush3.bf16.msra.mxu1 %v5101_v1 }
 0x21b   : > { %936 = vrot.lane.b32.xlu1 %v4970_v20, %s4586_s4  ;;  %932 = vrot.lane.b32.xlu0 %v4959_v17, %s4586_s4 }
 0x21c   : > { %v4210_v57 = vld [vmem:[%s6258_s7 + $0x38] sm:$0xff]   ;;  %v4211_v59 = vld [vmem:[%s6258_s7 + $0x30] sm:$0xff]   ;;  %v4212_v0 = vld [vmem:[%s6258_s7 + $0x28] sm:$0xff]   ;;  %3783 = vmatprep.subr.bf16.mxu1 %v5110_v62 }
 0x21d   : > { %3749 = vmatprep.subr.bf16.mxu0 %v4210_v57  ;;  %v4213_v14 = vld [vmem:[%s6258_s7 + $0x20] sm:$0xff]   ;;  %v4214_v12 = vld [vmem:[%s6258_s7 + $0x18] sm:$0xff]   ;;  %v4215_v10 = vld [vmem:[%s6258_s7 + $0x10] sm:$0xff]  }
 0x21e   : > { %3750 = vmatpush3.bf16.msra.mxu0 %v4210_v57  ;;  %3784 = vmatpush3.bf16.msra.mxu1 %v5110_v62  ;;  %v4216_v8 = vld [vmem:[%s6258_s7 + $0x8] sm:$0xff]   ;;  %v4217_v6 = vld [vmem:[%s6258_s7] sm:$0xff]   ;;  %p3588_p2 = scmp.ne.s32.totalorder %s6363_s2, 1 }
 0x21f   : > { %3751 = vmatprep.subr.bf16.mxu0 %v4211_v59  ;;  %940 = vrot.lane.b32.xlu1 %v4974_v22, %s4586_s4  ;;  %s6364_s1 = sld [smem:[#allocation84_spill]] (!%p3588_p2) }
 0x220   : > { %938 = vrot.lane.b32.xlu0 %v4972_v21, %s4586_s4  ;;  %3785 = vmatprep.subr.bf16.mxu1 %v3520_v13 }
 0x222   : > { %3752 = vmatpush3.bf16.msra.mxu0 %v4211_v59  ;;  %3786 = vmatpush3.bf16.msra.mxu1 %v3520_v13 }
 0x223   : > { %3753 = vmatprep.subr.bf16.mxu0 %v4212_v0  ;;  %944 = vrot.lane.b32.xlu1 %v4978_v24, %s4586_s4 }
 0x224   : > { %942 = vrot.lane.b32.xlu0 %v4976_v23, %s4586_s4  ;;  %3787 = vmatprep.subr.bf16.mxu1 %v3519_v15 }
 0x226   : > { %3754 = vmatpush3.bf16.msra.mxu0 %v4212_v0  ;;  %3788 = vmatpush3.bf16.msra.mxu1 %v3519_v15 }
 0x227   : > { %3755 = vmatprep.subr.bf16.mxu0 %v4213_v14  ;;  %948 = vrot.lane.b32.xlu1 %v4982_v26, %s4586_s4 }
 0x228   : > { %946 = vrot.lane.b32.xlu0 %v4980_v25, %s4586_s4  ;;  %3789 = vmatprep.subr.bf16.mxu1 %v3518_v11 }
 0x22a   : > { %3756 = vmatpush3.bf16.msra.mxu0 %v4213_v14  ;;  %3790 = vmatpush3.bf16.msra.mxu1 %v3518_v11  ;;  %v1737_v14 = vld [vmem:[#allocation2 + $0x28] sm:$0xff] }
 0x22b   : > { %3757 = vmatprep.subr.bf16.mxu0 %v4214_v12  ;;  %952 = vrot.lane.b32.xlu1 %v4986_v28, %s4586_s4 }
 0x22c   : > { %950 = vrot.lane.b32.xlu0 %v4984_v27, %s4586_s4  ;;  %3791 = vmatprep.subr.bf16.mxu1 %v3517_v9  ;;  %s4591_s4 = smov 1  }
 0x22e   : > { %3758 = vmatpush3.bf16.msra.mxu0 %v4214_v12  ;;  %3792 = vmatpush3.bf16.msra.mxu1 %v3517_v9 }
 0x22f   : > { %3759 = vmatprep.subr.bf16.mxu0 %v4215_v10  ;;  %1107 = vperm.xlu1 %4170, %v4957_v16  }
 0x230   : > { %1043 = vperm.xlu0 %4169, %v4957_v16   ;;  %3793 = vmatprep.subr.bf16.mxu1 %v3516_v7 }
 0x232   : > { %3760 = vmatpush3.bf16.msra.mxu0 %v4215_v10  ;;  %3794 = vmatpush3.bf16.msra.mxu1 %v3516_v7 }
 0x233   : > { %3761 = vmatprep.subr.bf16.mxu0 %v4216_v8  ;;  %4171 = vset.pattern.permute.xlu1 %v6163_v4 }
 0x234   : > { %1055 = vperm.xlu0 %4169, %v4970_v20   ;;  %1195 = vperm.xlu1 %4171, %v4957_v16  }
 0x235   : > { %3795 = vmatprep.subr.bf16.mxu1 %v5085_v58 }
 0x236   : > { %3762 = vmatpush3.bf16.msra.mxu0 %v4216_v8  ;;  %3796 = vmatpush3.bf16.msra.mxu1 %v5085_v58 }
 0x237   : > { %3763 = vmatprep.subr.bf16.mxu0 %v4217_v6 }
 0x238   : > { %1063 = vperm.xlu0 %4169, %v4974_v22   ;;  %4172 = vset.pattern.permute.xlu1 %v4588_v61 }
 0x239   : > { %1047 = vperm.xlu1 %4172, %v4959_v17  }
 0x23a   : > { %3764 = vmatpush3.bf16.msra.mxu0 %v4217_v6 }
 0x23c   : > { %1071 = vperm.xlu0 %4169, %v4978_v24  }
 0x23d   : > { %3766 = vmatmul.mubr.bf16.vlgmr.msra.gmra.mxu0 %v3516_v7  ;;  %4173 = vset.pattern.permute.xlu1 %v6165_v60 }
 0x23e   : > { %3769 = vmatprep.mubr.bf16.mxu0 %v3517_v9  ;;  %1111 = vperm.xlu1 %4173, %v4959_v17  }
 0x240   : > { %1079 = vperm.xlu0 %4169, %v4982_v26  }
 0x242   : > { %4174 = vset.pattern.permute.xlu1 %v4590_v2 }
 0x243   : > { %1263 = vperm.xlu1 %4174, %v4959_v17  }
 0x244   : > { %1087 = vperm.xlu0 %4169, %v4986_v28  }
 0x245   : > { %3770 = vmatmul.mubr.bf16.gmra.mxu0 %v3518_v11 }
 0x246   : > { %3773 = vmatprep.mubr.bf16.mxu0 %v3519_v15 }
 0x247   : > { %4175 = vset.pattern.permute.xlu1 %v4588_v61 }
 0x248   : > { %4200 = vset.pattern.permute.xlu0 %v4590_v2  ;;  %1051 = vperm.xlu1 %4175, %v4961_v18  }
 0x24c   : > { %4176 = vset.pattern.permute.xlu1 %v6163_v4 }
 0x24d   : > { %3774 = vmatmul.mubr.bf16.gmra.mxu0 %v3520_v13  ;;  %1203 = vperm.xlu1 %4176, %v4961_v18  }
 0x24e   : > { %3777 = vmatprep.mubr.bf16.mxu0 %v5110_v62 }
 0x251   : > { %4177 = vset.pattern.permute.xlu1 %v4590_v2 }
 0x252   : > { %1267 = vperm.xlu1 %4177, %v4961_v18  }
 0x255   : > { %3778 = vmatmul.mubr.bf16.gmra.mxu0 %v5101_v1 }
 0x256   : > { %4178 = vset.pattern.permute.xlu1 %v6165_v60 }
 0x257   : > { %1119 = vperm.xlu1 %4178, %v4970_v20  }
 0x25b   : > { %4179 = vset.pattern.permute.xlu1 %v6163_v4 }
 0x25c   : > { %1207 = vperm.xlu1 %4179, %v4970_v20  }
 0x260   : > { %4180 = vset.pattern.permute.xlu1 %v6165_v60 }
 0x261   : > { %1842 = vperm.xlu1 %4180, %v1732_v3  }
 0x265   : > { %4181 = vset.pattern.permute.xlu1 %v4588_v61 }
 0x266   : > { %1059 = vperm.xlu1 %4181, %v4972_v21  }
 0x26a   : > { %4182 = vset.pattern.permute.xlu1 %v6163_v4 }
 0x26b   : > { %1211 = vperm.xlu1 %4182, %v4972_v21  }
 0x26f   : > { %4183 = vset.pattern.permute.xlu1 %v4590_v2 }
 0x270   : > { %1275 = vperm.xlu1 %4183, %v4972_v21  }
 0x274   : > { %4184 = vset.pattern.permute.xlu1 %v6165_v60 }
 0x275   : > { %1847 = vperm.xlu1 %4184, %v1733_v5  }
 0x279   : > { %1127 = vperm.xlu1 %4184, %v4974_v22  }
 0x27d   : > { %4185 = vset.pattern.permute.xlu1 %v6163_v4 }
 0x27e   : > { %1215 = vperm.xlu1 %4185, %v4974_v22  }
 0x282   : > { %4186 = vset.pattern.permute.xlu1 %v4588_v61 }
 0x283   : > { %1067 = vperm.xlu1 %4186, %v4976_v23  }
 0x287   : > { %4187 = vset.pattern.permute.xlu1 %v6165_v60 }
 0x288   : > { %1131 = vperm.xlu1 %4187, %v4976_v23  }
 0x289   : > { %v931_v63 = vpop.permute.xlu0 %930  ;;  %v935_v42 = vpop.permute.xlu1 %934 }
 0x28a   : > { %v5203_v41 = vsub.f32 %v4957_v16, %v931_v63  ;;  %v5215_v46 = vsub.f32 %v4961_v18, %v935_v42 }
 0x28c   : > { %4188 = vset.pattern.permute.xlu1 %v4590_v2  ;;  %990 = vrot.lane.b32.xlu0 %v5203_v41, %s4591_s4 }
 0x28d   : > { %1283 = vperm.xlu1 %4188, %v4976_v23   ;;  %v933_v43 = vpop.permute.xlu0 %932  ;;  %v937_v47 = vpop.permute.xlu1 %936 }
 0x28e   : > { %v5210_v44 = vsub.f32 %v4959_v17, %v933_v43  ;;  %v5221_v48 = vsub.f32 %v4970_v20, %v937_v47 }
 0x290   : > { %992 = vrot.lane.b32.xlu0 %v5210_v44, %s4591_s4 }
 0x291   : > { %4189 = vset.pattern.permute.xlu1 %v6165_v60  ;;  %v941_v51 = vpop.permute.xlu1 %940 }
 0x292   : > { %1857 = vperm.xlu1 %4189, %v1735_v45   ;;  %v939_v49 = vpop.permute.xlu0 %938  ;;  %v5234_v52 = vsub.f32 %v4974_v22, %v941_v51 }
 0x293   : > { %v5227_v50 = vsub.f32 %v4972_v21, %v939_v49 }
 0x294   : > { %994 = vrot.lane.b32.xlu0 %v5215_v46, %s4591_s4 }
 0x295   : > { %v945_v53 = vpop.permute.xlu1 %944 }
 0x296   : > { %1135 = vperm.xlu1 %4189, %v4978_v24   ;;  %v943_v54 = vpop.permute.xlu0 %942  ;;  %v5247_v57 = vsub.f32 %v4978_v24, %v945_v53 }
 0x297   : > { %v5241_v55 = vsub.f32 %v4976_v23, %v943_v54 }
 0x298   : > { %996 = vrot.lane.b32.xlu0 %v5221_v48, %s4591_s4 }
 0x299   : > { %v949_v56 = vpop.permute.xlu1 %948 }
 0x29a   : > { %4190 = vset.pattern.permute.xlu1 %v6163_v4  ;;  %v947_v59 = vpop.permute.xlu0 %946  ;;  %v5262_v62 = vsub.f32 %v4982_v26, %v949_v56 }
 0x29b   : > { %1223 = vperm.xlu1 %4190, %v4978_v24   ;;  %v5253_v0 = vsub.f32 %v4980_v25, %v947_v59 }
 0x29c   : > { %998 = vrot.lane.b32.xlu0 %v5227_v50, %s4591_s4 }
 0x29d   : > { %v953_v58 = vpop.permute.xlu1 %952 }
 0x29e   : > { %v951_v12 = vpop.permute.xlu0 %950  ;;  %v5274_v10 = vsub.f32 %v4986_v28, %v953_v58 }
 0x29f   : > { %4191 = vset.pattern.permute.xlu1 %v4588_v61  ;;  %v5270_v15 = vsub.f32 %v4984_v27, %v951_v12 }
 0x2a0   : > { %1075 = vperm.xlu1 %4191, %v4980_v25   ;;  %1000 = vrot.lane.b32.xlu0 %v5234_v52, %s4591_s4 }
 0x2a4   : > { %4192 = vset.pattern.permute.xlu1 %v6165_v60  ;;  %1002 = vrot.lane.b32.xlu0 %v5241_v55, %s4591_s4 }
 0x2a5   : > { %1139 = vperm.xlu1 %4192, %v4980_v25  }
 0x2a8   : > { %1004 = vrot.lane.b32.xlu0 %v5247_v57, %s4591_s4 }
 0x2a9   : > { %4193 = vset.pattern.permute.xlu1 %v4590_v2 }
 0x2aa   : > { %1291 = vperm.xlu1 %4193, %v4980_v25   ;;  %v5257_v1 = vpop.permute.xlu1 %1107 }
 0x2ac   : > { %1006 = vrot.lane.b32.xlu0 %v5253_v0, %s4591_s4 }
 0x2ae   : > { %4194 = vset.pattern.permute.xlu1 %v6165_v60 }
 0x2af   : > { %1867 = vperm.xlu1 %4194, %v1737_v14   ;;  %v5265_v13 = vpop.permute.xlu1 %1195 }
 0x2b0   : > { %1008 = vrot.lane.b32.xlu0 %v5262_v62, %s4591_s4 }
 0x2b3   : > { %1143 = vperm.xlu1 %4194, %v4982_v26  }
 0x2b4   : > { %1010 = vrot.lane.b32.xlu0 %v5270_v15, %s4591_s4  ;;  %v5278_v11 = vpop.permute.xlu1 %1047 }
 0x2b7   : > { %4195 = vset.pattern.permute.xlu1 %v6163_v4 }
 0x2b8   : > { %1231 = vperm.xlu1 %4195, %v4982_v26   ;;  %1012 = vrot.lane.b32.xlu0 %v5274_v10, %s4591_s4 }
 0x2b9   : > { %v5284_v8 = vpop.permute.xlu1 %1111 }
 0x2bc   : > { %4196 = vset.pattern.permute.xlu1 %v4588_v61  ;;  %1259 = vperm.xlu0 %4200, %v4957_v16   ;;  %v1739_v61 = vld [vmem:[#allocation2 + $0x38] sm:$0xff] }
 0x2bd   : > { %1083 = vperm.xlu1 %4196, %v4984_v27  }
 0x2be   : > { %v5289_v9 = vpop.permute.xlu1 %1263 }
 0x2c0   : > { %1271 = vperm.xlu0 %4200, %v4970_v20  }
 0x2c1   : > { %4197 = vset.pattern.permute.xlu1 %v6165_v60 }
 0x2c2   : > { %1147 = vperm.xlu1 %4197, %v4984_v27  }
 0x2c3   : > { %v5294_v6 = vpop.permute.xlu1 %1051 }
 0x2c4   : > { %1279 = vperm.xlu0 %4200, %v4974_v22  }
 0x2c6   : > { %4198 = vset.pattern.permute.xlu1 %v4590_v2 }
 0x2c7   : > { %1299 = vperm.xlu1 %4198, %v4984_v27  }
 0x2c8   : > { %1287 = vperm.xlu0 %4200, %v4978_v24   ;;  %v5300_v16 = vpop.permute.xlu1 %1203  ;;  %v5314_v24 = vpop.permute.xlu0 %1043 }
 0x2cb   : > { %4199 = vset.pattern.permute.xlu1 %v6165_v60 }
 0x2cc   : > { %1877 = vperm.xlu1 %4199, %v1739_v61   ;;  %1295 = vperm.xlu0 %4200, %v4982_v26   ;;  %v5318_v5 = vpop.permute.xlu0 %1055 }
 0x2cd   : > { %v5304_v20 = vpop.permute.xlu1 %1267 }
 0x2d0   : > { %1151 = vperm.xlu1 %4199, %v4986_v28   ;;  %v5322_v26 = vpop.permute.xlu0 %1063 }
 0x2d1   : > { %6260 = vst [vmem:[#allocation47_spill] sm:$0xff] %v5322_v26 }
 0x2d2   : > { %v5307_v7 = vpop.permute.xlu1 %1119 }
 0x2d4   : > { %4201 = vset.pattern.permute.xlu1 %v6163_v4  ;;  %v5326_v43 = vpop.permute.xlu0 %1071 }
 0x2d7   : > { %v5310_v22 = vpop.permute.xlu1 %1207 }
 0x2d8   : > { %v5330_v47 = vpop.permute.xlu0 %1079 }
 0x2dc   : > { %v5312_v2 = vpop.permute.xlu1 %1842  ;;  %v5340_v54 = vpop.permute.xlu0 %1087 }
 0x2dd   : > { %6259 = vst [vmem:[#allocation46_spill] sm:$0xff] %v5312_v2  ;;  %6264 = vst [vmem:[#allocation51_spill] sm:$0xff] %v5340_v54 }
 0x2e1   : > { %v5316_v3 = vpop.permute.xlu1 %1059 }
 0x2e6   : > { %v5320_v63 = vpop.permute.xlu1 %1211 }
 0x2eb   : > { %v5324_v42 = vpop.permute.xlu1 %1275 }
 0x2f0   : > { %v5328_v45 = vpop.permute.xlu1 %1847 }
 0x2f1   : > { %6261 = vst [vmem:[#allocation48_spill] sm:$0xff] %v5328_v45  ;;  %v1038_v45 = vlaneseq }
 0x2f3   : > { %v5402_v54 = vshrl.u32 %v1038_v45, 7 }
 0x2f4   : > { %v5332_v49 = vpop.permute.xlu1 %1127 }
 0x2f5   : > { %6283 = vst [vmem:[#allocation69_spill] sm:$0xff] %v5402_v54 }
 0x2f9   : > { %v5338_v53 = vpop.permute.xlu1 %1215 }
 0x2fa   : > { %6263 = vst [vmem:[#allocation50_spill] sm:$0xff] %v5338_v53 }
 0x2fd   : > { %v5334_v51 = vpop.f32.mrf.mxu0 }
 0x2fe   : > { %6262 = vst [vmem:[#allocation49_spill] sm:$0xff] %v5334_v51  ;;  %1764 = vrot.lane.b32.xlu1 %v5334_v51, %s4592_s5  ;;  %v991_v59 = vpop.permute.xlu0 %990  ;;  %v5350_v12 = vpop.permute.xlu1 %1067 }
 0x2ff   : > { %v5342_v56 = vpop.f32.mrf.mxu0  ;;  %6268 = vst [vmem:[#allocation55_spill] sm:$0xff] %v5350_v12 }
 0x300   : > { %6265 = vst [vmem:[#allocation52_spill] sm:$0xff] %v5342_v56 }
 0x301   : > { %v5344_v58 = vpop.f32.mrf.mxu0 }
 0x302   : > { %6266 = vst [vmem:[#allocation53_spill] sm:$0xff] %v5344_v58  ;;  %1760 = vrot.lane.b32.xlu1 %v5342_v56, %s4592_s5  ;;  %v993_v4 = vpop.permute.xlu0 %992  ;;  %v5363_v56 = vmul.f32 %v991_v59, %v5203_v41 }
 0x303   : > { %v5348_v14 = vpop.f32.mrf.mxu0  ;;  %v5358_v51 = vpop.permute.xlu1 %1131  ;;  %v1027_v41 = vmul.f32 %v993_v4, %v5210_v44 }
 0x304   : > { %6267 = vst [vmem:[#allocation54_spill] sm:$0xff] %v5348_v14  ;;  %6271 = vst [vmem:[#allocation58_spill] sm:$0xff] %v5358_v51  ;;  %vm1439_vm1 = vcmp.gt.f32.partialorder %v5363_v56, 0.0 }
 0x305   : > { %v5352_v61 = vpop.f32.mrf.mxu0  ;;  %vm1440_vm2 = vcmp.gt.f32.partialorder %v1027_v41, 0.0 }
 0x306   : > { %6269 = vst [vmem:[#allocation56_spill] sm:$0xff] %v5352_v61  ;;  %1766 = vrot.lane.b32.xlu1 %v5344_v58, %s4592_s5  ;;  %v995_v30 = vpop.permute.xlu0 %994 }
 0x307   : > { %v5356_v60 = vpop.f32.mrf.mxu0 }
 0x308   : > { %6270 = vst [vmem:[#allocation57_spill] sm:$0xff] %v5356_v60  ;;  %v5371_v58 = vpop.permute.xlu1 %1283 }
 0x309   : > { %v5360_v29 = vpop.f32.mrf.mxu0  ;;  %6275 = vst [vmem:[#allocation62_spill] sm:$0xff] %v5371_v58 }
 0x30a   : > { %6272 = vst [vmem:[#allocation59_spill] sm:$0xff] %v5360_v29  ;;  %1762 = vrot.lane.b32.xlu1 %v5348_v14, %s4592_s5  ;;  %v997_v33 = vpop.permute.xlu0 %996  ;;  %v6278_v14 = vmov 0  }
 0x30b   : > { %v5367_v31 = vpop.f32.mrf.mxu0  ;;  %v1451_v35 = vsel %vm1439_vm1, 1, %v6278_v14 }
 0x30c   : > { %6273 = vst [vmem:[#allocation60_spill] sm:$0xff] %v5367_v31 }
 0x30d   : > { %v5369_v32 = vpop.f32.mrf.mxu0  ;;  %v5382_v36 = vpop.permute.xlu1 %1857 }
 0x30e   : > { %6274 = vst [vmem:[#allocation61_spill] sm:$0xff] %v5369_v32  ;;  %1772 = vrot.lane.b32.xlu1 %v5352_v61, %s4592_s5  ;;  %6279 = vst [vmem:[#allocation65_spill] sm:$0xff] %v5382_v36  ;;  %v999_v38 = vpop.permute.xlu0 %998  ;;  %v1356_v61 = vmul.f32 %v5385_v37, %v1027_v41  ;;  %v1452_v36 = vsel %vm1440_vm2, 1, %v6278_v14  ;;  %v1029_v41 = vmul.f32 %v997_v33, %v5221_v48 }
 0x30f   : > { %v5376_v34 = vpop.f32.mrf.mxu0  ;;  %v5428_v48 = vmul.f32 %v999_v38, %v5227_v50  ;;  %v1734_v38 = vld [vmem:[#allocation2 + $0x10] sm:$0xff] }
 0x310   : > { %6276 = vst [vmem:[#allocation63_spill] sm:$0xff] %v5376_v34  ;;  %vm1442_vm3 = vcmp.gt.f32.partialorder %v1029_v41, 0.0 }
 0x311   : > { %v5379_v59 = vpop.f32.mrf.mxu0  ;;  %v5392_v2 = vpop.permute.xlu1 %1135  ;;  %vm1443_vm6 = vcmp.gt.f32.partialorder %v5428_v48, 0.0 }
 0x312   : > { %6277 = vst [vmem:[#allocation64_spill] sm:$0xff] %v5379_v59  ;;  %1464 = vperm.xlu1 %4201, %v1451_v35   ;;  %v1001_v4 = vpop.permute.xlu0 %1000  ;;  %v5399_v35 = vmul.f32 %v995_v30, %v5215_v46  ;;  %v6186_v30 = vsub.s32 0, %v5402_v54  ;;  %v1358_v46 = vmul.f32 %v5385_v37, %v1029_v41 }
 0x313   : > { %v5387_v39 = vpop.f32.mrf.mxu0 }
 0x314   : > { %6280 = vst [vmem:[#allocation66_spill] sm:$0xff] %v5387_v39  ;;  %v5425_v33 = vrot.slane %v4968_v19, %v6186_v30  ;;  %vm1441_vm5 = vcmp.gt.f32.partialorder %v5399_v35, 0.0 }
 0x315   : > { %v5390_v40 = vpop.f32.mrf.mxu0 }
 0x316   : > { %6281 = vst [vmem:[#allocation67_spill] sm:$0xff] %v5390_v40  ;;  %1788 = vrot.lane.b32.xlu0 %v5390_v40, %s4592_s5  ;;  %1374 = vperm.xlu1 %4201, %v1356_v61   ;;  %v1003_v58 = vpop.permute.xlu0 %1002  ;;  %v5406_v51 = vpop.permute.xlu1 %1223  ;;  %v1357_v61 = vmul.f32 %v5385_v37, %v5399_v35  ;;  %v1040_v40 = vsub.s32 2, %v5402_v54 }
 0x317   : > { %v5396_v44 = vpop.f32.mrf.mxu0 }
 0x318   : > { %6282 = vst [vmem:[#allocation68_spill] sm:$0xff] %v5396_v44 }
 0x31a   : > { %1784 = vrot.lane.b32.xlu0 %v5396_v44, %s4592_s5  ;;  %1467 = vperm.xlu1 %4201, %v1452_v36   ;;  %v5415_v45 = vpop.permute.xlu0 %1004  ;;  %v5418_v44 = vrot.slane %v4968_v19, %v1040_v40  ;;  %v1454_v40 = vsel %vm1442_vm3, 1, %v6278_v14 }
 0x31b   : > { %v1076_v36 = vpop.permute.xlu1 %1075 }
 0x31e   : > { %1303 = vperm.xlu0 %4200, %v4986_v28   ;;  %1379 = vperm.xlu1 %4201, %v1357_v61   ;;  %v1098_v61 = vmin.f32 %v5418_v44, %v1076_v36  ;;  %v5432_v26 = vpop.permute.xlu0 %1006 }
 0x320   : > { %v1140_v12 = vpop.permute.xlu1 %1139 }
 0x321   : > { %v1162_v41 = vmax.f32 %v5425_v33, %v1140_v12  ;;  %v1736_v12 = vld [vmem:[#allocation2 + $0x20] sm:$0xff] }
 0x322   : > { %4202 = vset.pattern.permute.xlu0 %v6278_v14  ;;  %1384 = vperm.xlu1 %4201, %v1358_v46   ;;  %v1031_v46 = vmul.f32 %v1001_v4, %v5234_v52  ;;  %v5444_v53 = vpop.permute.xlu0 %1008  ;;  %v1738_v52 = vld [vmem:[#allocation2 + $0x30] sm:$0xff] }
 0x323   : > { %1115 = vperm.xlu0 %4202, %v4961_v18   ;;  %v1359_v18 = vmul.f32 %v5385_v37, %v5428_v48  ;;  %v5439_v30 = vsub.f32 %v1098_v61, %v1162_v41 }
 0x324   : > { %v1360_v36 = vmul.f32 %v5385_v37, %v1031_v46  ;;  %vm1444_vm4 = vcmp.gt.f32.partialorder %v1031_v46, 0.0 }
 0x325   : > { %6284 = vst [vmem:[#allocation70_spill] sm:$0xff] %v5439_v30  ;;  %v5441_v50 = vpop.permute.xlu1 %1291  ;;  %v1456_v4 = vsel %vm1444_vm4, 1, %v6278_v14 }
 0x326   : > { %1473 = vperm.xlu1 %4201, %v1454_v40   ;;  %v5449_v40 = vmul.f32 %v1003_v58, %v5241_v55  ;;  %v5452_v61 = vpop.permute.xlu0 %1010 }
 0x327   : > { %1123 = vperm.xlu0 %4202, %v4972_v21  }
 0x328   : > { %v1361_v41 = vmul.f32 %v5385_v37, %v5449_v40  ;;  %vm1445_vm7 = vcmp.gt.f32.partialorder %v5449_v40, 0.0 }
 0x32a   : > { %1389 = vperm.xlu1 %4201, %v1359_v18   ;;  %v5446_v21 = vpop.permute.xlu1 %1867  ;;  %v5456_v46 = vpop.permute.xlu0 %1012 }
 0x32b   : > { %1852 = vperm.xlu0 %4202, %v1734_v38   ;;  %6285 = vst [vmem:[#allocation71_spill] sm:$0xff] %v5446_v21  ;;  %v1740_v38 = vld [vmem:[#allocation2 + $0x40] sm:$0xff]  ;;  %v1256_v21 = vsub.s32 1, %v5402_v54  ;;  %v1037_v40 = vmul.f32 %v5456_v46, %v5274_v10 }
 0x32d   : > { %vm1450_vm12 = vcmp.gt.f32.partialorder %v1037_v40, 0.0 }
 0x32e   : > { %1394 = vperm.xlu1 %4201, %v1360_v36   ;;  %v1144_v18 = vpop.permute.xlu1 %1143 }
 0x32f   : > { %1862 = vperm.xlu0 %4202, %v1736_v12   ;;  %v1741_v12 = vld [vmem:[#allocation2 + $0x48] sm:$0xff] }
 0x332   : > { %1479 = vperm.xlu1 %4201, %v1456_v4  }
 0x333   : > { %1872 = vperm.xlu0 %4202, %v1738_v52   ;;  %v1232_v36 = vpop.permute.xlu1 %1231  ;;  %v6286_v52 = vmov 3  }
 0x336   : > { %1399 = vperm.xlu1 %4201, %v1361_v41  }
 0x337   : > { %1882 = vperm.xlu0 %4202, %v1740_v38   ;;  %v5460_v55 = vpop.permute.xlu0 %1259  ;;  %v1355_v38 = vmul.f32 %v5385_v37, %v5363_v56 }
 0x338   : > { %v1084_v58 = vpop.permute.xlu1 %1083 }
 0x339   : > { %v1100_v41 = vmin.f32 %v5418_v44, %v1084_v58 }
 0x33a   : > { %1768 = vrot.lane.b32.xlu1 %v5356_v60, %s4592_s5  ;;  %v1192_v60 = vsub.s32 3, %v5402_v54 }
 0x33b   : > { %1887 = vperm.xlu0 %4202, %v1741_v12   ;;  %v5465_v4 = vpop.permute.xlu0 %1271 }
 0x33c   : > { %v5485_v56 = vrot.slane %v4968_v19, %v1192_v60 }
 0x33d   : > { %v1148_v12 = vpop.permute.xlu1 %1147 }
 0x33e   : > { %1774 = vrot.lane.b32.xlu1 %v5360_v29, %s4592_s5  ;;  %v1164_v29 = vmax.f32 %v5425_v33, %v1148_v12  ;;  %v1097_v12 = vmin.f32 %v5418_v44, %v5326_v43  ;;  %v1251_v43 = vmin.f32 %v5485_v56, %v1232_v36 }
 0x33f   : > { %4203 = vset.pattern.permute.xlu0 %v6286_v52  ;;  %v5476_v30 = vpop.permute.xlu0 %1279 }
 0x340   : > { %1199 = vperm.xlu0 %4203, %v4959_v17   ;;  %v1161_v17 = vmax.f32 %v5425_v33, %v5392_v2  ;;  %v5480_v58 = vsub.f32 %v1100_v41, %v1164_v29  ;;  %v1249_v29 = vmin.f32 %v5485_v56, %v5406_v51  ;;  %v1163_v41 = vmax.f32 %v5425_v33, %v1144_v18 }
 0x342   : > { %1770 = vrot.lane.b32.xlu1 %v5367_v31, %s4592_s5  ;;  %v5488_v31 = vrot.slane %v4968_v19, %v1256_v21  ;;  %v1173_v2 = vsub.f32 %v1097_v12, %v1161_v17  ;;  %v1099_v19 = vmin.f32 %v5418_v44, %v5330_v47 }
 0x343   : > { %v1288_v54 = vpop.permute.xlu0 %1287 }
 0x344   : > { %1369 = vperm.xlu0 %4203, %v1355_v38   ;;  %v1313_v60 = vmax.f32 %v5488_v31, %v1288_v54  ;;  %v1185_v38 = vmax.f32 %v1173_v2, 0.0  ;;  %v1175_v17 = vsub.f32 %v1099_v19, %v1163_v41  ;;  %v1455_v2 = vsel %vm1443_vm6, 1, %v6278_v14  ;;  %v5516_v41 = vpop.f32.mrf.mxu0 }
 0x345   : > { %6287 = vst [vmem:[#allocation72_spill] sm:$0xff] %v5516_v41  ;;  %v1033_v19 = vmul.f32 %v5415_v45, %v5247_v57  ;;  %v1366_v45 = vmul.f32 %v5385_v37, %v1037_v40 }
 0x346   : > { %1780 = vrot.lane.b32.xlu1 %v5369_v32, %s4592_s5  ;;  %v1325_v21 = vsub.f32 %v1249_v29, %v1313_v60  ;;  %v1187_v47 = vmax.f32 %v1175_v17, 0.0  ;;  %v5524_v48 = vpop.f32.mrf.mxu0  ;;  %v1457_v60 = vsel %vm1445_vm7, 1, %v6278_v14 }
 0x347   : > { %v1296_v35 = vpop.permute.xlu0 %1295  ;;  %6288 = vst [vmem:[#allocation73_spill] sm:$0xff] %v5524_v48  ;;  %vm1446_vm10 = vcmp.gt.f32.partialorder %v1033_v19, 0.0 }
 0x348   : > { %1219 = vperm.xlu0 %4203, %v4976_v23   ;;  %v1453_v23 = vsel %vm1441_vm5, 1, %v6278_v14  ;;  %v1337_v51 = vmax.f32 %v1325_v21, 0.0  ;;  %v1315_v18 = vmax.f32 %v5488_v31, %v1296_v35 }
 0x34a   : > { %1776 = vrot.lane.b32.xlu1 %v5376_v34, %s4592_s5  ;;  %v1327_v54 = vsub.f32 %v1251_v43, %v1315_v18  ;;  %v5507_v12 = vmul.f32 %v1337_v51, %v1185_v38  ;;  %v1036_v43 = vmul.f32 %v5452_v61, %v5270_v15  ;;  %v1034_v15 = vmul.f32 %v5432_v26, %v5253_v0  ;;  %v1743_v51 = vld [vmem:[#allocation2 + $0x58] sm:$0xff] }
 0x34c   : > { %1470 = vperm.xlu0 %4203, %v1453_v23   ;;  %v1339_v36 = vmax.f32 %v1327_v54, 0.0  ;;  %vm1449_vm9 = vcmp.gt.f32.partialorder %v1036_v43, 0.0  ;;  %v1363_v21 = vmul.f32 %v5385_v37, %v1034_v15  ;;  %vm1447_vm11 = vcmp.gt.f32.partialorder %v1034_v15, 0.0  ;;  %v1742_v23 = vld [vmem:[#allocation2 + $0x50] sm:$0xff] }
 0x34d   : > { %v1461_v57 = vsel %vm1449_vm9, 1, %v6278_v14  ;;  %v1459_v46 = vsel %vm1447_vm11, 1, %v6278_v14  ;;  %v1365_v38 = vmul.f32 %v5385_v37, %v1036_v43  ;;  %v1462_v54 = vsel %vm1450_vm12, 1, %v6278_v14 }
 0x34e   : > { %1782 = vrot.lane.b32.xlu1 %v5379_v59, %s4592_s5  ;;  %v5514_v29 = vmul.f32 %v1339_v36, %v1187_v47 }
 0x350   : > { %1227 = vperm.xlu0 %4203, %v4980_v25   ;;  %v1035_v25 = vmul.f32 %v5444_v53, %v5262_v62  ;;  %v1362_v62 = vmul.f32 %v5385_v37, %v1033_v19  ;;  %v5536_v53 = vpop.permute.xlu1 %1299 }
 0x352   : > { %1778 = vrot.lane.b32.xlu1 %v5387_v39, %s4592_s5  ;;  %vm1448_vm8 = vcmp.gt.f32.partialorder %v1035_v25, 0.0  ;;  %v1364_v0 = vmul.f32 %v5385_v37, %v1035_v25 }
 0x354   : > { %1476 = vperm.xlu0 %4203, %v1455_v2   ;;  %v5545_v61 = vpop.permute.xlu1 %1877 }
 0x356   : > { %1790 = vrot.lane.b32.xlu1 %v5516_v41, %s4592_s5 }
 0x358   : > { %1235 = vperm.xlu0 %4203, %v4984_v27   ;;  %v1460_v27 = vsel %vm1448_vm8, 1, %v6278_v14  ;;  %v5548_v10 = vpop.permute.xlu1 %1151 }
 0x35a   : > { %1786 = vrot.lane.b32.xlu1 %v5524_v48, %s4592_s5  ;;  %v1091_v48 = vmin.f32 %v5418_v44, %v5278_v11 }
 0x35c   : > { %1482 = vperm.xlu0 %4203, %v1457_v60  }
 0x35e   : > { %1239 = vperm.xlu1 %4201, %v4986_v28   ;;  %v1458_v28 = vsel %vm1446_vm10, 1, %v6278_v14 }
 0x360   : > { %1491 = vperm.xlu0 %4203, %v1460_v27  }
 0x362   : > { %1404 = vperm.xlu1 %4201, %v1362_v62  }
 0x364   : > { %1494 = vperm.xlu0 %4203, %v1461_v57  }
 0x366   : > { %1485 = vperm.xlu1 %4201, %v1458_v28  }
 0x368   : > { %1424 = vperm.xlu0 %4203, %v1366_v45  }
 0x36a   : > { %1409 = vperm.xlu1 %4201, %v1363_v21  }
 0x36e   : > { %1488 = vperm.xlu1 %4201, %v1459_v46  }
 0x370   : > { %v1765_v26 = vpop.permute.xlu1 %1764 }
 0x372   : > { %1414 = vperm.xlu1 %4201, %v1364_v0  }
 0x374   : > { %v1761_v35 = vpop.permute.xlu1 %1760 }
 0x376   : > { %4204 = vset.pattern.permute.xlu1 %v6278_v14 }
 0x377   : > { %1892 = vperm.xlu1 %4204, %v1742_v23  }
 0x378   : > { %v1767_v17 = vpop.permute.xlu1 %1766 }
 0x37b   : > { %4205 = vset.pattern.permute.xlu1 %v6286_v52 }
 0x37c   : > { %1419 = vperm.xlu1 %4205, %v1365_v38   ;;  %v1763_v18 = vpop.permute.xlu1 %1762  ;;  %v1242_v38 = vmin.f32 %v5485_v56, %v5265_v13  ;;  %v1244_v13 = vmin.f32 %v5485_v56, %v5300_v16  ;;  %v1093_v16 = vmin.f32 %v5418_v44, %v5318_v5 }
 0x380   : > { %4206 = vset.pattern.permute.xlu1 %v6278_v14  ;;  %v5558_v47 = vpop.permute.xlu1 %1772 }
 0x381   : > { %1897 = vperm.xlu1 %4206, %v1743_v51  }
 0x385   : > { %4207 = vset.pattern.permute.xlu1 %v6286_v52 }
 0x386   : > { %1497 = vperm.xlu1 %4207, %v1462_v54   ;;  %1808 = vxpose.xlu0.b32.start [1/16] (narrow) %v1761_v35, 8  ;;  %v1154_v35 = vmax.f32 %v5425_v33, %v5257_v1 }
 0x388   : > { %v5562_v36 = vpop.permute.xlu0 %1788 }
 0x38a   : > { %1809 = vxpose.xlu0.b32.cont [2/16] (narrow) %v1763_v18, 8 }
 0x38c   : > { %v5566_v25 = vpop.permute.xlu0 %1784 }
 0x38d   : > { %v5560_v37 = vpop.permute.xlu1 %1464 }
 0x38e   : > { %1810 = vxpose.xlu0.b32.cont [3/16] (narrow) %v1765_v26, 8  ;;  %v1306_v26 = vmax.f32 %v5488_v31, %v5460_v55  ;;  %v1155_v55 = vmax.f32 %v5425_v33, %v5284_v8  ;;  %v1157_v8 = vmax.f32 %v5425_v33, %v5307_v7  ;;  %vm1499_vm13 = vcmp.eq.s32.totalorder %v5560_v37, 1 }
 0x38f   : > { %v1094_v37 = vmin.f32 %v5418_v44, %v5316_v3 }
 0x390   : > { %v1318_v18 = vsub.f32 %v1242_v38, %v1306_v26  ;;  %v1309_v26 = vmax.f32 %v5488_v31, %v5465_v4  ;;  %v1167_v39 = vsub.f32 %v1091_v48, %v1155_v55  ;;  %v1169_v32 = vsub.f32 %v1093_v16, %v1157_v8 }
 0x391   : > { %v5564_v2 = vpop.permute.xlu1 %1374 }
 0x392   : > { %1811 = vxpose.xlu0.b32.cont [4/16] (narrow) %v1767_v17, 8  ;;  %v1090_v17 = vmin.f32 %v5418_v44, %v5314_v24  ;;  %v1308_v24 = vmax.f32 %v5488_v31, %v5304_v20  ;;  %v1330_v11 = vmax.f32 %v1318_v18, 0.0  ;;  %v1307_v20 = vmax.f32 %v5488_v31, %v5289_v9 }
 0x393   : > { %v1179_v34 = vmax.f32 %v1167_v39, 0.0 }
 0x394   : > { %v1166_v41 = vsub.f32 %v1090_v17, %v1154_v35 }
 0x395   : > { %v5568_v60 = vpop.permute.xlu1 %1467 }
 0x396   : > { %v1178_v4 = vmax.f32 %v1166_v41, 0.0  ;;  %vm1500_vm0 = vcmp.eq.s32.totalorder %v5568_v60, 1 }
 0x398   : > { %v1342_v7 = vmul.f32 %v1330_v11, %v1178_v4  ;;  %v6292_v11 = vld [vmem:[#allocation50_spill] sm:$0xff] }
 0x399   : > { %v5570_v52 = vpop.permute.xlu1 %1379  ;;  %v5572_v19 = vpop.permute.xlu0 %1303  ;;  %v1247_v8 = vmin.f32 %v5485_v56, %v6292_v11 }
 0x39d   : > { %v5574_v43 = vpop.permute.xlu1 %1384 }
 0x39e   : > { %v1116_v27 = vpop.permute.xlu0 %1115 }
 0x39f   : > { %v1156_v1 = vmax.f32 %v5425_v33, %v1116_v27  ;;  %v1245_v27 = vmin.f32 %v5485_v56, %v5310_v22 }
 0x3a1   : > { %v5576_v62 = vpop.permute.xlu1 %1473  ;;  %v1321_v18 = vsub.f32 %v1245_v27, %v1309_v26 }
 0x3a2   : > { %v5578_v40 = vpop.permute.xlu0 %1123  ;;  %vm1502_vm2 = vcmp.eq.s32.totalorder %v5576_v62, 1 }
 0x3a5   : > { %v5580_v57 = vpop.permute.xlu1 %1389 }
 0x3a6   : > { %v5582_v15 = vpop.permute.xlu0 %1852 }
 0x3a9   : > { %v5584_v28 = vpop.permute.xlu1 %1394 }
 0x3aa   : > { %v5586_v45 = vpop.permute.xlu0 %1862 }
 0x3ad   : > { %v5588_v21 = vpop.permute.xlu1 %1479 }
 0x3ae   : > { %v5590_v46 = vpop.permute.xlu0 %1872  ;;  %vm1504_vm11 = vcmp.eq.s32.totalorder %v5588_v21, 1 }
 0x3b1   : > { %v5592_v0 = vpop.permute.xlu1 %1399 }
 0x3b2   : > { %v5596_v23 = vpop.permute.xlu0 %1882 }
 0x3b5   : > { %v1769_v51 = vpop.permute.xlu1 %1768 }
 0x3b6   : > { %1812 = vxpose.xlu0.b32.cont [5/16] (narrow) %v1769_v51, 8  ;;  %v5604_v54 = vpop.permute.xlu0 %1887  ;;  %v1092_v51 = vmin.f32 %v5418_v44, %v5294_v6  ;;  %v1320_v6 = vsub.f32 %v1244_v13, %v1308_v24  ;;  %v1311_v13 = vmax.f32 %v5488_v31, %v5476_v30  ;;  %v1246_v24 = vmin.f32 %v5485_v56, %v5320_v63  ;;  %v6293_v63 = vld [vmem:[#allocation47_spill] sm:$0xff] }
 0x3b7   : > { %6289 = vst [vmem:[#allocation74_spill] sm:$0xff] %v5604_v54  ;;  %v1158_v54 = vmax.f32 %v5425_v33, %v5578_v40  ;;  %v1310_v40 = vmax.f32 %v5488_v31, %v5324_v42  ;;  %v1159_v30 = vmax.f32 %v5425_v33, %v5332_v49  ;;  %v1095_v42 = vmin.f32 %v5418_v44, %v6293_v63 }
 0x3b8   : > { %v1168_v17 = vsub.f32 %v1092_v51, %v1156_v1  ;;  %v1332_v41 = vmax.f32 %v1320_v6, 0.0  ;;  %v1333_v1 = vmax.f32 %v1321_v18, 0.0  ;;  %v1181_v51 = vmax.f32 %v1169_v32, 0.0 }
 0x3b9   : > { %v1775_v38 = vpop.permute.xlu1 %1774  ;;  %v1170_v3 = vsub.f32 %v1094_v37, %v1158_v54  ;;  %v1322_v49 = vsub.f32 %v1246_v24, %v1310_v40  ;;  %v1314_v18 = vmax.f32 %v5488_v31, %v5441_v50  ;;  %v6306_v40 = vld [vmem:[#allocation58_spill] sm:$0xff] }
 0x3ba   : > { %v1180_v5 = vmax.f32 %v1168_v17, 0.0 }
 0x3bb   : > { %v1200_v35 = vpop.permute.xlu0 %1199  ;;  %v1182_v62 = vmax.f32 %v1170_v3, 0.0  ;;  %v1334_v17 = vmax.f32 %v1322_v49, 0.0 }
 0x3bc   : > { %v1243_v59 = vmin.f32 %v5485_v56, %v1200_v35  ;;  %v1344_v16 = vmul.f32 %v1332_v41, %v1180_v5  ;;  %v1323_v35 = vsub.f32 %v1247_v8, %v1311_v13  ;;  %v1316_v8 = vmax.f32 %v5488_v31, %v5536_v53 }
 0x3bd   : > { %v1771_v48 = vpop.permute.xlu1 %1770  ;;  %v1317_v53 = vmax.f32 %v5488_v31, %v5572_v19 }
 0x3be   : > { %v1319_v55 = vsub.f32 %v1243_v59, %v1307_v20  ;;  %1813 = vxpose.xlu0.b32.cont [6/16] (narrow) %v1771_v48, 8  ;;  %vm1429_vm7 = vcmp.ge.f32.partialorder %v1344_v16, %v5570_v52  ;;  %v1335_v20 = vmax.f32 %v1323_v35, 0.0  ;;  %v1346_v52 = vmul.f32 %v1334_v17, %v1182_v62  ;;  %v6308_v35 = vld [vmem:[#allocation51_spill] sm:$0xff] }
 0x3bf   : > { %v1370_v22 = vpop.permute.xlu0 %1369 }
 0x3c0   : > { %v1331_v9 = vmax.f32 %v1319_v55, 0.0  ;;  %vm1427_vm14 = vcmp.ge.f32.partialorder %v1342_v7, %v1370_v22 }
 0x3c1   : > { %vm5633_vm15 = vmand %vm1427_vm14, %vm1499_vm13  ;;  %v1781_v39 = vpop.permute.xlu1 %1780  ;;  %vm1431_vm13 = vcmp.ge.f32.partialorder %v1346_v52, %v5580_v57 }
 0x3c2   : > { %1814 = vxpose.xlu0.b32.cont [7/16] (narrow) %v5558_v47, 8  ;;  %v1343_v26 = vmul.f32 %v1331_v9, %v1179_v34  ;;  %v1345_v47 = vmul.f32 %v1333_v1, %v1181_v51  ;;  %v6300_v9 = vld [vmem:[#allocation70_spill] sm:$0xff] }
 0x3c3   : > { %v1220_v27 = vpop.permute.xlu0 %1219  ;;  %v1186_v41 = vmax.f32 %v6300_v9, 0.0  ;;  %v6307_v51 = vld [vmem:[#allocation62_spill] sm:$0xff] }
 0x3c4   : > { %vm1428_vm1 = vcmp.ge.f32.partialorder %v1343_v26, %v5564_v2  ;;  %v1171_v2 = vsub.f32 %v1095_v42, %v1159_v30  ;;  %vm1430_vm5 = vcmp.ge.f32.partialorder %v1345_v47, %v5574_v43  ;;  %v1248_v13 = vmin.f32 %v5485_v56, %v1220_v27 }
 0x3c5   : > { %v1777_v32 = vpop.permute.xlu1 %1776  ;;  %vm5653_vm3 = vmand %vm1428_vm1, %vm1500_vm0  ;;  %v1160_v26 = vmax.f32 %v5425_v33, %v6306_v40  ;;  %v1312_v30 = vmax.f32 %v5488_v31, %v6307_v51  ;;  %v1101_v47 = vmin.f32 %v5418_v44, %v6308_v35  ;;  %v1916_v40 = vstv %s4966_s15 }
 0x3c6   : > { %1815 = vxpose.xlu0.b32.cont [8/16] (narrow) %v1775_v38, 8  ;;  %vm5662_vm6 = vmand %vm1430_vm5, %vm1502_vm2  ;;  %v1183_v43 = vmax.f32 %v1171_v2, 0.0 }
 0x3c7   : > { %v1471_v60 = vpop.permute.xlu0 %1470  ;;  %v1324_v3 = vsub.f32 %v1248_v13, %v1312_v30  ;;  %v4593_v13 = vmov 1.0   ;;  %v6324_v30 = vld [vmem:[#allocation48_spill] sm:$0xff] }
 0x3c8   : > { %vm1501_vm8 = vcmp.eq.s32.totalorder %v1471_v60, 1  ;;  %v1347_v55 = vmul.f32 %v1335_v20, %v1183_v43  ;;  %3809 = vmatprep.subr.mxu1 %v4593_v13 }
 0x3c9   : > { %vm5667_vm9 = vmand %vm1429_vm7, %vm1501_vm8  ;;  %v1783_v4 = vpop.permute.xlu1 %1782  ;;  %v1336_v2 = vmax.f32 %v1324_v3, 0.0 }
 0x3ca   : > { %1816 = vxpose.xlu0.b32.cont [9/16] (narrow) %v1777_v32, 8  ;;  %vm1432_vm12 = vcmp.ge.f32.partialorder %v1347_v55, %v5584_v28  ;;  %v6305_v28 = vld [vmem:[#allocation55_spill] sm:$0xff]  ;;  %v1188_v32 = vmax.f32 %v5480_v58, 0.0 }
 0x3cb   : > { %v1228_v6 = vpop.permute.xlu0 %1227  ;;  %vm5682_vm14 = vmand %vm1432_vm12, %vm1504_vm11  ;;  %v1096_v24 = vmin.f32 %v5418_v44, %v6305_v28 }
 0x3cc   : > { %v1250_v48 = vmin.f32 %v5485_v56, %v1228_v6 }
 0x3cd   : > { %v1779_v7 = vpop.permute.xlu1 %1778  ;;  %v1172_v42 = vsub.f32 %v1096_v24, %v1160_v26  ;;  %v6323_v26 = vld [vmem:[#allocation46_spill] sm:$0xff] }
 0x3ce   : > { %v1326_v22 = vsub.f32 %v1250_v48, %v1314_v18  ;;  %1817 = vxpose.xlu0.b32.cont [10/16] (narrow) %v1779_v7, 8 }
 0x3cf   : > { %v1477_v5 = vpop.permute.xlu0 %1476 }
 0x3d0   : > { %v1338_v50 = vmax.f32 %v1326_v22, 0.0  ;;  %vm1503_vm0 = vcmp.eq.s32.totalorder %v1477_v5, 1 }
 0x3d1   : > { %vm5687_vm1 = vmand %vm1431_vm13, %vm1503_vm0  ;;  %v1791_v37 = vpop.permute.xlu1 %1790 }
 0x3d2   : > { %1818 = vxpose.xlu0.b32.cont [11/16] (narrow) %v1781_v39, 8  ;;  %v1350_v57 = vmul.f32 %v1338_v50, %v1186_v41  ;;  %v1165_v39 = vmax.f32 %v5425_v33, %v5548_v10  ;;  %v1184_v10 = vmax.f32 %v1172_v42, 0.0  ;;  %v6339_v50 = vld [vmem:[#allocation40_spill] sm:$0xff] }
 0x3d3   : > { %v1236_v11 = vpop.permute.xlu0 %1235 }
 0x3d4   : > { %v1252_v27 = vmin.f32 %v5485_v56, %v1236_v11  ;;  %v1177_v62 = vsub.f32 %v1101_v47, %v1165_v39  ;;  %v1348_v43 = vmul.f32 %v1336_v2, %v1184_v10  ;;  %v6326_v39 = vld [vmem:[#allocation71_spill] sm:$0xff] }
 0x3d5   : > { %v1787_v16 = vpop.permute.xlu1 %1786 }
 0x3d6   : > { %v1328_v63 = vsub.f32 %v1252_v27, %v1316_v8  ;;  %1819 = vxpose.xlu0.b32.cont [12/16] (narrow) %v1783_v4, 8  ;;  %v1189_v44 = vmax.f32 %v1177_v62, 0.0  ;;  %vm1433_vm7 = vcmp.ge.f32.partialorder %v1348_v43, %v5592_v0  ;;  %v6325_v27 = vld [vmem:[#allocation65_spill] sm:$0xff] }
 0x3d7   : > { %v1483_v4 = vpop.permute.xlu0 %1482 }
 0x3d8   : > { %v1340_v49 = vmax.f32 %v1328_v63, 0.0  ;;  %vm1505_vm5 = vcmp.eq.s32.totalorder %v1483_v4, 1  ;;  %v6328_v4 = vld [vmem:[#allocation74_spill] sm:$0xff] }
 0x3d9   : > { %v1240_v60 = vpop.permute.xlu1 %1239  ;;  %vm5714_vm8 = vmand %vm1433_vm7, %vm1505_vm5 }
 0x3da   : > { %v1253_v20 = vmin.f32 %v5485_v56, %v1240_v60  ;;  %1820 = vxpose.xlu0.b32.cont [13/16] (narrow) %v5566_v25, 8  ;;  %v1352_v33 = vmul.f32 %v1340_v49, %v1188_v32  ;;  %v6311_v56 = vmov 0 }
 0x3db   : > { %v1492_v0 = vpop.permute.xlu0 %1491 }
 0x3dc   : > { %v1329_v17 = vsub.f32 %v1253_v20, %v1317_v53  ;;  %vm1508_vm2 = vcmp.eq.s32.totalorder %v1492_v0, 1 }
 0x3dd   : > { %v1405_v6 = vpop.permute.xlu1 %1404 }
 0x3de   : > { %v1341_v18 = vmax.f32 %v1329_v17, 0.0  ;;  %1821 = vxpose.xlu0.b32.cont [14/16] (narrow) %v1787_v16, 8  ;;  %vm1434_vm11 = vcmp.ge.f32.partialorder %v5507_v12, %v1405_v6 }
 0x3df   : > { %v1495_v22 = vpop.permute.xlu0 %1494 }
 0x3e0   : > { %v1353_v58 = vmul.f32 %v1341_v18, %v1189_v44 }
 0x3e1   : > { %v1486_v52 = vpop.permute.xlu1 %1485 }
 0x3e2   : > { %vm1506_vm12 = vcmp.eq.s32.totalorder %v1486_v52, 1  ;;  %1822 = vxpose.xlu0.b32.cont [15/16] (narrow) %v5562_v36, 8  ;;  %v6334_v36 = vld [vmem:[#allocation45_spill] sm:$0xff] }
 0x3e3   : > { %vm5720_vm13 = vmand %vm1434_vm11, %vm1506_vm12  ;;  %v1425_v9 = vpop.permute.xlu0 %1424 }
 0x3e4   : > { %v6312_v56 = vsel %vm5720_vm13, 4294967295, %v6311_v56  ;;  %vm1438_vm4 = vcmp.ge.f32.partialorder %v1353_v58, %v1425_v9 }
 0x3e5   : > { %v1410_v25 = vpop.permute.xlu1 %1409 }
 0x3e6   : > { %1823 = vxpose.xlu0.b32.end [16/16] (narrow) %v1791_v37, 8  ;;  %vm1435_vm7 = vcmp.ge.f32.partialorder %v1350_v57, %v1410_v25  ;;  %v6321_v57 = vld [vmem:[#allocation69_spill] sm:$0xff] }
 0x3e7   : > { %v6322_v28 = vsub.s32 0, %v6321_v57  ;;  %v6340_v57 = vld [vmem:[#allocation39_spill] sm:$0xff] }
 0x3e9   : > { %v1489_v19 = vpop.permute.xlu1 %1488 }
 0x3ea   : > { %vm1507_vm5 = vcmp.eq.s32.totalorder %v1489_v19, 1 }
 0x3eb   : > { %vm5728_vm10 = vmand %vm1435_vm7, %vm1507_vm5  ;;  %vm1509_vm7 = vcmp.eq.s32.totalorder %v1495_v22, 1  ;;  %v6336_v22 = vld [vmem:[#allocation43_spill] sm:$0xff] }
 0x3ed   : > { %v1415_v48 = vpop.permute.xlu1 %1414 }
 0x3ee   : > { %vm1436_vm11 = vcmp.ge.f32.partialorder %v5514_v29, %v1415_v48  ;;  %v6338_v29 = vld [vmem:[#allocation41_spill] sm:$0xff] }
 0x3ef   : > { %vm5733_vm12 = vmand %vm1436_vm11, %vm1508_vm2 }
 0x3f2   : > { %v1893_v55 = vpop.permute.xlu1 %1892 }
 0x3f7   : > { %v1420_v7 = vpop.permute.xlu1 %1419 }
 0x3f8   : > { %vm1437_vm5 = vcmp.ge.f32.partialorder %v1352_v33, %v1420_v7 }
 0x3f9   : > { %vm5741_vm13 = vmand %vm1437_vm5, %vm1509_vm7 }
 0x3fa   : > { %vm6329_vm5 = vmpackc.low %vm5662_vm6, %vm5667_vm9 }
 0x3fc   : > { %v1898_v5 = vpop.permute.xlu1 %1897 }
 0x401   : > { %v1498_v41 = vpop.permute.xlu1 %1497 }
 0x402   : > { %vm1510_vm2 = vcmp.eq.s32.totalorder %v1498_v41, 1 }
 0x403   : > { %vm5745_vm11 = vmand %vm1438_vm4, %vm1510_vm2 }
 0x404   : > { %vm3546_vm0 = vmpackc.low %vm5745_vm11, %vm5741_vm13 }
 0x405   : > { %vm6327_vm4 = vmpackc.low %vm5653_vm3, %vm5633_vm15 }
 0x40f   : > { %4208 = vset.pattern.permute.xlu0 %v6278_v14 }
 0x426   : > { %v1824_v37 = vpop.trf.xlu0 }
 0x427   : > { %v1903_v24 = vrot.slane %v1824_v37, %v6322_v28  ;;  %v6341_v28 = vld [vmem:[#allocation38_spill] sm:$0xff] }
 0x429   : > { %v1904_v51 = vadd.f32 %v1903_v24, %v6323_v26  ;;  %v1905_v11 = vadd.f32 %v1903_v24, %v6324_v30  ;;  %v1906_v8 = vadd.f32 %v1903_v24, %v5582_v15  ;;  %v1907_v3 = vadd.f32 %v1903_v24, %v6325_v27  ;;  %v6342_v26 = vld [vmem:[#allocation37_spill] sm:$0xff]  ;;  %v6345_v27 = vld [vmem:[#allocation34_spill] sm:$0xff] }
 0x42a   : > { %v1908_v16 = vadd.f32 %v1903_v24, %v5586_v45  ;;  %v1909_v63 = vadd.f32 %v1903_v24, %v6326_v39  ;;  %v1910_v42 = vadd.f32 %v1903_v24, %v5590_v46  ;;  %v1911_v46 = vadd.f32 %v1903_v24, %v5545_v61 }
 0x42b   : > { %v1917_v35 = vadd.f32 %v1916_v40, %v1904_v51  ;;  %v1918_v47 = vadd.f32 %v1916_v40, %v1905_v11  ;;  %v1919_v32 = vadd.f32 %v1916_v40, %v1906_v8  ;;  %v1920_v49 = vadd.f32 %v1916_v40, %v1907_v3  ;;  %v6343_v51 = vld [vmem:[#allocation36_spill] sm:$0xff]  ;;  %v6344_v8 = vld [vmem:[#allocation35_spill] sm:$0xff] }
 0x42c   : > { %v1921_v2 = vadd.f32 %v1916_v40, %v1908_v16  ;;  %v1922_v60 = vadd.f32 %v1916_v40, %v1909_v63  ;;  %v1923_v20 = vadd.f32 %v1916_v40, %v1910_v42  ;;  %v1912_v10 = vadd.f32 %v1903_v24, %v5596_v23 }
 0x42d   : > { %v5767_v62 = vsel %vm5633_vm15, %v1917_v35, 0.0  ;;  %v3532_v53 = vpack.c.bf16 %v1918_v47, %v1917_v35  ;;  %v3535_v15 = vpack.c.bf16 %v1920_v49, %v1919_v32  ;;  %v5772_v45 = vsel %vm5667_vm9, %v1919_v32, 0.0  ;;  %vm6330_vm15 = vmpackc.low %vm5682_vm14, %vm5687_vm1 }
 0x42e   : > { %2125 = vxpose.xlu1.b32.start [1/12] (short) %v5767_v62, 128  ;;  %v3538_v33 = vpack.c.bf16 %v1922_v60, %v1921_v2  ;;  %v1913_v17 = vadd.f32 %v1903_v24, %v6328_v4  ;;  %v5784_v43 = vsel %vm5687_vm1, %v1921_v2, 0.0  ;;  %v5793_v61 = vsel %vm5653_vm3, %v1918_v47, 0.0  ;;  %vm6333_vm1 = vmpackc.low %vm5733_vm12, %vm5728_vm10 }
 0x42f   : > { %3797 = vmatprep.mubr.msk.bf16.mxu1 %vm6327_vm4, %v3532_v53  ;;  %v1925_v23 = vadd.f32 %v1916_v40, %v1912_v10  ;;  %v5802_v59 = vsel %vm5714_vm8, %v1923_v20, 0.0  ;;  %v1924_v38 = vadd.f32 %v1916_v40, %v1911_v46  ;;  %v1914_v44 = vadd.f32 %v1903_v24, %v1893_v55  ;;  %v6335_v55 = vld [vmem:[#allocation44_spill] sm:$0xff] }
 0x430   : > { %3798 = vmatmul.mubr.msk.bf16.vlgmr.msra.gmra.mxu1 %vm6329_vm5, %v3535_v15  ;;  %v1926_v34 = vadd.f32 %v1916_v40, %v1913_v17  ;;  %v1915_v18 = vadd.f32 %v1903_v24, %v1898_v5  ;;  %vm6331_vm3 = vnez %v6312_v56  ;;  %v5830_v52 = vsel %vm5662_vm6, %v1920_v49, 0.0  ;;  %v6337_v5 = vld [vmem:[#allocation42_spill] sm:$0xff]  ;;  %v2010_v17 = vld [vmem:[#allocation4 + $0x58] sm:$0xff] }
 0x431   : > { %3801 = vmatprep.mubr.msk.bf16.mxu1 %vm6330_vm15, %v3538_v33  ;;  %3810 = vmatpush3.msra.mxu1 %v4593_v13  ;;  %v5809_v6 = vsel %vm5728_vm10, %v1925_v23, 0.0  ;;  %v3541_v21 = vpack.c.bf16 %v1924_v38, %v1923_v20  ;;  %vm6332_vm9 = vmpackc.low %vm6331_vm3, %vm5714_vm8  ;;  %v1927_v25 = vadd.f32 %v1916_v40, %v1914_v44  ;;  %v5849_v54 = vsel %vm5682_vm14, %v1922_v60, 0.0 }
 0x432   : > { %2126 = vxpose.xlu1.b32.cont [2/12] (short) %v5793_v61, 128  ;;  %3811 = vmatprep.subr.mxu1 %v4593_v13  ;;  %v3544_v58 = vpack.c.bf16 %v1926_v34, %v1925_v23  ;;  %v1928_v31 = vadd.f32 %v1916_v40, %v1915_v18  ;;  %v5862_v1 = vsel %vm6331_vm3, %v1924_v38, 0.0  ;;  %v5868_v0 = vsel %vm5733_vm12, %v1926_v34, 0.0  ;;  %v2008_v34 = vld [vmem:[#allocation4 + $0x30] sm:$0xff]  ;;  %v2011_v18 = vld [vmem:[#allocation4 + $0x18] sm:$0xff] }
 0x433   : > { %3812 = vmatpush3.msra.mxu1 %v4593_v13  ;;  %v5873_v48 = vsel %vm5741_vm13, %v1927_v25, 0.0  ;;  %v1941_v12 = vpack.c.bf16 %v5793_v61, %v5767_v62  ;;  %v3570_v7 = vcombine.low %v6335_v55, %v6334_v36  ;;  %v3569_v9 = vcombine.low %v6337_v5, %v6336_v22  ;;  %v2014_v55 = vld [vmem:[#allocation4 + $0x8] sm:$0xff] }
 0x434   : > { %3813 = vmatprep.subr.mxu1 %v4593_v13  ;;  %v3547_v19 = vpack.c.bf16 %v1928_v31, %v1927_v25  ;;  %v5878_v56 = vsel %vm5745_vm11, %v1928_v31, 0.0  ;;  %v1942_v41 = vpack.c.bf16 %v5830_v52, %v5772_v45  ;;  %v1943_v37 = vpack.c.bf16 %v5849_v54, %v5784_v43 }
 0x435   : > { %3814 = vmatpush3.msra.mxu1 %v4593_v13  ;;  %3857 = vmatprep.subr.bf16.mxu0 %v3570_v7  ;;  %v3567_v24 = vcombine.low %v6341_v28, %v6340_v57  ;;  %v1944_v40 = vpack.c.bf16 %v5862_v1, %v5802_v59  ;;  %v3566_v30 = vcombine.low %v6343_v51, %v6342_v26  ;;  %vm2157_vm6 = vcmask 785408   ;;  %v2013_v28 = vld [vmem:[#allocation4 + $0x20] sm:$0xff]  ;;  %v2018_v26 = vld [vmem:[#allocation4 + $0x10] sm:$0xff] }
 0x436   : > { %2127 = vxpose.xlu1.b32.cont [3/12] (short) %v5772_v45, 128  ;;  %3815 = vmatprep.subr.mxu1 %v4593_v13  ;;  %v1945_v11 = vpack.c.bf16 %v5868_v0, %v5809_v6  ;;  %v3565_v3 = vcombine.low %v6345_v27, %v6344_v8  ;;  %v1946_v16 = vpack.c.bf16 %v5878_v56, %v5873_v48  ;;  %v2016_v8 = vld [vmem:[#allocation4 + $0x28] sm:$0xff] }
 0x437   : > { %3816 = vmatpush3.msra.mxu1 %v4593_v13  ;;  %3858 = vmatpush3.bf16.msra.mxu0 %v3570_v7 }
 0x438   : > { %3802 = vmatmul.mubr.msk.bf16.gmra.mxu1 %vm6332_vm9, %v3541_v21  ;;  %3817 = vmatprep.subr.mxu1 %v4593_v13 }
 0x439   : > { %3805 = vmatprep.mubr.msk.bf16.mxu1 %vm6333_vm1, %v3544_v58  ;;  %3818 = vmatpush3.msra.mxu1 %v4593_v13 }
 0x43a   : > { %2128 = vxpose.xlu1.b32.cont [4/12] (short) %v5830_v52, 128  ;;  %3819 = vmatprep.subr.mxu1 %v4593_v13 }
 0x43b   : > { %3820 = vmatpush3.msra.mxu1 %v4593_v13  ;;  %3859 = vmatprep.subr.bf16.mxu0 %v3569_v9 }
 0x43c   : > { %3821 = vmatprep.subr.mxu1 %v4593_v13  ;;  %3860 = vmatpush3.bf16.msra.mxu0 %v3569_v9  ;;  %v2012_v9 = vld [vmem:[#allocation4 + $0x50] sm:$0xff] }
 0x43d   : > { %3822 = vmatpush3.msra.mxu1 %v4593_v13 }
 0x43e   : > { %2129 = vxpose.xlu1.b32.cont [5/12] (short) %v5784_v43, 128  ;;  %3823 = vmatprep.subr.mxu1 %v4593_v13 }
 0x43f   : > { %3824 = vmatpush3.msra.mxu1 %v4593_v13 }
 0x440   : > { %3806 = vmatmul.mubr.msk.bf16.gmra.mxu1 %vm3546_vm0, %v3547_v19  ;;  %3825 = vmatprep.subr.mxu1 %v4593_v13  ;;  %v2009_v19 = vld [vmem:[#allocation4] sm:$0xff] }
 0x441   : > { %3826 = vmatpush3.msra.mxu1 %v4593_v13 }
 0x442   : > { %2130 = vxpose.xlu1.b32.cont [6/12] (short) %v5849_v54, 128  ;;  %3827 = vmatprep.subr.mxu1 %v4593_v13 }
 0x443   : > { %3828 = vmatpush3.msra.mxu1 %v4593_v13 }
 0x444   : > { %3829 = vmatprep.subr.mxu1 %v4593_v13 }
 0x445   : > { %3830 = vmatpush3.msra.mxu1 %v4593_v13 }
 0x446   : > { %2131 = vxpose.xlu1.b32.cont [7/12] (short) %v5802_v59, 128  ;;  %3831 = vmatprep.subr.mxu1 %v4593_v13 }
 0x447   : > { %3832 = vmatpush3.msra.mxu1 %v4593_v13  ;;  %v3568_v13 = vcombine.low %v6339_v50, %v6338_v29  ;;  %v2015_v50 = vld [vmem:[#allocation4 + $0x38] sm:$0xff] }
 0x449   : > { %3861 = vmatprep.subr.bf16.mxu0 %v3568_v13 }
 0x44a   : > { %2132 = vxpose.xlu1.b32.cont [8/12] (short) %v5862_v1, 128  ;;  %3862 = vmatpush3.bf16.msra.mxu0 %v3568_v13 }
 0x44b   : > { %3863 = vmatprep.subr.bf16.mxu0 %v3567_v24 }
 0x44e   : > { %2133 = vxpose.xlu1.b32.cont [9/12] (short) %v5809_v6, 128  ;;  %3864 = vmatpush3.bf16.msra.mxu0 %v3567_v24 }
 0x44f   : > { %3865 = vmatprep.subr.bf16.mxu0 %v3566_v30 }
 0x452   : > { %2134 = vxpose.xlu1.b32.cont [10/12] (short) %v5868_v0, 128  ;;  %3866 = vmatpush3.bf16.msra.mxu0 %v3566_v30 }
 0x453   : > { %3867 = vmatprep.subr.bf16.mxu0 %v3565_v3 }
 0x456   : > { %2135 = vxpose.xlu1.b32.cont [11/12] (short) %v5873_v48, 128  ;;  %3868 = vmatpush3.bf16.msra.mxu0 %v3565_v3 }
 0x45a   : > { %2136 = vxpose.xlu1.b32.end [12/12] (short) %v5878_v56, 128 }
 0x488   : > { %2399 = vxpose.xlu1.c.b16.start [1/6] (short) %v1941_v12, 128 }
 0x48c   : > { %2400 = vxpose.xlu1.c.b16.cont [2/6] (short) %v1942_v41, 128 }
 0x490   : > { %2401 = vxpose.xlu1.c.b16.cont [3/6] (short) %v1943_v37, 128 }
 0x494   : > { %2402 = vxpose.xlu1.c.b16.cont [4/6] (short) %v1944_v40, 128 }
 0x498   : > { %2403 = vxpose.xlu1.c.b16.cont [5/6] (short) %v1945_v11, 128 }
 0x49c   : > { %2404 = vxpose.xlu1.c.b16.end [6/6] (short) %v1946_v16, 128  ;;  %v2019_v16 = vld [vmem:[#allocation4 + $0x40] sm:$0xff] }
 0x4a0   : > { %4209 = vset.pattern.permute.xlu1 %v6278_v14 }
 0x4aa   : > { %v2141_v39 = vpop.trf.xlu1 }
 0x4ab   : > { %3833 = vmatprep.mubr.msk.f32.mxu1 %vm2157_vm6, %v2141_v39 }
 0x4ae   : > { %v2142_v63 = vpop.trf.xlu1 }
 0x4af   : > { %3834 = vmatmul.mubr.msk.f32.vlgmr.msra.gmra.mxu1 %vm2157_vm6, %v2142_v63 }
 0x4b2   : > { %v2143_v42 = vpop.trf.xlu1 }
 0x4b3   : > { %3836 = vmatprep.mubr.msk.f32.mxu1 %vm2157_vm6, %v2143_v42 }
 0x4b6   : > { %v2144_v35 = vpop.trf.xlu1 }
 0x4b7   : > { %3837 = vmatmul.mubr.msk.f32.gmra.mxu1 %vm2157_vm6, %v2144_v35  ;;  %v2017_v35 = vld [vmem:[#allocation4 + $0x48] sm:$0xff] }
 0x4ba   : > { %v2145_v47 = vpop.trf.xlu1 }
 0x4bb   : > { %3839 = vmatprep.mubr.msk.f32.mxu1 %vm2157_vm6, %v2145_v47 }
 0x4be   : > { %v2146_v32 = vpop.trf.xlu1 }
 0x4bf   : > { %3840 = vmatmul.mubr.msk.f32.gmra.mxu1 %vm2157_vm6, %v2146_v32 }
 0x4c2   : > { %v2147_v14 = vpop.trf.xlu1 }
 0x4c3   : > { %3842 = vmatprep.mubr.msk.f32.mxu1 %vm2157_vm6, %v2147_v14 }
 0x4c6   : > { %v2148_v49 = vpop.trf.xlu1 }
 0x4c7   : > { %3843 = vmatmul.mubr.msk.f32.gmra.mxu1 %vm2157_vm6, %v2148_v49 }
 0x4ca   : > { %v2149_v2 = vpop.trf.xlu1 }
 0x4cb   : > { %3845 = vmatprep.mubr.msk.f32.mxu1 %vm2157_vm6, %v2149_v2  ;;  %v4218_v2 = vld [vmem:[#allocation10 + $0x38] sm:$0xff]  }
 0x4cc   : > { %3885 = vmatprep.subr.bf16.mxu0 %v4218_v2  ;;  %3961 = vmatprep.subr.bf16.mxu1 %v4218_v2 }
 0x4cd   : > { %3969 = vmatpush3.bf16.msra.mxu1 %v4218_v2 }
 0x4ce   : > { %v2150_v60 = vpop.trf.xlu1 }
 0x4cf   : > { %3846 = vmatmul.mubr.msk.f32.gmra.mxu1 %vm2157_vm6, %v2150_v60  ;;  %v4219_v60 = vld [vmem:[#allocation10 + $0x30] sm:$0xff]  }
 0x4d0   : > { %3962 = vmatprep.subr.bf16.mxu1 %v4219_v60 }
 0x4d1   : > { %3970 = vmatpush3.bf16.msra.mxu1 %v4219_v60 }
 0x4d2   : > { %v2151_v53 = vpop.trf.xlu1 }
 0x4d3   : > { %3848 = vmatprep.mubr.msk.f32.mxu1 %vm2157_vm6, %v2151_v53 }
 0x4d6   : > { %v2152_v15 = vpop.trf.xlu1 }
 0x4d7   : > { %3849 = vmatmul.mubr.msk.f32.gmra.mxu1 %vm2157_vm6, %v2152_v15 }
 0x4da   : > { %v2153_v20 = vpop.trf.xlu1 }
 0x4db   : > { %3851 = vmatprep.mubr.msk.f32.mxu1 %vm2157_vm6, %v2153_v20 }
 0x4de   : > { %v2154_v46 = vpop.trf.xlu1 }
 0x4df   : > { %3852 = vmatmul.mubr.msk.f32.gmra.mxu1 %vm2157_vm6, %v2154_v46  ;;  %v4220_v46 = vld [vmem:[#allocation10 + $0x28] sm:$0xff]  }
 0x4e0   : > { %3963 = vmatprep.subr.bf16.mxu1 %v4220_v46 }
 0x4e1   : > { %3971 = vmatpush3.bf16.msra.mxu1 %v4220_v46 }
 0x4e2   : > { %v2155_v33 = vpop.trf.xlu1 }
 0x4e3   : > { %3854 = vmatprep.mubr.msk.f32.mxu1 %vm2157_vm6, %v2155_v33  ;;  %v4221_v33 = vld [vmem:[#allocation10 + $0x20] sm:$0xff]  }
 0x4e4   : > { %3964 = vmatprep.subr.bf16.mxu1 %v4221_v33 }
 0x4e5   : > { %3972 = vmatpush3.bf16.msra.mxu1 %v4221_v33 }
 0x4e6   : > { %v2156_v10 = vpop.trf.xlu1 }
 0x4e7   : > { %3855 = vmatmul.mubr.msk.f32.gmra.mxu1 %vm2157_vm6, %v2156_v10 }
 0x4ea   : > { %v2407_v4 = vpop.trf.xlu1 }
 0x4eb   : > { %3869 = vmatprep.mubr.msk.bf16.mxu0 %vm2157_vm6, %v2407_v4  ;;  %v4222_v4 = vld [vmem:[#allocation10 + $0x18] sm:$0xff]  }
 0x4ec   : > { %3965 = vmatprep.subr.bf16.mxu1 %v4222_v4 }
 0x4ed   : > { %3973 = vmatpush3.bf16.msra.mxu1 %v4222_v4 }
 0x4ee   : > { %v2408_v23 = vpop.trf.xlu1 }
 0x4ef   : > { %3870 = vmatmul.mubr.msk.bf16.vlgmr.msra.gmra.mxu0 %vm2157_vm6, %v2408_v23 }
 0x4f0   : > { %v3799_v38 = vpop.f32.mrf.mxu1  ;;  %3886 = vmatpush3.bf16.msra.mxu0 %v4218_v2 }
 0x4f1   : > { %v2103_v21 = vadd.f32 %v3799_v38, %v2010_v17  ;;  %3887 = vmatprep.subr.bf16.mxu0 %v4219_v60 }
 0x4f2   : > { %v2054_v44 = vpop.f32.mrf.mxu1  ;;  %v2409_v58 = vpop.trf.xlu1 }
 0x4f3   : > { %2115 = vst [vmem:[#allocation4 + $0x58] sm:$0xff] %v2103_v21  ;;  %v2101_v25 = vadd.f32 %v2054_v44, %v2008_v34  ;;  %3873 = vmatprep.mubr.msk.bf16.mxu0 %vm2157_vm6, %v2409_v58  ;;  %v4223_v21 = vld [vmem:[#allocation10 + $0x10] sm:$0xff]  }
 0x4f4   : > { %v3800_v31 = vpop.f32.mrf.mxu1  ;;  %3888 = vmatpush3.bf16.msra.mxu0 %v4219_v60  ;;  %3966 = vmatprep.subr.bf16.mxu1 %v4223_v21 }
 0x4f5   : > { %2113 = vst [vmem:[#allocation4 + $0x30] sm:$0xff] %v2101_v25  ;;  %v2104_v12 = vadd.f32 %v3800_v31, %v2011_v18  ;;  %3889 = vmatprep.subr.bf16.mxu0 %v4220_v46  ;;  %3974 = vmatpush3.bf16.msra.mxu1 %v4223_v21  ;;  %v4224_v31 = vld [vmem:[#allocation10 + $0x8] sm:$0xff]  }
 0x4f6   : > { %v2057_v36 = vpop.f32.mrf.mxu1  ;;  %v2410_v7 = vpop.trf.xlu1  ;;  %3967 = vmatprep.subr.bf16.mxu1 %v4224_v31 }
 0x4f7   : > { %2116 = vst [vmem:[#allocation4 + $0x18] sm:$0xff] %v2104_v12  ;;  %v2102_v22 = vadd.f32 %v2057_v36, %v2009_v19  ;;  %3874 = vmatmul.mubr.msk.bf16.gmra.mxu0 %vm2157_vm6, %v2410_v7  ;;  %v4225_v7 = vld [vmem:[#allocation10] sm:$0xff]  }
 0x4f8   : > { %v3803_v5 = vpop.f32.mrf.mxu1  ;;  %3890 = vmatpush3.bf16.msra.mxu0 %v4220_v46 }
 0x4f9   : > { %2114 = vst [vmem:[#allocation4] sm:$0xff] %v2102_v22  ;;  %v2107_v41 = vadd.f32 %v3803_v5, %v2014_v55  ;;  %3891 = vmatprep.subr.bf16.mxu0 %v4221_v33  ;;  %3975 = vmatpush3.bf16.msra.mxu1 %v4224_v31 }
 0x4fa   : > { %v2070_v29 = vpop.f32.mrf.mxu1  ;;  %v2411_v13 = vpop.trf.xlu1  ;;  %3968 = vmatprep.subr.bf16.mxu1 %v4225_v7 }
 0x4fb   : > { %2119 = vst [vmem:[#allocation4 + $0x8] sm:$0xff] %v2107_v41  ;;  %v2105_v37 = vadd.f32 %v2070_v29, %v2012_v9  ;;  %3877 = vmatprep.mubr.msk.bf16.mxu0 %vm2157_vm6, %v2411_v13 }
 0x4fc   : > { %v3804_v57 = vpop.f32.mrf.mxu1  ;;  %3892 = vmatpush3.bf16.msra.mxu0 %v4221_v33 }
 0x4fd   : > { %2117 = vst [vmem:[#allocation4 + $0x50] sm:$0xff] %v2105_v37  ;;  %v2108_v24 = vadd.f32 %v3804_v57, %v2015_v50  ;;  %3893 = vmatprep.subr.bf16.mxu0 %v4222_v4  ;;  %3976 = vmatpush3.bf16.msra.mxu1 %v4225_v7 }
 0x4fe   : > { %v2073_v40 = vpop.f32.mrf.mxu1  ;;  %v2412_v51 = vpop.trf.xlu1 }
 0x4ff   : > { %2120 = vst [vmem:[#allocation4 + $0x38] sm:$0xff] %v2108_v24  ;;  %v2106_v30 = vadd.f32 %v2073_v40, %v2013_v28  ;;  %3878 = vmatmul.mubr.msk.bf16.gmra.mxu0 %vm2157_vm6, %v2412_v51 }
 0x500   : > { %v3807_v11 = vpop.f32.mrf.mxu1  ;;  %3894 = vmatpush3.bf16.msra.mxu0 %v4222_v4 }
 0x501   : > { %2118 = vst [vmem:[#allocation4 + $0x20] sm:$0xff] %v2106_v30  ;;  %v2111_v27 = vadd.f32 %v3807_v11, %v2018_v26  ;;  %3895 = vmatprep.subr.bf16.mxu0 %v4223_v21 }
 0x502   : > { %v2086_v3 = vpop.f32.mrf.mxu1  ;;  %v2413_v39 = vpop.trf.xlu1 }
 0x503   : > { %2123 = vst [vmem:[#allocation4 + $0x10] sm:$0xff] %v2111_v27  ;;  %v2109_v63 = vadd.f32 %v2086_v3, %v2016_v8  ;;  %3881 = vmatprep.mubr.msk.bf16.mxu0 %vm2157_vm6, %v2413_v39 }
 0x504   : > { %v3808_v42 = vpop.f32.mrf.mxu1  ;;  %3896 = vmatpush3.bf16.msra.mxu0 %v4223_v21 }
 0x505   : > { %2121 = vst [vmem:[#allocation4 + $0x28] sm:$0xff] %v2109_v63  ;;  %v2112_v47 = vadd.f32 %v3808_v42, %v2019_v16  ;;  %3897 = vmatprep.subr.bf16.mxu0 %v4224_v31 }
 0x506   : > { %v2089_v32 = vpop.f32.mrf.mxu1  ;;  %v2414_v14 = vpop.trf.xlu1 }
 0x507   : > { %2124 = vst [vmem:[#allocation4 + $0x40] sm:$0xff] %v2112_v47  ;;  %v2110_v49 = vadd.f32 %v2089_v32, %v2017_v35  ;;  %3882 = vmatmul.mubr.msk.bf16.gmra.mxu0 %vm2157_vm6, %v2414_v14 }
 0x508   : > { %3898 = vmatpush3.bf16.msra.mxu0 %v4224_v31 }
 0x509   : > { %2122 = vst [vmem:[#allocation4 + $0x48] sm:$0xff] %v2110_v49  ;;  %3899 = vmatprep.subr.bf16.mxu0 %v4225_v7 }
 0x50c   : > { %3900 = vmatpush3.bf16.msra.mxu0 %v4225_v7 }
 0x56f   : > { %v3835_v53 = vpop.f32.mrf.mxu1 }
 0x570   : > { %vm2352_vm10 = vcmp.gt.f32.partialorder %v3835_v53, 0.0 }
 0x571   : > { %v2368_v15 = vsel %vm2352_vm10, %v3835_v53, 1.0  ;;  %v2272_v20 = vpop.f32.mrf.mxu1  ;;  %vm1995_vm10 = vcmask 7168  }
 0x572   : > { %4226 = vrcp.f32 %v2368_v15  ;;  %vm2351_vm14 = vcmp.gt.f32.partialorder %v2272_v20, 0.0 }
 0x573   : > { %v2367_v10 = vsel %vm2351_vm14, %v2272_v20, 1.0 }
 0x574   : > { %4228 = vrcp.f32 %v2367_v10 }
 0x577   : > { %v3838_v17 = vpop.f32.mrf.mxu1 }
 0x578   : > { %vm2354_vm8 = vcmp.gt.f32.partialorder %v3838_v17, 0.0 }
 0x579   : > { %v2370_v23 = vsel %vm2354_vm8, %v3838_v17, 1.0  ;;  %v2282_v38 = vpop.f32.mrf.mxu1 }
 0x57a   : > { %4230 = vrcp.f32 %v2370_v23  ;;  %vm2353_vm13 = vcmp.gt.f32.partialorder %v2282_v38, 0.0 }
 0x57b   : > { %v2369_v34 = vsel %vm2353_vm13, %v2282_v38, 1.0 }
 0x57c   : > { %4232 = vrcp.f32 %v2369_v34 }
 0x57f   : > { %v4227_v44 = vpop.eup %4226  ;;  %v3841_v18 = vpop.f32.mrf.mxu1 }
 0x580   : > { %vm2356_vm0 = vcmp.gt.f32.partialorder %v3841_v18, 0.0  ;;  %2579 = vperm.xlu0 %4208, %v4227_v44  }
 0x581   : > { %v2372_v58 = vsel %vm2356_vm0, %v3841_v18, 1.0  ;;  %v2292_v25 = vpop.f32.mrf.mxu1  ;;  %v4229_v19 = vpop.eup %4228 }
 0x582   : > { %4234 = vrcp.f32 %v2372_v58  ;;  %vm2355_vm12 = vcmp.gt.f32.partialorder %v2292_v25, 0.0 }
 0x583   : > { %v2371_v12 = vsel %vm2355_vm12, %v2292_v25, 1.0 }
 0x584   : > { %2574 = vperm.xlu0 %4208, %v4229_v19   ;;  %4236 = vrcp.f32 %v2371_v12 }
 0x587   : > { %v4231_v36 = vpop.eup %4230  ;;  %v3844_v55 = vpop.f32.mrf.mxu1 }
 0x588   : > { %vm2358_vm7 = vcmp.gt.f32.partialorder %v3844_v55, 0.0  ;;  %2589 = vperm.xlu1 %4209, %v4231_v36  }
 0x589   : > { %v4233_v22 = vpop.eup %4232  ;;  %v2374_v5 = vsel %vm2358_vm7, %v3844_v55, 1.0  ;;  %v2302_v9 = vpop.f32.mrf.mxu1 }
 0x58a   : > { %4238 = vrcp.f32 %v2374_v5  ;;  %vm2357_vm2 = vcmp.gt.f32.partialorder %v2302_v9, 0.0  ;;  %2584 = vperm.xlu0 %4208, %v4233_v22  }
 0x58b   : > { %v2373_v41 = vsel %vm2357_vm2, %v2302_v9, 1.0 }
 0x58c   : > { %4240 = vrcp.f32 %v2373_v41 }
 0x58f   : > { %v4235_v29 = vpop.eup %4234  ;;  %v3847_v50 = vpop.f32.mrf.mxu1 }
 0x590   : > { %vm2360_vm11 = vcmp.gt.f32.partialorder %v3847_v50, 0.0  ;;  %2599 = vperm.xlu0 %4208, %v4235_v29  }
 0x591   : > { %v2376_v13 = vsel %vm2360_vm11, %v3847_v50, 1.0  ;;  %v2312_v37 = vpop.f32.mrf.mxu1  ;;  %v4237_v57 = vpop.eup %4236 }
 0x592   : > { %4242 = vrcp.f32 %v2376_v13  ;;  %vm2359_vm4 = vcmp.gt.f32.partialorder %v2312_v37, 0.0 }
 0x593   : > { %v2375_v28 = vsel %vm2359_vm4, %v2312_v37, 1.0 }
 0x594   : > { %2594 = vperm.xlu0 %4208, %v4237_v57   ;;  %4244 = vrcp.f32 %v2375_v28 }
 0x597   : > { %v4239_v24 = vpop.eup %4238  ;;  %v3850_v40 = vpop.f32.mrf.mxu1 }
 0x598   : > { %vm2362_vm5 = vcmp.gt.f32.partialorder %v3850_v40, 0.0  ;;  %2609 = vperm.xlu0 %4208, %v4239_v24  }
 0x599   : > { %v2378_v26 = vsel %vm2362_vm5, %v3850_v40, 1.0  ;;  %v2322_v51 = vpop.f32.mrf.mxu1  ;;  %v4241_v30 = vpop.eup %4240 }
 0x59a   : > { %4246 = vrcp.f32 %v2378_v26  ;;  %vm2361_vm15 = vcmp.gt.f32.partialorder %v2322_v51, 0.0 }
 0x59b   : > { %v2377_v11 = vsel %vm2361_vm15, %v2322_v51, 1.0 }
 0x59c   : > { %4248 = vrcp.f32 %v2377_v11  ;;  %2604 = vperm.xlu0 %4208, %v4241_v30  }
 0x59f   : > { %v4243_v8 = vpop.eup %4242  ;;  %v3853_v27 = vpop.f32.mrf.mxu1 }
 0x5a0   : > { %vm2364_vm3 = vcmp.gt.f32.partialorder %v3853_v27, 0.0  ;;  %2619 = vperm.xlu0 %4208, %v4243_v8  }
 0x5a1   : > { %v2380_v3 = vsel %vm2364_vm3, %v3853_v27, 1.0  ;;  %v2332_v16 = vpop.f32.mrf.mxu1  ;;  %v4245_v39 = vpop.eup %4244 }
 0x5a2   : > { %4250 = vrcp.f32 %v2380_v3  ;;  %vm2363_vm9 = vcmp.gt.f32.partialorder %v2332_v16, 0.0 }
 0x5a3   : > { %v2379_v63 = vsel %vm2363_vm9, %v2332_v16, 1.0 }
 0x5a4   : > { %4252 = vrcp.f32 %v2379_v63  ;;  %2614 = vperm.xlu0 %4208, %v4245_v39  }
 0x5a7   : > { %v4247_v42 = vpop.eup %4246  ;;  %v3856_v35 = vpop.f32.mrf.mxu1 }
 0x5a8   : > { %vm2366_vm1 = vcmp.gt.f32.partialorder %v3856_v35, 0.0  ;;  %2629 = vperm.xlu1 %4209, %v4247_v42  }
 0x5a9   : > { %v4249_v47 = vpop.eup %4248  ;;  %v2382_v32 = vsel %vm2366_vm1, %v3856_v35, 1.0  ;;  %v2342_v14 = vpop.f32.mrf.mxu1 }
 0x5aa   : > { %4254 = vrcp.f32 %v2382_v32  ;;  %vm2365_vm6 = vcmp.gt.f32.partialorder %v2342_v14, 0.0  ;;  %2624 = vperm.xlu0 %4208, %v4249_v47   ;;  %v1947_v47 = vld [vmem:[#allocation3] sm:$0xff] }
 0x5ab   : > { %v2381_v49 = vsel %vm2365_vm6, %v2342_v14, 1.0 }
 0x5ac   : > { %4256 = vrcp.f32 %v2381_v49  ;;  %v1948_v49 = vld [vmem:[#allocation3 + $0x8] sm:$0xff] }
 0x5af   : > { %v4251_v2 = vpop.eup %4250 }
 0x5b0   : > { %2639 = vperm.xlu1 %4209, %v4251_v2   ;;  %v1949_v2 = vld [vmem:[#allocation3 + $0x10] sm:$0xff] }
 0x5b1   : > { %v4253_v60 = vpop.eup %4252 }
 0x5b2   : > { %2634 = vperm.xlu0 %4208, %v4253_v60  }
 0x5b7   : > { %v4255_v53 = vpop.eup %4254 }
 0x5b8   : > { %2649 = vperm.xlu1 %4209, %v4255_v53  }
 0x5b9   : > { %v4257_v15 = vpop.eup %4256 }
 0x5ba   : > { %2644 = vperm.xlu0 %4208, %v4257_v15  }
 0x5d9   : > { %1959 = vadd.xlane.f32.xlu0 %v5767_v62  ;;  %v3871_v62 = vpop.f32.mrf.mxu0 }
 0x5dc   : > { %1961 = vadd.xlane.f32.xlu1 %v5793_v61 }
 0x5dd   : > { %1963 = vadd.xlane.f32.xlu0 %v5772_v45  ;;  %v2509_v45 = vpop.f32.mrf.mxu0 }
 0x5df   : > { %v3872_v61 = vpop.f32.mrf.mxu0 }
 0x5e0   : > { %1967 = vadd.xlane.f32.xlu1 %v5784_v43 }
 0x5e1   : > { %1965 = vadd.xlane.f32.xlu0 %v5830_v52  ;;  %v2512_v20 = vpop.f32.mrf.mxu0 }
 0x5e3   : > { %v3875_v33 = vpop.f32.mrf.mxu0 }
 0x5e4   : > { %1971 = vadd.xlane.f32.xlu1 %v5802_v59 }
 0x5e5   : > { %1969 = vadd.xlane.f32.xlu0 %v5849_v54 }
 0x5e8   : > { %1975 = vadd.xlane.f32.xlu1 %v5809_v6 }
 0x5e9   : > { %1973 = vadd.xlane.f32.xlu0 %v5862_v1  ;;  %v2525_v1 = vpop.f32.mrf.mxu0 }
 0x5ec   : > { %1979 = vadd.xlane.f32.xlu1 %v5873_v48 }
 0x5ed   : > { %1977 = vadd.xlane.f32.xlu0 %v5868_v0  ;;  %v3876_v0 = vpop.f32.mrf.mxu0 }
 0x5ef   : > { %v2528_v23 = vpop.f32.mrf.mxu0 }
 0x5f1   : > { %1981 = vadd.xlane.f32.xlu0 %v5878_v56  ;;  %v3879_v44 = vpop.f32.mrf.mxu0 }
 0x5f3   : > { %v2541_v25 = vpop.f32.mrf.mxu0 }
 0x5f5   : > { %v3880_v36 = vpop.f32.mrf.mxu0 }
 0x5f7   : > { %v2544_v22 = vpop.f32.mrf.mxu0 }
 0x5f9   : > { %v3883_v9 = vpop.f32.mrf.mxu0 }
 0x5fb   : > { %v2580_v43 = vpop.permute.xlu0 %2579  ;;  %v2557_v37 = vpop.f32.mrf.mxu0 }
 0x5fc   : > { %v2653_v46 = vmul.f32 %v2580_v43, %v2512_v20 }
 0x5fd   : > { %v3884_v40 = vpop.f32.mrf.mxu0 }
 0x5ff   : > { %v2575_v52 = vpop.permute.xlu0 %2574  ;;  %v2560_v51 = vpop.f32.mrf.mxu0 }
 0x600   : > { %v2652_v59 = vmul.f32 %v2575_v52, %v2509_v45  ;;  %v1951_v45 = vld [vmem:[#allocation3 + $0x20] sm:$0xff] }
 0x602   : > { %v2668_v54 = vpack.c.bf16 %v2653_v46, %v2652_v59  ;;  %v1953_v59 = vld [vmem:[#allocation3 + $0x30] sm:$0xff] }
 0x603   : > { %v2590_v10 = vpop.permute.xlu1 %2589 }
 0x604   : > { %3901 = vmatprep.mubr.bf16.mxu0 %v2668_v54  ;;  %v2655_v4 = vmul.f32 %v3872_v61, %v2590_v10  ;;  %v1950_v61 = vld [vmem:[#allocation3 + $0x18] sm:$0xff] }
 0x605   : > { %v2585_v6 = vpop.permute.xlu0 %2584 }
 0x606   : > { %v2654_v48 = vmul.f32 %v3871_v62, %v2585_v6 }
 0x608   : > { %v2669_v17 = vpack.c.bf16 %v2655_v4, %v2654_v48  ;;  %v1955_v4 = vld [vmem:[#allocation3 + $0x40] sm:$0xff]  ;;  %v1954_v48 = vld [vmem:[#allocation3 + $0x38] sm:$0xff] }
 0x60a   : > { %3902 = vmatmul.mubr.bf16.vlgmr.msra.gmra.mxu0 %v2669_v17 }
 0x60b   : > { %v2600_v56 = vpop.permute.xlu0 %2599 }
 0x60c   : > { %v2657_v34 = vmul.f32 %v2600_v56, %v2528_v23 }
 0x60f   : > { %v2595_v38 = vpop.permute.xlu0 %2594 }
 0x610   : > { %v2656_v21 = vmul.f32 %v2595_v38, %v2525_v1  ;;  %v1957_v38 = vld [vmem:[#allocation3 + $0x50] sm:$0xff] }
 0x612   : > { %v2670_v18 = vpack.c.bf16 %v2657_v34, %v2656_v21  ;;  %v1956_v34 = vld [vmem:[#allocation3 + $0x48] sm:$0xff] }
 0x613   : > { %v2610_v58 = vpop.permute.xlu0 %2609 }
 0x614   : > { %3905 = vmatprep.mubr.bf16.mxu1 %v2670_v18  ;;  %v2659_v19 = vmul.f32 %v3876_v0, %v2610_v58 }
 0x617   : > { %v2605_v31 = vpop.permute.xlu0 %2604 }
 0x618   : > { %v2658_v12 = vmul.f32 %v3875_v33, %v2605_v31  ;;  %v1952_v33 = vld [vmem:[#allocation3 + $0x28] sm:$0xff] }
 0x61a   : > { %v2671_v55 = vpack.c.bf16 %v2659_v19, %v2658_v12 }
 0x61b   : > { %v2620_v7 = vpop.permute.xlu0 %2619 }
 0x61c   : > { %3906 = vmatmul.mubr.bf16.vlgmr.msra.gmra.mxu1 %v2671_v55  ;;  %v2661_v41 = vmul.f32 %v2620_v7, %v2544_v22  ;;  %v6347_v55 = vld [vmem:[#allocation49_spill] sm:$0xff] }
 0x61f   : > { %v2615_v5 = vpop.permute.xlu0 %2614 }
 0x620   : > { %v2660_v29 = vmul.f32 %v2615_v5, %v2541_v25  ;;  %v1958_v25 = vld [vmem:[#allocation3 + $0x58] sm:$0xff] }
 0x622   : > { %v2672_v50 = vpack.c.bf16 %v2661_v41, %v2660_v29 }
 0x623   : > { %v2630_v13 = vpop.permute.xlu1 %2629 }
 0x624   : > { %3909 = vmatprep.mubr.bf16.mxu1 %v2672_v50  ;;  %v2663_v28 = vmul.f32 %v3880_v36, %v2630_v13  ;;  %v3587_v36 = vld [vmem:[%s6346_s9] ss:$0 sm:$0xff]  ;;  %v6349_v13 = vld [vmem:[#allocation53_spill] sm:$0xff] }
 0x625   : > { %v2625_v57 = vpop.permute.xlu0 %2624 }
 0x626   : > { %v2662_v24 = vmul.f32 %v3879_v44, %v2625_v57 }
 0x628   : > { %v2673_v26 = vpack.c.bf16 %v2663_v28, %v2662_v24  ;;  %v6350_v24 = vld [vmem:[#allocation54_spill] sm:$0xff] }
 0x62a   : > { %3910 = vmatmul.mubr.bf16.gmra.mxu1 %v2673_v26 }
 0x62b   : > { %v2640_v30 = vpop.permute.xlu1 %2639 }
 0x62c   : > { %v2665_v8 = vmul.f32 %v2640_v30, %v2560_v51  ;;  %v6351_v30 = vld [vmem:[#allocation56_spill] sm:$0xff] }
 0x62d   : > { %v2635_v11 = vpop.permute.xlu0 %2634 }
 0x62e   : > { %v2664_v27 = vmul.f32 %v2635_v11, %v2557_v37 }
 0x630   : > { %v2674_v3 = vpack.c.bf16 %v2665_v8, %v2664_v27 }
 0x632   : > { %3913 = vmatprep.mubr.bf16.mxu1 %v2674_v3  ;;  %v6352_v3 = vld [vmem:[#allocation57_spill] sm:$0xff] }
 0x633   : > { %v2650_v16 = vpop.permute.xlu1 %2649 }
 0x634   : > { %v2667_v63 = vmul.f32 %v3884_v40, %v2650_v16 }
 0x635   : > { %v2645_v39 = vpop.permute.xlu0 %2644 }
 0x636   : > { %v2666_v42 = vmul.f32 %v3883_v9, %v2645_v39  ;;  %v6348_v9 = vld [vmem:[#allocation52_spill] sm:$0xff] }
 0x638   : > { %v2675_v35 = vpack.c.bf16 %v2667_v63, %v2666_v42  ;;  %v6353_v42 = vld [vmem:[#allocation59_spill] sm:$0xff] }
 0x63a   : > { %3914 = vmatmul.mubr.bf16.gmra.mxu1 %v2675_v35 }
 0x662   : > { %v1960_v32 = vpop.xlane.xlu0 %1959 }
 0x663   : > { %v1983_v14 = vadd.f32 %v1960_v32, %v1947_v47 }
 0x665   : > { %1996 = vst.msk [vmem:[#allocation3] sm:$0xff] %vm1995_vm10, %v1983_v14  ;;  %v1962_v60 = vpop.xlane.xlu1 %1961  ;;  %v6354_v14 = vld [vmem:[#allocation60_spill] sm:$0xff] }
 0x666   : > { %v1984_v53 = vadd.f32 %v1962_v60, %v1948_v49  ;;  %v1964_v15 = vpop.xlane.xlu0 %1963 }
 0x667   : > { %v1985_v62 = vadd.f32 %v1964_v15, %v1949_v2 }
 0x668   : > { %1997 = vst.msk [vmem:[#allocation3 + $0x8] sm:$0xff] %vm1995_vm10, %v1984_v53  ;;  %v6355_v53 = vld [vmem:[#allocation61_spill] sm:$0xff] }
 0x669   : > { %1998 = vst.msk [vmem:[#allocation3 + $0x10] sm:$0xff] %vm1995_vm10, %v1985_v62  ;;  %v1968_v43 = vpop.xlane.xlu1 %1967 }
 0x66a   : > { %v1987_v20 = vadd.f32 %v1968_v43, %v1951_v45  ;;  %v1966_v52 = vpop.xlane.xlu0 %1965 }
 0x66b   : > { %v1986_v46 = vadd.f32 %v1966_v52, %v1950_v61  ;;  %v6356_v61 = vld [vmem:[#allocation63_spill] sm:$0xff] }
 0x66c   : > { %2000 = vst.msk [vmem:[#allocation3 + $0x20] sm:$0xff] %vm1995_vm10, %v1987_v20 }
 0x66d   : > { %1999 = vst.msk [vmem:[#allocation3 + $0x18] sm:$0xff] %vm1995_vm10, %v1986_v46  ;;  %v1972_v54 = vpop.xlane.xlu1 %1971  ;;  %v6357_v46 = vld [vmem:[#allocation64_spill] sm:$0xff] }
 0x66e   : > { %v1989_v10 = vadd.f32 %v1972_v54, %v1953_v59  ;;  %v1970_v6 = vpop.xlane.xlu0 %1969 }
 0x66f   : > { %v1988_v1 = vadd.f32 %v1970_v6, %v1952_v33 }
 0x670   : > { %2002 = vst.msk [vmem:[#allocation3 + $0x30] sm:$0xff] %vm1995_vm10, %v1989_v10  ;;  %v6358_v10 = vld [vmem:[#allocation66_spill] sm:$0xff] }
 0x671   : > { %2001 = vst.msk [vmem:[#allocation3 + $0x28] sm:$0xff] %vm1995_vm10, %v1988_v1  ;;  %v1976_v17 = vpop.xlane.xlu1 %1975 }
 0x672   : > { %v1991_v0 = vadd.f32 %v1976_v17, %v1955_v4  ;;  %v1974_v56 = vpop.xlane.xlu0 %1973 }
 0x673   : > { %v1990_v23 = vadd.f32 %v1974_v56, %v1954_v48  ;;  %v6359_v48 = vld [vmem:[#allocation67_spill] sm:$0xff] }
 0x674   : > { %2004 = vst.msk [vmem:[#allocation3 + $0x40] sm:$0xff] %vm1995_vm10, %v1991_v0 }
 0x675   : > { %2003 = vst.msk [vmem:[#allocation3 + $0x38] sm:$0xff] %vm1995_vm10, %v1990_v23  ;;  %v1980_v21 = vpop.xlane.xlu1 %1979  ;;  %v6360_v23 = vld [vmem:[#allocation68_spill] sm:$0xff] }
 0x676   : > { %v1993_v44 = vadd.f32 %v1980_v21, %v1957_v38  ;;  %v1978_v18 = vpop.xlane.xlu0 %1977 }
 0x677   : > { %v1992_v58 = vadd.f32 %v1978_v18, %v1956_v34 }
 0x678   : > { %2006 = vst.msk [vmem:[#allocation3 + $0x50] sm:$0xff] %vm1995_vm10, %v1993_v44  ;;  %v6361_v44 = vld [vmem:[#allocation72_spill] sm:$0xff] }
 0x679   : > { %2005 = vst.msk [vmem:[#allocation3 + $0x48] sm:$0xff] %vm1995_vm10, %v1992_v58 }
 0x67a   : > { %v1982_v31 = vpop.xlane.xlu0 %1981 }
 0x67b   : > { %v1994_v19 = vadd.f32 %v1982_v31, %v1958_v25  ;;  %v6362_v31 = vld [vmem:[#allocation73_spill] sm:$0xff] }
 0x67d   : > { %2007 = vst.msk [vmem:[#allocation3 + $0x58] sm:$0xff] %vm1995_vm10, %v1994_v19 }
 0x6ca   : > { %v3903_v12 = vpop.f32.mrf.mxu0 }
 0x6cb   : > { %v2839_v7 = vadd.f32 %v3903_v12, %v6347_v55 }
 0x6cc   : > { %v2774_v22 = vpop.f32.mrf.mxu0 }
 0x6cd   : > { %v2862_v5 = vadd.f32 %v3587_v36, %v2839_v7  ;;  %v2837_v41 = vadd.f32 %v2774_v22, %v6348_v9 }
 0x6ce   : > { %v3904_v29 = vpop.f32.mrf.mxu0 }
 0x6cf   : > { %2878 = vst [vmem:[%s5014_s16 + $0x10] sm:$0xff] %v2862_v5  ;;  %v2860_v50 = vadd.f32 %v3587_v36, %v2837_v41  ;;  %v2840_v37 = vadd.f32 %v3904_v29, %v6349_v13 }
 0x6d0   : > { %v2777_v57 = vpop.f32.mrf.mxu0 }
 0x6d1   : > { %2876 = vst [vmem:[%s5014_s16] sm:$0xff] %v2860_v50  ;;  %v2863_v28 = vadd.f32 %v3587_v36, %v2840_v37  ;;  %v2838_v40 = vadd.f32 %v2777_v57, %v6350_v24 }
 0x6d3   : > { %2879 = vst [vmem:[%s5014_s16 + $0x18] sm:$0xff] %v2863_v28  ;;  %v2861_v26 = vadd.f32 %v3587_v36, %v2838_v40 }
 0x6d5   : > { %2877 = vst [vmem:[%s5014_s16 + $0x8] sm:$0xff] %v2861_v26 }
 0x6dc   : > { %v3907_v51 = vpop.f32.mrf.mxu1 }
 0x6dd   : > { %v2843_v11 = vadd.f32 %v3907_v51, %v6351_v30 }
 0x6de   : > { %v2790_v8 = vpop.f32.mrf.mxu1 }
 0x6df   : > { %v2866_v27 = vadd.f32 %v3587_v36, %v2843_v11  ;;  %v2841_v16 = vadd.f32 %v2790_v8, %v6352_v3 }
 0x6e0   : > { %v3908_v39 = vpop.f32.mrf.mxu1 }
 0x6e1   : > { %2882 = vst [vmem:[%s5014_s16 + $0x30] sm:$0xff] %v2866_v27  ;;  %v2864_v63 = vadd.f32 %v3587_v36, %v2841_v16  ;;  %v2844_v35 = vadd.f32 %v3908_v39, %v6353_v42 }
 0x6e2   : > { %v2793_v47 = vpop.f32.mrf.mxu1 }
 0x6e3   : > { %2880 = vst [vmem:[%s5014_s16 + $0x20] sm:$0xff] %v2864_v63  ;;  %v2867_v32 = vadd.f32 %v3587_v36, %v2844_v35  ;;  %v2842_v49 = vadd.f32 %v2793_v47, %v6354_v14 }
 0x6e5   : > { %2883 = vst [vmem:[%s5014_s16 + $0x38] sm:$0xff] %v2867_v32  ;;  %v2865_v2 = vadd.f32 %v3587_v36, %v2842_v49 }
 0x6e7   : > { %2881 = vst [vmem:[%s5014_s16 + $0x28] sm:$0xff] %v2865_v2 }
 0x6ea   : > { %v3911_v60 = vpop.f32.mrf.mxu1 }
 0x6eb   : > { %v2847_v15 = vadd.f32 %v3911_v60, %v6355_v53 }
 0x6ec   : > { %v2806_v62 = vpop.f32.mrf.mxu1 }
 0x6ed   : > { %v2870_v45 = vadd.f32 %v3587_v36, %v2847_v15  ;;  %v2845_v43 = vadd.f32 %v2806_v62, %v6356_v61 }
 0x6ee   : > { %v3912_v20 = vpop.f32.mrf.mxu1 }
 0x6ef   : > { %2886 = vst [vmem:[%s5014_s16 + $0x50] sm:$0xff] %v2870_v45  ;;  %v2868_v52 = vadd.f32 %v3587_v36, %v2845_v43  ;;  %v2848_v59 = vadd.f32 %v3912_v20, %v6357_v46 }
 0x6f0   : > { %v2809_v33 = vpop.f32.mrf.mxu1 }
 0x6f1   : > { %2884 = vst [vmem:[%s5014_s16 + $0x40] sm:$0xff] %v2868_v52  ;;  %v2871_v54 = vadd.f32 %v3587_v36, %v2848_v59  ;;  %v2846_v6 = vadd.f32 %v2809_v33, %v6358_v10 }
 0x6f3   : > { %2887 = vst [vmem:[%s5014_s16 + $0x58] sm:$0xff] %v2871_v54  ;;  %v2869_v1 = vadd.f32 %v3587_v36, %v2846_v6 }
 0x6f5   : > { %2885 = vst [vmem:[%s5014_s16 + $0x48] sm:$0xff] %v2869_v1 }
 0x6fa   : > { %v3915_v4 = vpop.f32.mrf.mxu1 }
 0x6fb   : > { %v2851_v17 = vadd.f32 %v3915_v4, %v6359_v48 }
 0x6fc   : > { %v2822_v0 = vpop.f32.mrf.mxu1 }
 0x6fd   : > { %v2874_v56 = vadd.f32 %v3587_v36, %v2851_v17  ;;  %v2849_v38 = vadd.f32 %v2822_v0, %v6360_v23 }
 0x6fe   : > { %v3916_v34 = vpop.f32.mrf.mxu1 }
 0x6ff   : > { %2890 = vst [vmem:[%s5014_s16 + $0x70] sm:$0xff] %v2874_v56  ;;  %v2872_v21 = vadd.f32 %v3587_v36, %v2849_v38  ;;  %v2852_v18 = vadd.f32 %v3916_v34, %v6361_v44 }
 0x700   : > { %v2825_v58 = vpop.f32.mrf.mxu1 }
 0x701   : > { %2888 = vst [vmem:[%s5014_s16 + $0x60] sm:$0xff] %v2872_v21  ;;  %v2875_v25 = vadd.f32 %v3587_v36, %v2852_v18  ;;  %v2850_v19 = vadd.f32 %v2825_v58, %v6362_v31  ;;  %2895 = sbr.rel (%p3588_p2) target bundleno = 2168 (0x878), region = 92 }
 0x703   : > { %2891 = vst [vmem:[%s5014_s16 + $0x78] sm:$0xff] %v2875_v25  ;;  %v2873_v12 = vadd.f32 %v3587_v36, %v2850_v19 }
 0x705   : > { %2889 = vst [vmem:[%s5014_s16 + $0x68] sm:$0xff] %v2873_v12 }
 0x706   : > { %v2902_v55 = vld [vmem:[#allocation3 + $0x30] sm:$0xff]  ;;  %v2900_v7 = vld [vmem:[#allocation3 + $0x20] sm:$0xff]  ;;  %v2903_v22 = vld [vmem:[#allocation3 + $0x38] sm:$0xff]  ;;  %v4594_v5 = vmov 0  }
 0x707   : > { %4259 = vset.pattern.permute.xlu1 %v4594_v5  ;;  %4258 = vset.pattern.permute.xlu0 %v4594_v5  ;;  %vm2914_vm14 = vcmp.gt.f32.partialorder %v2902_v55, 0.0  ;;  %vm2912_vm8 = vcmp.gt.f32.partialorder %v2900_v7, 0.0  ;;  %vm2915_vm13 = vcmp.gt.f32.partialorder %v2903_v22, 0.0  ;;  %v2901_v9 = vld [vmem:[#allocation3 + $0x28] sm:$0xff]  ;;  %v2896_v29 = vld [vmem:[#allocation3] sm:$0xff]  ;;  %v4260_v24 = vld [vmem:[#allocation13 + $0x38] sm:$0xff]  }
 0x708   : > { %v2897_v41 = vld [vmem:[#allocation3 + $0x8] sm:$0xff]  ;;  %v2926_v50 = vsel %vm2914_vm14, %v2902_v55, 1.0  ;;  %v2924_v13 = vsel %vm2912_vm8, %v2900_v7, 1.0  ;;  %v2927_v37 = vsel %vm2915_vm13, %v2903_v22, 1.0  ;;  %vm2913_vm0 = vcmp.gt.f32.partialorder %v2901_v9, 0.0  ;;  %v2904_v28 = vld [vmem:[#allocation3 + $0x40] sm:$0xff]  ;;  %3977 = vmatprep.subr.bf16.mxu1 %v4260_v24  ;;  %3917 = vmatprep.subr.bf16.mxu0 %v4260_v24 }
 0x709   : > { %4268 = vrcp.f32 %v2926_v50  ;;  %v2925_v36 = vsel %vm2913_vm0, %v2901_v9, 1.0  ;;  %vm2909_vm12 = vcmp.gt.f32.partialorder %v2897_v41, 0.0  ;;  %vm2908_vm7 = vcmp.gt.f32.partialorder %v2896_v29, 0.0  ;;  %v2905_v57 = vld [vmem:[#allocation3 + $0x48] sm:$0xff]  ;;  %v4261_v26 = vld [vmem:[#allocation13 + $0x30] sm:$0xff]   ;;  %v2899_v30 = vld [vmem:[#allocation3 + $0x18] sm:$0xff]  ;;  %3985 = vmatpush3.bf16.msra.mxu1 %v4260_v24  ;;  %3918 = vmatpush3.bf16.msra.mxu0 %v4260_v24 }
 0x70a   : > { %4270 = vrcp.f32 %v2924_v13  ;;  %v2921_v40 = vsel %vm2909_vm12, %v2897_v41, 1.0  ;;  %v2920_v51 = vsel %vm2908_vm7, %v2896_v29, 1.0  ;;  %vm2917_vm2 = vcmp.gt.f32.partialorder %v2905_v57, 0.0  ;;  %v2898_v11 = vld [vmem:[#allocation3 + $0x10] sm:$0xff]  ;;  %3978 = vmatprep.subr.bf16.mxu1 %v4261_v26  ;;  %v4262_v8 = vld [vmem:[#allocation13 + $0x28] sm:$0xff]   ;;  %3919 = vmatprep.subr.bf16.mxu0 %v4261_v26  ;;  %v2907_v16 = vld [vmem:[#allocation3 + $0x58] sm:$0xff] }
 0x70b   : > { %4272 = vrcp.f32 %v2927_v37  ;;  %vm2916_vm11 = vcmp.gt.f32.partialorder %v2904_v28, 0.0  ;;  %v2929_v27 = vsel %vm2917_vm2, %v2905_v57, 1.0  ;;  %vm2911_vm4 = vcmp.gt.f32.partialorder %v2899_v30, 0.0  ;;  %v2906_v39 = vld [vmem:[#allocation3 + $0x50] sm:$0xff]  ;;  %v4263_v63 = vld [vmem:[#allocation13 + $0x20] sm:$0xff]   ;;  %v4264_v14 = vld [vmem:[#allocation13 + $0x18] sm:$0xff]  }
 0x70c   : > { %4274 = vrcp.f32 %v2925_v36  ;;  %v2928_v3 = vsel %vm2916_vm11, %v2904_v28, 1.0  ;;  %vm2910_vm5 = vcmp.gt.f32.partialorder %v2898_v11, 0.0  ;;  %v2923_v42 = vsel %vm2911_vm4, %v2899_v30, 1.0  ;;  %v4265_v15 = vld [vmem:[#allocation13 + $0x10] sm:$0xff]   ;;  %v4266_v61 = vld [vmem:[#allocation13 + $0x8] sm:$0xff]   ;;  %v4267_v52 = vld [vmem:[#allocation13] sm:$0xff]  }
 0x70d   : > { %4276 = vrcp.f32 %v2921_v40  ;;  %3986 = vmatpush3.bf16.msra.mxu1 %v4261_v26  ;;  %3920 = vmatpush3.bf16.msra.mxu0 %v4261_v26  ;;  %v2922_v35 = vsel %vm2910_vm5, %v2898_v11, 1.0  ;;  %vm2919_vm15 = vcmp.gt.f32.partialorder %v2907_v16, 0.0  ;;  %vm2918_vm3 = vcmp.gt.f32.partialorder %v2906_v39, 0.0  ;;  %v2950_v1 = vld [vmem:[#allocation4 + $0x8] sm:$0xff]  ;;  %v2951_v4 = vld [vmem:[#allocation4 + $0x38] sm:$0xff]  ;;  %v2948_v48 = vld [vmem:[#allocation4 + $0x50] sm:$0xff] }
 0x70e   : > { %4278 = vrcp.f32 %v2920_v51  ;;  %3979 = vmatprep.subr.bf16.mxu1 %v4262_v8  ;;  %3921 = vmatprep.subr.bf16.mxu0 %v4262_v8  ;;  %v2931_v2 = vsel %vm2919_vm15, %v2907_v16, 1.0  ;;  %v2930_v53 = vsel %vm2918_vm3, %v2906_v39, 1.0  ;;  %v2949_v17 = vld [vmem:[#allocation4 + $0x20] sm:$0xff]  ;;  %v2944_v58 = vld [vmem:[#allocation4 + $0x30] sm:$0xff]  ;;  %v2953_v7 = vld [vmem:[#allocation4 + $0x48] sm:$0xff] }
 0x70f   : > { %4280 = vrcp.f32 %v2929_v27  ;;  %v2945_v44 = vld [vmem:[#allocation4] sm:$0xff]  ;;  %v2952_v22 = vld [vmem:[#allocation4 + $0x28] sm:$0xff]  ;;  %v2947_v13 = vld [vmem:[#allocation4 + $0x18] sm:$0xff] }
 0x710   : > { %4282 = vrcp.f32 %v2928_v3  ;;  %v2946_v37 = vld [vmem:[#allocation4 + $0x58] sm:$0xff]  ;;  %v2955_v26 = vld [vmem:[#allocation4 + $0x40] sm:$0xff]  ;;  %v2954_v51 = vld [vmem:[#allocation4 + $0x10] sm:$0xff] }
 0x711   : > { %3987 = vmatpush3.bf16.msra.mxu1 %v4262_v8  ;;  %3922 = vmatpush3.bf16.msra.mxu0 %v4262_v8  ;;  %4284 = vrcp.f32 %v2923_v42  ;;  %v3040_v39 = vld [vmem:[%s5017_s12 + $0x30] sm:$0xff]  ;;  %v3597_v42 = vld [vmem:[%s6364_s1] ss:$0 sm:$0xff] }
 0x712   : > { %3980 = vmatprep.subr.bf16.mxu1 %v4263_v63  ;;  %4286 = vrcp.f32 %v2922_v35  ;;  %3923 = vmatprep.subr.bf16.mxu0 %v4263_v63  ;;  %v3038_v35 = vld [vmem:[%s5017_s12 + $0x20] sm:$0xff] }
 0x713   : > { %4288 = vrcp.f32 %v2931_v2 }
 0x714   : > { %4290 = vrcp.f32 %v2930_v53  ;;  %v3039_v53 = vld [vmem:[%s5017_s12 + $0x28] sm:$0xff] }
 0x715   : > { %3988 = vmatpush3.bf16.msra.mxu1 %v4263_v63  ;;  %3924 = vmatpush3.bf16.msra.mxu0 %v4263_v63 }
 0x716   : > { %v4269_v47 = vpop.eup %4268  ;;  %3981 = vmatprep.subr.bf16.mxu1 %v4264_v14  ;;  %3925 = vmatprep.subr.bf16.mxu0 %v4264_v14 }
 0x717   : > { %v4271_v32 = vpop.eup %4270  ;;  %2988 = vperm.xlu1 %4259, %v4269_v47  }
 0x718   : > { %v4273_v49 = vpop.eup %4272  ;;  %2978 = vperm.xlu0 %4258, %v4271_v32  }
 0x719   : > { %v4275_v60 = vpop.eup %4274  ;;  %3989 = vmatpush3.bf16.msra.mxu1 %v4264_v14  ;;  %3926 = vmatpush3.bf16.msra.mxu0 %v4264_v14  ;;  %v3041_v14 = vld [vmem:[%s5017_s12 + $0x38] sm:$0xff] }
 0x71a   : > { %v4277_v62 = vpop.eup %4276  ;;  %3982 = vmatprep.subr.bf16.mxu1 %v4265_v15  ;;  %3927 = vmatprep.subr.bf16.mxu0 %v4265_v15 }
 0x71b   : > { %2993 = vperm.xlu1 %4259, %v4273_v49   ;;  %v4279_v45 = vpop.eup %4278 }
 0x71c   : > { %2983 = vperm.xlu0 %4258, %v4275_v60   ;;  %v4281_v43 = vpop.eup %4280 }
 0x71d   : > { %v4283_v20 = vpop.eup %4282  ;;  %3990 = vmatpush3.bf16.msra.mxu1 %v4265_v15  ;;  %3928 = vmatpush3.bf16.msra.mxu0 %v4265_v15 }
 0x71e   : > { %3983 = vmatprep.subr.bf16.mxu1 %v4266_v61  ;;  %v4285_v46 = vpop.eup %4284  ;;  %3929 = vmatprep.subr.bf16.mxu0 %v4266_v61 }
 0x71f   : > { %2963 = vperm.xlu1 %4259, %v4277_v62   ;;  %v4287_v59 = vpop.eup %4286 }
 0x720   : > { %2958 = vperm.xlu0 %4258, %v4279_v45   ;;  %v4289_v33 = vpop.eup %4288 }
 0x721   : > { %3991 = vmatpush3.bf16.msra.mxu1 %v4266_v61  ;;  %3930 = vmatpush3.bf16.msra.mxu0 %v4266_v61  ;;  %v4291_v54 = vpop.eup %4290 }
 0x722   : > { %3984 = vmatprep.subr.bf16.mxu1 %v4267_v52  ;;  %3931 = vmatprep.subr.bf16.mxu0 %v4267_v52 }
 0x723   : > { %3003 = vperm.xlu1 %4259, %v4281_v43  }
 0x724   : > { %2998 = vperm.xlu0 %4258, %v4283_v20  }
 0x725   : > { %3992 = vmatpush3.bf16.msra.mxu1 %v4267_v52  ;;  %3932 = vmatpush3.bf16.msra.mxu0 %v4267_v52  ;;  %v3036_v52 = vld [vmem:[%s5017_s12 + $0x10] sm:$0xff] }
 0x727   : > { %2973 = vperm.xlu1 %4259, %v4285_v46  }
 0x728   : > { %2968 = vperm.xlu0 %4258, %v4287_v59   ;;  %v3034_v59 = vld [vmem:[%s5017_s12] sm:$0xff] }
 0x72b   : > { %3013 = vperm.xlu1 %4259, %v4289_v33  }
 0x72c   : > { %3008 = vperm.xlu0 %4258, %v4291_v54  }
 0x792   : > { %v2989_v10 = vpop.permute.xlu1 %2988 }
 0x793   : > { %v2979_v6 = vpop.permute.xlu0 %2978  ;;  %v3022_v56 = vmul.f32 %v2989_v10, %v2950_v1  ;;  %v3037_v10 = vld [vmem:[%s5017_s12 + $0x18] sm:$0xff] }
 0x794   : > { %v3020_v34 = vmul.f32 %v2979_v6, %v2948_v48  ;;  %v3044_v6 = vld [vmem:[%s5017_s12 + $0x50] sm:$0xff] }
 0x796   : > { %v2994_v0 = vpop.permute.xlu1 %2993 }
 0x797   : > { %v3023_v23 = vmul.f32 %v2994_v0, %v2951_v4  ;;  %v2984_v38 = vpop.permute.xlu0 %2983  ;;  %v3035_v0 = vld [vmem:[%s5017_s12 + $0x8] sm:$0xff] }
 0x798   : > { %v3021_v21 = vmul.f32 %v2984_v38, %v2949_v17 }
 0x799   : > { %v3031_v18 = vpack.c.bf16 %v3023_v23, %v3022_v56  ;;  %v3042_v56 = vld [vmem:[%s5017_s12 + $0x40] sm:$0xff] }
 0x79a   : > { %v2964_v25 = vpop.permute.xlu1 %2963  ;;  %v3030_v31 = vpack.c.bf16 %v3021_v21, %v3020_v34 }
 0x79b   : > { %v3017_v19 = vmul.f32 %v2964_v25, %v2945_v44  ;;  %v2959_v12 = vpop.permute.xlu0 %2958 }
 0x79c   : > { %v3016_v55 = vmul.f32 %v2959_v12, %v2944_v58  ;;  %3937 = vmatprep.mubr.bf16.mxu1 %v3030_v31 }
 0x79d   : > { %3938 = vmatmul.mubr.bf16.vlgmr.msra.gmra.mxu1 %v3031_v18  ;;  %v3045_v18 = vld [vmem:[%s5017_s12 + $0x58] sm:$0xff] }
 0x79e   : > { %v3004_v5 = vpop.permute.xlu1 %3003  ;;  %v3028_v9 = vpack.c.bf16 %v3017_v19, %v3016_v55  ;;  %v3043_v55 = vld [vmem:[%s5017_s12 + $0x48] sm:$0xff] }
 0x79f   : > { %v3025_v41 = vmul.f32 %v3004_v5, %v2953_v7  ;;  %v2999_v29 = vpop.permute.xlu0 %2998 }
 0x7a0   : > { %v3024_v50 = vmul.f32 %v2999_v29, %v2952_v22  ;;  %3933 = vmatprep.mubr.bf16.mxu0 %v3028_v9 }
 0x7a2   : > { %v3032_v36 = vpack.c.bf16 %v3025_v41, %v3024_v50  ;;  %v2974_v57 = vpop.permute.xlu1 %2973 }
 0x7a3   : > { %v3019_v28 = vmul.f32 %v2974_v57, %v2947_v13  ;;  %v2969_v24 = vpop.permute.xlu0 %2968 }
 0x7a4   : > { %v3018_v40 = vmul.f32 %v2969_v24, %v2946_v37  ;;  %3941 = vmatprep.mubr.bf16.mxu1 %v3032_v36 }
 0x7a6   : > { %v3029_v30 = vpack.c.bf16 %v3019_v28, %v3018_v40  ;;  %v3014_v11 = vpop.permute.xlu1 %3013 }
 0x7a7   : > { %v3027_v8 = vmul.f32 %v3014_v11, %v2955_v26  ;;  %v3009_v27 = vpop.permute.xlu0 %3008 }
 0x7a8   : > { %v3026_v3 = vmul.f32 %v3009_v27, %v2954_v51  ;;  %3934 = vmatmul.mubr.bf16.vlgmr.msra.gmra.mxu0 %v3029_v30 }
 0x7aa   : > { %v3033_v16 = vpack.c.bf16 %v3027_v8, %v3026_v3 }
 0x7ac   : > { %3942 = vmatmul.mubr.bf16.gmra.mxu1 %v3033_v16 }
 0x85d   : > { %v3939_v63 = vpop.f32.mrf.mxu1 }
 0x85e   : > { %v3197_v47 = vadd.f32 %v3939_v63, %v3040_v39 }
 0x85f   : > { %v3160_v32 = vpop.f32.mrf.mxu1 }
 0x860   : > { %v3216_v49 = vadd.f32 %v3597_v42, %v3197_v47  ;;  %v3195_v2 = vadd.f32 %v3160_v32, %v3038_v35 }
 0x861   : > { %v3940_v60 = vpop.f32.mrf.mxu1 }
 0x862   : > { %3228 = vst [vmem:[%s5017_s12 + $0x30] sm:$0xff] %v3216_v49  ;;  %v3214_v15 = vadd.f32 %v3597_v42, %v3195_v2  ;;  %v3198_v62 = vadd.f32 %v3940_v60, %v3041_v14 }
 0x863   : > { %v3163_v45 = vpop.f32.mrf.mxu1 }
 0x864   : > { %3226 = vst [vmem:[%s5017_s12 + $0x20] sm:$0xff] %v3214_v15  ;;  %v3217_v61 = vadd.f32 %v3597_v42, %v3198_v62  ;;  %v3196_v43 = vadd.f32 %v3163_v45, %v3039_v53 }
 0x866   : > { %3229 = vst [vmem:[%s5017_s12 + $0x38] sm:$0xff] %v3217_v61  ;;  %v3215_v20 = vadd.f32 %v3597_v42, %v3196_v43 }
 0x868   : > { %3227 = vst [vmem:[%s5017_s12 + $0x28] sm:$0xff] %v3215_v20  ;;  %v3935_v46 = vpop.f32.mrf.mxu0 }
 0x869   : > { %v3193_v33 = vadd.f32 %v3935_v46, %v3036_v52 }
 0x86a   : > { %v3144_v54 = vpop.f32.mrf.mxu0 }
 0x86b   : > { %v3212_v1 = vadd.f32 %v3597_v42, %v3193_v33  ;;  %v3191_v4 = vadd.f32 %v3144_v54, %v3034_v59 }
 0x86c   : > { %v3936_v48 = vpop.f32.mrf.mxu0  ;;  %v3943_v17 = vpop.f32.mrf.mxu1 }
 0x86d   : > { %3224 = vst [vmem:[%s5017_s12 + $0x10] sm:$0xff] %v3212_v1  ;;  %v3210_v23 = vadd.f32 %v3597_v42, %v3191_v4  ;;  %v3194_v38 = vadd.f32 %v3936_v48, %v3037_v10  ;;  %v3201_v34 = vadd.f32 %v3943_v17, %v3044_v6 }
 0x86e   : > { %v3147_v21 = vpop.f32.mrf.mxu0  ;;  %v3176_v44 = vpop.f32.mrf.mxu1 }
 0x86f   : > { %3222 = vst [vmem:[%s5017_s12] sm:$0xff] %v3210_v23  ;;  %v3213_v58 = vadd.f32 %v3597_v42, %v3194_v38  ;;  %v3220_v25 = vadd.f32 %v3597_v42, %v3201_v34  ;;  %v3192_v31 = vadd.f32 %v3147_v21, %v3035_v0  ;;  %v3199_v19 = vadd.f32 %v3176_v44, %v3042_v56 }
 0x870   : > { %v3944_v12 = vpop.f32.mrf.mxu1 }
 0x871   : > { %3225 = vst [vmem:[%s5017_s12 + $0x18] sm:$0xff] %v3213_v58  ;;  %3232 = vst [vmem:[%s5017_s12 + $0x50] sm:$0xff] %v3220_v25  ;;  %v3211_v7 = vadd.f32 %v3597_v42, %v3192_v31  ;;  %v3218_v22 = vadd.f32 %v3597_v42, %v3199_v19  ;;  %v3202_v5 = vadd.f32 %v3944_v12, %v3045_v18 }
 0x872   : > { %v3179_v9 = vpop.f32.mrf.mxu1 }
 0x873   : > { %3223 = vst [vmem:[%s5017_s12 + $0x8] sm:$0xff] %v3211_v7  ;;  %3230 = vst [vmem:[%s5017_s12 + $0x40] sm:$0xff] %v3218_v22  ;;  %v3221_v41 = vadd.f32 %v3597_v42, %v3202_v5  ;;  %v3200_v29 = vadd.f32 %v3179_v9, %v3043_v55 }
 0x875   : > { %3233 = vst [vmem:[%s5017_s12 + $0x58] sm:$0xff] %v3221_v41  ;;  %v3219_v50 = vadd.f32 %v3597_v42, %v3200_v29 }
 0x877   : > { %3231 = vst [vmem:[%s5017_s12 + $0x48] sm:$0xff] %v3219_v50 }
 0x878 PF: > { %s6365_s22 = sld [smem:[#allocation27_spill]]  ;;  %s3255_s18 = sshll.u32 %s5014_s16, 4  ;;  %s6020_s18 = int_to_ptr.vmem [resolvable:$true] %s3255_s18 }
 0x879   : > { %s6366_s20 = sld [smem:[#allocation28_spill]]  ;;  %s3235_s9 = scalar_lea.sflag [#allocation7], %s4873_s27 }
 0x87a   : > { %s6368_s15 = sld [smem:[#allocation85_spill]]  ;;  %s4413_s2 = scalar_lea.vmem %s6020_s18, 2048 }
 0x87b   : > { %p4414_p10 = scmp.ne.s32.totalorder %s6020_s18, %s4413_s2  ;;  %s4595_s28 = smov [#allocation15]  }
 0x87c   : > { %s4417_s16 = sshll.u32 %s4595_s28, 4  ;;  %s4418_s16 = int_to_ptr.vmem [resolvable:$false] %s4417_s16 }
 0x87d   : > { %p4415_p7 = pnand %p4414_p10, %p4829_p13  ;;  %s4419_s19 = scalar_lea.vmem %s4418_s16, 4096 }
 0x87e   : > { %s3599_s6 = sshll.u32 %s6365_s22, 4  ;;  %p4420_p3 = scmp.lt.s32.totalorder %s6020_s18, %s4418_s16 }
 0x87f   : > { %s3600_s14 = sshll.u32 %s6366_s20, 5  ;;  %p4416_p4 = pneg %p4415_p7 }
 0x880   : > { %s3252_s10 = sadd.s32 %s3600_s14, %s3599_s6  ;;  %p4421_p9 = scmp.lt.s32.totalorder %s4419_s19, %s4413_s2 }
 0x881   : > { %s3601_s8 = sshll.u32 %s3252_s10, 7 }
 0x882   : > { %s6025_s11 = scalar_lea.hbm %s6368_s15, %s3601_s8  ;;  %p4422_p0 = por %p4421_p9, %p4420_p3 }
 0x884   : > { %p4423_p5 = pnand %p4422_p0, %p4416_p4 }
 0x886   : > { %4426 = shalt.err (!%p4423_p5)
}
 0x887   : > { %s4427_s1 = scalar_lea.hbm %s6025_s11, 2048  ;;  %s4431_s14 = scalar_lea.hbm %s6368_s15, 8192 }
 0x888   : > { %p4428_p6 = scmp.ne.s32.totalorder %s6025_s11, %s4427_s1  ;;  %p4432_p12 = scmp.lt.s32.totalorder %s6025_s11, %s6368_s15 }
 0x889   : > { %p4433_p8 = scmp.lt.s32.totalorder %s4431_s14, %s4427_s1 }
 0x88a   : > { %p4429_p11 = pnand %p4428_p6, %p4829_p13 }
 0x88b   : > { %p4434_p2 = por %p4433_p8, %p4432_p12 }
 0x88c   : > { %p4430_p1 = pneg %p4429_p11 }
 0x88e   : > { %p4435_p10 = pnand %p4434_p2, %p4430_p1 }
 0x890   : > { %4438 = shalt.err (!%p4435_p10)
}
 0x891   : > { %s4596_s4 = smov 128   ;;  %s6369_s5 = sld [smem:[#allocation25_spill]] }
 0x892   : > { %s6370_s2 = sld [smem:[#allocation30_spill]]  ;;  %s4597_s28 = smov 8  }
 0x893   : > { %4015 = dma.vmem_to_hbm [thread:$0]  (%p4829_p13), %s6020_s18, 2048, %s6025_s11, %s3235_s9, %s4596_s4, %s4596_s4, %s4597_s28  }
 0x894   : > { %s3996_s16 = smul.u32 1536, %s6366_s20  ;;  %s3271_s19 = sshll.u32 %s5017_s12, 4  ;;  %s6060_s19 = int_to_ptr.vmem [resolvable:$true] %s3271_s19 }
 0x895   : > { %s6371_s6 = sld [smem:[#allocation86_spill]]  ;;  %s4439_s24 = scalar_lea.vmem %s6060_s19, 1536 }
 0x896   : > { %p4440_p7 = scmp.ne.s32.totalorder %s6060_s19, %s4439_s24  ;;  %s4598_s27 = smov [#allocation16]  }
 0x897   : > { %s6372_s10 = sand.u32 1, %s6369_s5   ;;  %s4443_s20 = sshll.u32 %s4598_s27, 4  ;;  %s4444_s20 = int_to_ptr.vmem [resolvable:$false] %s4443_s20 }
 0x898   : > { %s3240_s8 = scalar_lea.sflag [#allocation17], %s6372_s10  ;;  %p6373_p4 = scmp.ne.s32.totalorder %s6370_s2, 0 }
 0x899   : > { %s4445_s12 = scalar_lea.vmem %s4444_s20, 3072  ;;  %p4446_p13 = scmp.lt.s32.totalorder %s6060_s19, %s4444_s20 }
 0x89a   : > { %p4441_p3 = pnand %p4440_p7, %p6373_p4  ;;  %p4447_p0 = scmp.lt.s32.totalorder %s4445_s12, %s4439_s24 }
 0x89b   : > { %s6058_s14 = scalar_lea.hbm %s6371_s6, %s3996_s16 }
 0x89c   : > { %p4442_p9 = pneg %p4441_p3  ;;  %p4448_p5 = por %p4447_p0, %p4446_p13 }
 0x89e   : > { %p4449_p6 = pnand %p4448_p5, %p4442_p9 }
 0x8a0   : > { %4452 = shalt.err (!%p4449_p6)
}
 0x8a1   : > { %s4453_s18 = scalar_lea.hbm %s6058_s14, 1536  ;;  %s4457_s5 = scalar_lea.hbm %s6371_s6, 3072 }
 0x8a2   : > { %p4454_p11 = scmp.ne.s32.totalorder %s6058_s14, %s4453_s18  ;;  %p4458_p8 = scmp.lt.s32.totalorder %s6058_s14, %s6371_s6 }
 0x8a3   : > { %p4459_p2 = scmp.lt.s32.totalorder %s4457_s5, %s4453_s18 }
 0x8a4   : > { %p4455_p1 = pnand %p4454_p11, %p6373_p4 }
 0x8a5   : > { %p4460_p10 = por %p4459_p2, %p4458_p8 }
 0x8a6   : > { %p4456_p12 = pneg %p4455_p1 }
 0x8a8   : > { %p4461_p7 = pnand %p4460_p10, %p4456_p12 }
 0x8aa   : > { %4464 = shalt.err (!%p4461_p7)
}
 0x8ab   : > { %4016 = dma.vmem_to_hbm [thread:$0]  (%p6373_p4), %s6060_s19, 1536, %s6058_s14, %s3240_s8, %s4596_s4, %s4596_s4, %s4597_s28  }
 0x8ac PF: > { %s6374_s22 = sld [smem:[#allocation26_spill]]  ;;  %p4052_p3 = scmp.ge.s32.totalorder %s4575_s13, 2 }
 0x8ad   : > { %s6375_s10 = sld [smem:[#allocation29_spill]] }
 0x8b2   : > { %s3286_s24 = sand.u32 1, %s6374_s22  }
 0x8b3   : > { %p6376_p9 = scmp.ne.s32.totalorder %s6375_s10, 0  ;;  %s3287_s27 = scalar_lea.sflag [#allocation7], %s3286_s24 }
 0x8b5   : > { %p4037_p13 = pnand %p4052_p3, %p6376_p9 }
 0x8b7   : > { %p4038_p0 = pneg %p4037_p13 }
 0x8b9   : > { %4526 = dma.done.wait (%p4038_p0), %s3287_s27, 2048  }
 0x8ba   : > { %4528 = vsyncadd (%p4038_p0), %s3287_s27, 4294965248  ;;  %s6377_s20 = sld [smem:[#allocation24_spill]] }
 0x8bb   : > { %s6378_s2 = sld [smem:[#allocation31_spill]] }
 0x8c0   : > { %s3295_s12 = sand.u32 1, %s6377_s20  }
 0x8c1   : > { %p6379_p5 = scmp.ne.s32.totalorder %s6378_s2, 0  ;;  %s3296_s18 = scalar_lea.sflag [#allocation17], %s3295_s12 }
 0x8c3   : > { %p4040_p6 = pnand %p4052_p3, %p6379_p5 }
 0x8c5   : > { %p4041_p11 = pneg %p4040_p6 }
 0x8c7   : > { %4530 = dma.done.wait (%p4041_p11), %s3296_s18, 1536  }
 0x8c8   : > { %4532 = vsyncadd (%p4041_p11), %s3296_s18, 4294965760  ;;  %s35_s13 = sadd.s32 1, %s4575_s13   ;;  %s6380_s4 = sld [smem:[#allocation25_spill]] }
 0x8c9   : > { %p32_p4 = scmp.ge.s32.totalorder %s35_s13, 6   ;;  %s6381_s28 = smov %s4842_s21 }
 0x8ca   : > { %s6382_s19 = sld [smem:[#allocation32_spill]]  ;;  %s6384_s22 = smov %s4543_s23 }
 0x8cb   : > { %s6385_s23 = smov %s6381_s28  ;;  %s6386_s24 = smov %s4551_s25 }
 0x8cc   : > { %s6387_s25 = smov %s4555_s26  ;;  %s6388_s26 = smov %s4845_s17 }
 0x8cd   : > { %s6389_s27 = smov %s4567_s29  ;;  %s6390_s28 = smov %s4571_s30 }
 0x8ce   : > { %s6383_s21 = smov %s6380_s4  ;;  %s6392_s30 = smov %s6398_s0 }
 0x8cf   :  { %34 = sbr.rel (!%p32_p4) target bundleno = 27 (0x1b), region = 160 }
 0x8d0   : > { %s6391_s29 = smov %s6382_s19 }
 0x8d4   :  { %3301 = vsyncpa [#allocation6], 1 }
 0x8d5   :  { %3303 = vsyncpa [#allocation6 + $0x1], 1 }
 0x8d6   :  { %3304 = vsyncpa [#allocation11], 1 }
 0x8d7   :  { %3305 = vsyncpa [#allocation14], 1 }
 0x8d8   :  { %3306 = vsyncpa [#allocation7], 1 }
 0x8d9   :  { %3308 = vsyncpa [#allocation7 + $0x1], 1 }
 0x8da   :  { %3309 = vsyncpa [#allocation17], 1 }
 0x8db   :  { %3311 = vsyncpa [#allocation17 + $0x1], 1 }
 0x8dc   :  { %3312 = vsyncpa [#allocation8], 1 }
 0x8dd   :  { %3314 = vsyncpa [#allocation8 + $0x1], 1 }

</bundles_post_ra>
